<compile_context>
chip_gen: v5e
topology: v5e:2x2
jax: 0.10.0
libtpu: 0.0.40
codegen_flags: <defaults>
</compile_context>

<pallas_src>
import functools

import jax
import jax.numpy as jnp
import numpy as np
from jax import lax
from jax.experimental import pallas as pl
from jax.experimental.pallas import tpu as pltpu

LANE = 128
SUB = 8


def _round_up(x, m):
    return (x + m - 1) // m * m


# ----------------------------- kernels ------------------------------------ #

def _conv_relu_gap_kernel(x_ref, w_ref, b_ref, y_ref, gap_ref, acc_ref, *,
                          valid_w):
    """One grid step == one (batch, row-tile).

    x_ref   : (TH+KH-1, Wp, KW*Cin_p) bf16  row-halo, KW-expanded input tile.
    w_ref   : (KH, KW*Cin_p, RCp)     bf16  im2col conv weight.
    b_ref   : (1, RCp)                f32   conv bias.
    y_ref   : (1, TH, Wp, RCp)        bf16  conv + bias + ReLU output tile.
    gap_ref : (1, 1, 1, Cp)           f32   radix-summed spatial partial sum.
    acc_ref : (TH*Wp, RCp)            f32   VMEM scratch accumulator.
    """
    KH = w_ref.shape[0]
    TH, Wp, RCp = y_ref.shape[1], y_ref.shape[2], y_ref.shape[3]
    Cp = gap_ref.shape[3]
    radix = RCp // Cp
    KWC = x_ref.shape[2]
    M = TH * Wp

    # KH aligned matmuls: (TH*Wp, KW*Cin_p) @ (KW*Cin_p, RCp), f32 accumulation
    # into a VMEM scratch (no large live SSA accumulator).  Wp is a multiple of
    # 8, so every slice/reshape below is (8,128)-tile aligned (no relayouts).
    for kh in range(KH):
        xk = x_ref[pl.ds(kh, TH), :, :].reshape(M, KWC)
        part = jnp.dot(xk, w_ref[kh, :, :], preferred_element_type=jnp.float32)
        if kh == 0:
            acc_ref[...] = part
        else:
            acc_ref[...] += part

    y = jnp.maximum(acc_ref[...] + b_ref[...], 0.0)        # bias + ReLU, f32
    y_ref[...] = y.reshape(1, TH, Wp, RCp).astype(y_ref.dtype)

    # radix-sum + spatial partial sum for the GAP, fused in the same tile pass
    # (computed from the f32 pre-cast y).
    gsum = y[:, 0:Cp]
    for r in range(1, radix):
        gsum = gsum + y[:, r * Cp:(r + 1) * Cp]
    if valid_w < Wp:   # mask the width-padding output columns out of the GAP
        col = lax.rem(lax.broadcasted_iota(jnp.int32, (M, Cp), 0), Wp)
        gsum = jnp.where(col < valid_w, gsum, 0.0)
    gap_ref[...] = jnp.sum(gsum, axis=0, keepdims=True).reshape(1, 1, 1, Cp)


def _attend_kernel(att_ref, y_ref, o_ref):
    """out = sum_r att[r] * split_r, per (batch, row-tile). bf16 writeback.

    att_ref : (1, radix, Cp)  f32 softmaxed attention.
    y_ref   : (1, TH, Wp, RCp) bf16.
    o_ref   : (1, TH, Wp, Cp)  bf16.
    """
    TH, Wp, Cp = o_ref.shape[1], o_ref.shape[2], o_ref.shape[3]
    radix = att_ref.shape[1]
    att = att_ref[...]                                      # (1, radix, Cp)
    acc = jnp.zeros((TH, Wp, Cp), jnp.float32)
    for r in range(radix):
        a_r = att[:, r, :].reshape(1, 1, Cp)                # (1, 1, Cp) f32
        y_r = y_ref[0, :, :, r * Cp:(r + 1) * Cp].astype(jnp.float32)
        acc = acc + a_r * y_r
    o_ref[...] = acc.reshape(1, TH, Wp, Cp).astype(o_ref.dtype)


# ------------------------------ glue --------------------------------------- #

def grouped_w_to_dense(w_pt, groups):
    """PyTorch grouped conv weight (Cout, Cin/groups, KH, KW) ->
    dense block-diagonal (KH, KW, Cin, Cout)."""
    Cout, Cin_pg, KH, KW = w_pt.shape
    cout_pg = Cout // groups
    Cin = Cin_pg * groups
    dense = jnp.zeros((KH, KW, Cin, Cout), w_pt.dtype)
    for g in range(groups):
        blk = jnp.transpose(w_pt[g * cout_pg:(g + 1) * cout_pg], (2, 3, 1, 0))
        dense = dense.at[:, :, g * Cin_pg:(g + 1) * Cin_pg,
                         g * cout_pg:(g + 1) * cout_pg].set(blk)
    return dense


def prepare_params(w_conv_pt, b_conv, w1_pt, b1, w2_pt, b2, *,
                   radix, cardinality, channels):
    """Pad channels to 128-lane multiples; conv weight -> bf16 im2col layout
    (KH, KW*Cin_p, radix*Cp), kw-major to match the KW-expanded input."""
    RC_out, Cin_pg, KH, KW = w_conv_pt.shape
    conv_groups = cardinality * radix
    Cin = Cin_pg * conv_groups
    C = channels
    Cp = _round_up(C, LANE)
    Cin_p = _round_up(Cin, LANE)
    RCp = radix * Cp

    dense = grouped_w_to_dense(w_conv_pt, conv_groups)        # (KH,KW,Cin,RC)
    w_pad = jnp.zeros((KH, KW, Cin_p, radix, Cp), jnp.float32)
    for r in range(radix):
        w_pad = w_pad.at[:, :, :Cin, r, :C].set(dense[:, :, :, r * C:(r + 1) * C])
    w_im2col = w_pad.reshape(KH, KW, Cin_p, RCp).reshape(KH, KW * Cin_p, RCp)
    w_im2col = w_im2col.astype(jnp.bfloat16)

    b_pad = jnp.zeros((radix, Cp), jnp.float32)
    b_pad = b_pad.at[:, :C].set(b_conv.reshape(radix, C)).reshape(1, RCp)

    w1 = grouped_w_to_dense(w1_pt, cardinality)[0, 0]          # (C, IC)
    w2 = grouped_w_to_dense(w2_pt, cardinality)[0, 0]          # (IC, RC)
    return {"w_conv": w_im2col, "b_conv": b_pad,
            "w1": w1, "b1": b1.reshape(1, -1),
            "w2": w2, "b2": b2.reshape(1, -1),
            "Cin": Cin, "Cin_p": Cin_p, "Cp": Cp, "KH": KH, "KW": KW}


def _vmem_limit_bytes(block_bytes):
    """Per-generation VMEM budget: scale with the actual block footprint,
    capped below the chip's physical VMEM (64 MiB on v7x, 128 MiB v5e/v6e)."""
    try:
        phys = pltpu.get_tpu_info().vmem_capacity_bytes
    except Exception:
        phys = 64 * 1024 * 1024
    cap = max(int(phys * 0.85), block_bytes + (4 << 20))
    return int(min(max(2 * block_bytes, 32 << 20), cap))


def _pick_tile_h(H, Wp, KWC, RCp):
    """Row-tile height: a multiple of 8 dividing H, large enough that the
    matmul M = TH*Wp >= 256 (fills 256x256 MXUs), within a VMEM budget."""
    budget = 8 << 20

    def tile_bytes(th):
        x_blk = 2 * (th + 2) * Wp * KWC * 2       # bf16 halo, double-buffered
        y_blk = 2 * th * Wp * RCp * 2             # bf16 y, double-buffered
        acc = th * Wp * RCp * 4                   # f32 scratch accumulator
        return x_blk + y_blk + acc

    cands = [t for t in range(SUB, H + 1, SUB) if H % t == 0]
    if not cands:
        # TODO(synk): pad H to a multiple of 8 (plus GAP row masking) instead
        # of falling back to a single whole-image tile for awkward H.
        return H
    best = cands[0]
    for t in cands:
        if tile_bytes(t) > budget:
            break
        best = t
        if t * Wp >= 256:
            break
    return best


def splat_conv2d_forward(x_nchw, params, *, radix, cardinality, channels):
    # TODO(synk): radix == 1 sigmoid branch not implemented (module default radix=2).
    assert radix > 1
    B, Cin, H, W = x_nchw.shape
    C = channels
    w_conv = params["w_conv"]                    # (KH, KW*Cin_p, RCp) bf16
    b_conv = params["b_conv"]                    # (1, RCp) f32
    KH, KW, Cin_p, Cp = params["KH"], params["KW"], params["Cin_p"], params["Cp"]
    KWC = KW * Cin_p
    RCp = radix * Cp
    ph, pw = (KH - 1) // 2, (KW - 1) // 2        # stride=1, dilation=1, 'same'

    # NCHW -> NHWC bf16, lane-pad channels, spatial zero-pad, pad width to a
    # sublane multiple so every in-kernel reshape is (8,128)-tile aligned.
    Wo = _round_up(W, SUB)
    x = jnp.transpose(x_nchw, (0, 2, 3, 1)).astype(jnp.bfloat16)
    x_sp = jnp.pad(x, ((0, 0), (ph, ph), (pw, Wo - W + pw), (0, Cin_p - Cin)))
    # KW-expansion (im2col over kernel width): last dim is kw-major x Cin_p,
    # matching the weight layout, so all stage-1 tap slices are aligned.
    x_kw = jnp.concatenate([x_sp[:, :, kw:kw + Wo, :] for kw in range(KW)],
                           axis=-1)              # (B, H+2ph, Wo, KW*Cin_p)

    TH = _pick_tile_h(H, Wo, KWC, RCp)
    nH = H // TH
    # Per-tile row halo (TH + KH - 1 rows), pre-tiled so each grid step only
    # DMAs its own window instead of the whole padded image.
    if nH == 1:
        x_tiles = x_kw[:, None]                  # (B, 1, H+2ph, Wo, KWC)
    else:
        rows = np.arange(nH)[:, None] * TH + np.arange(TH + KH - 1)[None, :]
        x_tiles = x_kw[:, rows]                  # (B, nH, TH+KH-1, Wo, KWC)

    # --- stage 1: conv + bias + ReLU + fused radix-sum partial GAP ---------- #
    s1_blocks = (2 * (TH + KH - 1) * Wo * KWC * 2 + 2 * KH * KWC * RCp * 2 +
                 2 * RCp * 4 + 2 * TH * Wo * RCp * 2 + 2 * Cp * 4 +
                 TH * Wo * RCp * 4)
    y, gap_part = pl.pallas_call(
        functools.partial(_conv_relu_gap_kernel, valid_w=W),
        out_shape=(jax.ShapeDtypeStruct((B, H, Wo, RCp), jnp.bfloat16),
                   jax.ShapeDtypeStruct((B, nH, 1, Cp), jnp.float32)),
        grid=(B, nH),
        in_specs=[
            pl.BlockSpec((None, None, TH + KH - 1, Wo, KWC),
                         lambda b, t: (b, t, 0, 0, 0)),
            pl.BlockSpec((KH, KWC, RCp), lambda b, t: (0, 0, 0)),
            pl.BlockSpec((1, RCp), lambda b, t: (0, 0)),
        ],
        out_specs=(
            pl.BlockSpec((1, TH, Wo, RCp), lambda b, t: (b, t, 0, 0)),
            pl.BlockSpec((1, 1, 1, Cp), lambda b, t: (b, t, 0, 0)),
        ),
        scratch_shapes=[pltpu.VMEM((TH * Wo, RCp), jnp.float32)],
        compiler_params=pltpu.CompilerParams(
            dimension_semantics=("parallel", "parallel"),
            vmem_limit_bytes=_vmem_limit_bytes(s1_blocks)),
    )(x_tiles, w_conv, b_conv)

    # --- stage 2 (tiny, plain XLA): GAP finish + fc1 + ReLU + fc2 + rSoftMax  #
    gap = jnp.sum(gap_part, axis=1)[:, 0, :C] / float(H * W)            # (B, C)
    z = jnp.maximum(jnp.dot(gap, params["w1"],
                            precision=lax.Precision.HIGHEST) + params["b1"], 0.0)
    logits = jnp.dot(z, params["w2"],
                     precision=lax.Precision.HIGHEST) + params["b2"]    # (B, RC)
    cpc = C // cardinality
    att = logits.reshape(B, cardinality, radix, cpc)
    att = jnp.transpose(att, (0, 2, 1, 3)).reshape(B, radix, C)
    att = jax.nn.softmax(att, axis=1)                                   # over radix
    att_pad = jnp.zeros((B, radix, Cp), jnp.float32).at[:, :, :C].set(att)

    # --- stage 3: attention-weighted radix sum, bf16 writeback -------------- #
    s3_blocks = (2 * radix * Cp * 4 + 2 * TH * Wo * RCp * 2 +
                 2 * TH * Wo * Cp * 2)
    out_p = pl.pallas_call(
        _attend_kernel,
        out_shape=jax.ShapeDtypeStruct((B, H, Wo, Cp), jnp.bfloat16),
        grid=(B, nH),
        in_specs=[
            pl.BlockSpec((1, radix, Cp), lambda b, t: (b, 0, 0)),
            pl.BlockSpec((1, TH, Wo, RCp), lambda b, t: (b, t, 0, 0)),
        ],
        out_specs=pl.BlockSpec((1, TH, Wo, Cp), lambda b, t: (b, t, 0, 0)),
        compiler_params=pltpu.CompilerParams(
            dimension_semantics=("parallel", "parallel"),
            vmem_limit_bytes=_vmem_limit_bytes(s3_blocks)),
    )(att_pad, y)

    out = out_p[:, :, :W, :C].astype(jnp.float32)      # drop padding
    return jnp.transpose(out, (0, 3, 1, 2))            # NHWC -> NCHW


# --------------------------- reference (pure JAX, f32) ---------------------- #

def reference_forward(x_nchw, raw, *, radix, cardinality, channels):
    w_conv_pt, b_conv, w1_pt, b1, w2_pt, b2 = raw
    conv_groups = cardinality * radix
    C = channels
    B = x_nchw.shape[0]
    y = lax.conv_general_dilated(
        x_nchw, w_conv_pt, window_strides=(1, 1), padding=((1, 1), (1, 1)),
        dimension_numbers=("NCHW", "OIHW", "NCHW"),
        feature_group_count=conv_groups, precision=lax.Precision.HIGHEST)
    y = jnp.maximum(y + b_conv.reshape(1, -1, 1, 1), 0.0)
    gap = sum(y[:, r * C:(r + 1) * C] for r in range(radix))
    gap = jnp.mean(gap, axis=(2, 3))[:, :, None, None]
    z = lax.conv_general_dilated(
        gap, w1_pt, (1, 1), "VALID", dimension_numbers=("NCHW", "OIHW", "NCHW"),
        feature_group_count=cardinality, precision=lax.Precision.HIGHEST)
    z = jnp.maximum(z + b1.reshape(1, -1, 1, 1), 0.0)
    att = lax.conv_general_dilated(
        z, w2_pt, (1, 1), "VALID", dimension_numbers=("NCHW", "OIHW", "NCHW"),
        feature_group_count=cardinality, precision=lax.Precision.HIGHEST)
    att = att + b2.reshape(1, -1, 1, 1)
    att = att.reshape(B, cardinality, radix, -1).transpose(0, 2, 1, 3)
    att = jax.nn.softmax(att, axis=1).reshape(B, -1)
    out = sum(att[:, r * C:(r + 1) * C][:, :, None, None] * y[:, r * C:(r + 1) * C]
              for r in range(radix))
    return out


# ------------------------------- main -------------------------------------- #

if __name__ == "__main__":
    # SplAtConv2d(in_channels=4, channels=4, kernel_size=3, padding=1,
    #             groups=1, bias=True, radix=2, reduction_factor=4, norm=None)
    B, in_channels, H, W = 2, 4, 16, 16
    channels, radix, cardinality, reduction_factor = 4, 2, 1, 4
    inter_channels = max(in_channels * radix // reduction_factor, 32)   # 32
    RC = channels * radix
    conv_groups = cardinality * radix

    key = jax.random.PRNGKey(0)
    kx, kwc, kbw, k1, kb1, k2, kb2 = jax.random.split(key, 7)

    x = jax.random.normal(kx, (B, in_channels, H, W), jnp.float32)

    # deterministic synthetic parameters (PyTorch layouts)
    w_conv_pt = 0.1 * jax.random.normal(
        kwc, (RC, in_channels // conv_groups, 3, 3), jnp.float32)
    b_conv = 0.1 * jax.random.normal(kbw, (RC,), jnp.float32)
    w1_pt = 0.1 * jax.random.normal(
        k1, (inter_channels, channels // cardinality, 1, 1), jnp.float32)
    b1 = 0.1 * jax.random.normal(kb1, (inter_channels,), jnp.float32)
    w2_pt = 0.1 * jax.random.normal(
        k2, (RC, inter_channels // cardinality, 1, 1), jnp.float32)
    b2 = 0.1 * jax.random.normal(kb2, (RC,), jnp.float32)

    params = prepare_params(w_conv_pt, b_conv, w1_pt, b1, w2_pt, b2,
                            radix=radix, cardinality=cardinality,
                            channels=channels)

    fwd = jax.jit(lambda xx: splat_conv2d_forward(
        xx, params, radix=radix, cardinality=cardinality, channels=channels))
    out = jax.block_until_ready(fwd(x))

    ref = reference_forward(x, (w_conv_pt, b_conv, w1_pt, b1, w2_pt, b2),
                            radix=radix, cardinality=cardinality,
                            channels=channels)
    # bf16 matmuls / bf16 y + out vs. the f32 HIGHEST-precision reference.
    np.testing.assert_allclose(np.asarray(out), np.asarray(ref),
                               rtol=2e-2, atol=2e-2)
    assert out.shape == (B, channels, H, W)

    print("KERNEL_OK")
</pallas_src>

<mosaic_0001>
module attributes {stable_mosaic.version = 11 : i64} {
  func.func @_conv_relu_gap_kernel(%arg0: i32, %arg1: i32, %arg2: memref<1x1x18x16x384xbf16, #tpu.memory_space<vmem>>, %arg3: memref<3x384x256xbf16, #tpu.memory_space<vmem>>, %arg4: memref<1x256xf32, #tpu.memory_space<vmem>>, %arg5: memref<1x16x16x256xbf16, #tpu.memory_space<vmem>>, %arg6: memref<1x1x1x128xf32, #tpu.memory_space<vmem>>, %arg7: memref<256x256xf32, #tpu.memory_space<vmem>>) attributes {dimension_semantics = [#tpu.dimension_semantics<parallel>, #tpu.dimension_semantics<parallel>], iteration_bounds = array<i64: 2, 1>, scalar_prefetch = 0 : i64, scratch_operands = 1 : i64, tpu.core_type = #tpu.core_type<tc>, window_params = [{transform_indices = @transform_0, window_bounds = array<i64: 1, 1, 18, 16, 384>}, {pipeline_mode = #tpu.pipeline_mode<synchronous>, transform_indices = @transform_1, window_bounds = array<i64: 3, 384, 256>}, {pipeline_mode = #tpu.pipeline_mode<synchronous>, transform_indices = @transform_2, window_bounds = array<i64: 1, 256>}, {transform_indices = @transform_3, window_bounds = array<i64: 1, 16, 16, 256>}, {transform_indices = @transform_4, window_bounds = array<i64: 1, 1, 1, 128>}]} {
    %c0 = arith.constant 0 : index
    %c0_0 = arith.constant 0 : index
    %c0_1 = arith.constant 0 : index
    %c0_2 = arith.constant 0 : index
    %c0_3 = arith.constant 0 : index
    %0 = vector.load %arg2[%c0, %c0_0, %c0_1, %c0_2, %c0_3] : memref<1x1x18x16x384xbf16, #tpu.memory_space<vmem>>, vector<1x1x16x16x384xbf16>
    %1 = vector.shape_cast %0 : vector<1x1x16x16x384xbf16> to vector<16x16x384xbf16>
    %2 = vector.shape_cast %1 : vector<16x16x384xbf16> to vector<256x384xbf16>
    %c0_4 = arith.constant 0 : index
    %c0_5 = arith.constant 0 : index
    %c0_6 = arith.constant 0 : index
    %3 = vector.load %arg3[%c0_4, %c0_5, %c0_6] : memref<3x384x256xbf16, #tpu.memory_space<vmem>>, vector<1x384x256xbf16>
    %4 = vector.shape_cast %3 : vector<1x384x256xbf16> to vector<384x256xbf16>
    %cst = arith.constant dense<0.000000e+00> : vector<256x256xf32>
    %5 = tpu.matmul %2, %4, %cst {dimension_numbers = #tpu.dot_dimension_numbers<[1], [0], [0], [1], [0, 0, 1, 1], [], []>} : vector<256x384xbf16>, vector<384x256xbf16>, vector<256x256xf32> -> vector<256x256xf32>
    %c0_7 = arith.constant 0 : index
    %c0_8 = arith.constant 0 : index
    %6 = vector.load %arg7[%c0_7, %c0_8] : memref<256x256xf32, #tpu.memory_space<vmem>>, vector<256x256xf32>
    tpu.vector_store %arg7[%c0_7, %c0_8], %5 {strides = array<i32>} : memref<256x256xf32, #tpu.memory_space<vmem>>, vector<256x256xf32>,
    %c0_9 = arith.constant 0 : index
    %c0_10 = arith.constant 0 : index
    %c1 = arith.constant 1 : index
    %c0_11 = arith.constant 0 : index
    %c0_12 = arith.constant 0 : index
    %7 = vector.load %arg2[%c0_9, %c0_10, %c1, %c0_11, %c0_12] : memref<1x1x18x16x384xbf16, #tpu.memory_space<vmem>>, vector<1x1x16x16x384xbf16>
    %8 = vector.shape_cast %7 : vector<1x1x16x16x384xbf16> to vector<16x16x384xbf16>
    %9 = vector.shape_cast %8 : vector<16x16x384xbf16> to vector<256x384xbf16>
    %c1_13 = arith.constant 1 : index
    %c0_14 = arith.constant 0 : index
    %c0_15 = arith.constant 0 : index
    %10 = vector.load %arg3[%c1_13, %c0_14, %c0_15] : memref<3x384x256xbf16, #tpu.memory_space<vmem>>, vector<1x384x256xbf16>
    %11 = vector.shape_cast %10 : vector<1x384x256xbf16> to vector<384x256xbf16>
    %cst_16 = arith.constant dense<0.000000e+00> : vector<256x256xf32>
    %12 = tpu.matmul %9, %11, %cst_16 {dimension_numbers = #tpu.dot_dimension_numbers<[1], [0], [0], [1], [0, 0, 1, 1], [], []>} : vector<256x384xbf16>, vector<384x256xbf16>, vector<256x256xf32> -> vector<256x256xf32>
    %c0_17 = arith.constant 0 : index
    %c0_18 = arith.constant 0 : index
    %13 = vector.load %arg7[%c0_17, %c0_18] : memref<256x256xf32, #tpu.memory_space<vmem>>, vector<256x256xf32>
    %14 = arith.addf %13, %12 : vector<256x256xf32>
    %c0_19 = arith.constant 0 : index
    %c0_20 = arith.constant 0 : index
    %15 = vector.load %arg7[%c0_19, %c0_20] : memref<256x256xf32, #tpu.memory_space<vmem>>, vector<256x256xf32>
    tpu.vector_store %arg7[%c0_19, %c0_20], %14 {strides = array<i32>} : memref<256x256xf32, #tpu.memory_space<vmem>>, vector<256x256xf32>,
    %c0_21 = arith.constant 0 : index
    %c0_22 = arith.constant 0 : index
    %c2 = arith.constant 2 : index
    %c0_23 = arith.constant 0 : index
    %c0_24 = arith.constant 0 : index
    %16 = vector.load %arg2[%c0_21, %c0_22, %c2, %c0_23, %c0_24] : memref<1x1x18x16x384xbf16, #tpu.memory_space<vmem>>, vector<1x1x16x16x384xbf16>
    %17 = vector.shape_cast %16 : vector<1x1x16x16x384xbf16> to vector<16x16x384xbf16>
    %18 = vector.shape_cast %17 : vector<16x16x384xbf16> to vector<256x384xbf16>
    %c2_25 = arith.constant 2 : index
    %c0_26 = arith.constant 0 : index
    %c0_27 = arith.constant 0 : index
    %19 = vector.load %arg3[%c2_25, %c0_26, %c0_27] : memref<3x384x256xbf16, #tpu.memory_space<vmem>>, vector<1x384x256xbf16>
    %20 = vector.shape_cast %19 : vector<1x384x256xbf16> to vector<384x256xbf16>
    %cst_28 = arith.constant dense<0.000000e+00> : vector<256x256xf32>
    %21 = tpu.matmul %18, %20, %cst_28 {dimension_numbers = #tpu.dot_dimension_numbers<[1], [0], [0], [1], [0, 0, 1, 1], [], []>} : vector<256x384xbf16>, vector<384x256xbf16>, vector<256x256xf32> -> vector<256x256xf32>
    %c0_29 = arith.constant 0 : index
    %c0_30 = arith.constant 0 : index
    %22 = vector.load %arg7[%c0_29, %c0_30] : memref<256x256xf32, #tpu.memory_space<vmem>>, vector<256x256xf32>
    %23 = arith.addf %22, %21 : vector<256x256xf32>
    %c0_31 = arith.constant 0 : index
    %c0_32 = arith.constant 0 : index
    %24 = vector.load %arg7[%c0_31, %c0_32] : memref<256x256xf32, #tpu.memory_space<vmem>>, vector<256x256xf32>
    tpu.vector_store %arg7[%c0_31, %c0_32], %23 {strides = array<i32>} : memref<256x256xf32, #tpu.memory_space<vmem>>, vector<256x256xf32>,
    %c0_33 = arith.constant 0 : index
    %c0_34 = arith.constant 0 : index
    %25 = vector.load %arg7[%c0_33, %c0_34] : memref<256x256xf32, #tpu.memory_space<vmem>>, vector<256x256xf32>
    %c0_35 = arith.constant 0 : index
    %c0_36 = arith.constant 0 : index
    %26 = vector.load %arg4[%c0_35, %c0_36] : memref<1x256xf32, #tpu.memory_space<vmem>>, vector<1x256xf32>
    %27 = vector.broadcast %26 : vector<1x256xf32> to vector<256x256xf32>
    %28 = arith.addf %25, %27 : vector<256x256xf32>
    %cst_37 = arith.constant 0.000000e+00 : f32
    %29 = vector.broadcast %cst_37 : f32 to vector<256x256xf32>
    %30 = arith.maximumf %28, %29 : vector<256x256xf32>
    %31 = vector.shape_cast %30 : vector<256x256xf32> to vector<1x16x16x256xf32>
    %32 = arith.truncf %31 : vector<1x16x16x256xf32> to vector<1x16x16x256xbf16>
    %c0_38 = arith.constant 0 : index
    %c0_39 = arith.constant 0 : index
    %c0_40 = arith.constant 0 : index
    %c0_41 = arith.constant 0 : index
    %33 = vector.load %arg5[%c0_38, %c0_39, %c0_40, %c0_41] : memref<1x16x16x256xbf16, #tpu.memory_space<vmem>>, vector<1x16x16x256xbf16>
    tpu.vector_store %arg5[%c0_38, %c0_39, %c0_40, %c0_41], %32 {strides = array<i32>} : memref<1x16x16x256xbf16, #tpu.memory_space<vmem>>, vector<1x16x16x256xbf16>,
    %34 = vector.extract_strided_slice %30 {offsets = [0, 0], sizes = [256, 128], strides = [1, 1]} : vector<256x256xf32> to vector<256x128xf32>
    %35 = vector.extract_strided_slice %30 {offsets = [0, 128], sizes = [256, 128], strides = [1, 1]} : vector<256x256xf32> to vector<256x128xf32>
    %36 = arith.addf %34, %35 : vector<256x128xf32>
    %cst_42 = arith.constant dense<0.000000e+00> : vector<128xf32>
    %37 = vector.multi_reduction <add>, %36, %cst_42 [0] : vector<256x128xf32> to vector<128xf32>
    %38 = vector.shape_cast %37 : vector<128xf32> to vector<1x128xf32>
    %39 = vector.shape_cast %38 : vector<1x128xf32> to vector<1x1x1x128xf32>
    %c0_43 = arith.constant 0 : index
    %c0_44 = arith.constant 0 : index
    %c0_45 = arith.constant 0 : index
    %c0_46 = arith.constant 0 : index
    %40 = vector.load %arg6[%c0_43, %c0_44, %c0_45, %c0_46] : memref<1x1x1x128xf32, #tpu.memory_space<vmem>>, vector<1x1x1x128xf32>
    tpu.vector_store %arg6[%c0_43, %c0_44, %c0_45, %c0_46], %39 {strides = array<i32>} : memref<1x1x1x128xf32, #tpu.memory_space<vmem>>, vector<1x1x1x128xf32>,
    return
  }
  func.func @transform_0(%arg0: i32, %arg1: i32) -> (i32, i32, i32, i32, i32) {
    %c0_i32 = arith.constant 0 : i32
    %c0_i32_0 = arith.constant 0 : i32
    %c0_i32_1 = arith.constant 0 : i32
    %c0_i32_2 = arith.constant 0 : i32
    return %arg0, %arg1, %c0_i32, %c0_i32_0, %c0_i32_1 : i32, i32, i32, i32, i32
  }
  func.func @transform_1(%arg0: i32, %arg1: i32) -> (i32, i32, i32) {
    %c0_i32 = arith.constant 0 : i32
    %c0_i32_0 = arith.constant 0 : i32
    %c0_i32_1 = arith.constant 0 : i32
    %c0_i32_2 = arith.constant 0 : i32
    return %c0_i32, %c0_i32_0, %c0_i32_1 : i32, i32, i32
  }
  func.func @transform_2(%arg0: i32, %arg1: i32) -> (i32, i32) {
    %c0_i32 = arith.constant 0 : i32
    %c0_i32_0 = arith.constant 0 : i32
    %c0_i32_1 = arith.constant 0 : i32
    return %c0_i32, %c0_i32_0 : i32, i32
  }
  func.func @transform_3(%arg0: i32, %arg1: i32) -> (i32, i32, i32, i32) {
    %c0_i32 = arith.constant 0 : i32
    %c0_i32_0 = arith.constant 0 : i32
    %c0_i32_1 = arith.constant 0 : i32
    return %arg0, %arg1, %c0_i32, %c0_i32_0 : i32, i32, i32, i32
  }
  func.func @transform_4(%arg0: i32, %arg1: i32) -> (i32, i32, i32, i32) {
    %c0_i32 = arith.constant 0 : i32
    %c0_i32_0 = arith.constant 0 : i32
    %c0_i32_1 = arith.constant 0 : i32
    return %arg0, %arg1, %c0_i32, %c0_i32_0 : i32, i32, i32, i32
  }
}

module attributes {stable_mosaic.version = 11 : i64} {
  func.func @_attend_kernel(%arg0: i32, %arg1: i32, %arg2: memref<1x2x128xf32, #tpu.memory_space<vmem>>, %arg3: memref<1x16x16x256xbf16, #tpu.memory_space<vmem>>, %arg4: memref<1x16x16x128xbf16, #tpu.memory_space<vmem>>) attributes {dimension_semantics = [#tpu.dimension_semantics<parallel>, #tpu.dimension_semantics<parallel>], iteration_bounds = array<i64: 2, 1>, scalar_prefetch = 0 : i64, scratch_operands = 0 : i64, tpu.core_type = #tpu.core_type<tc>, window_params = [{transform_indices = @transform_0, window_bounds = array<i64: 1, 2, 128>}, {transform_indices = @transform_1, window_bounds = array<i64: 1, 16, 16, 256>}, {transform_indices = @transform_2, window_bounds = array<i64: 1, 16, 16, 128>}]} {
    %c0 = arith.constant 0 : index
    %c0_0 = arith.constant 0 : index
    %c0_1 = arith.constant 0 : index
    %0 = vector.load %arg2[%c0, %c0_0, %c0_1] : memref<1x2x128xf32, #tpu.memory_space<vmem>>, vector<1x2x128xf32>
    %cst = arith.constant 0.000000e+00 : f32
    %1 = vector.broadcast %cst : f32 to vector<16x16x128xf32>
    %2 = vector.extract_strided_slice %0 {offsets = [0, 0, 0], sizes = [1, 1, 128], strides = [1, 1, 1]} : vector<1x2x128xf32> to vector<1x1x128xf32>
    %3 = vector.shape_cast %2 : vector<1x1x128xf32> to vector<1x128xf32>
    %4 = vector.shape_cast %3 : vector<1x128xf32> to vector<1x1x128xf32>
    %c0_2 = arith.constant 0 : index
    %c0_3 = arith.constant 0 : index
    %c0_4 = arith.constant 0 : index
    %c0_5 = arith.constant 0 : index
    %5 = vector.load %arg3[%c0_2, %c0_3, %c0_4, %c0_5] : memref<1x16x16x256xbf16, #tpu.memory_space<vmem>>, vector<1x16x16x128xbf16>
    %6 = vector.shape_cast %5 : vector<1x16x16x128xbf16> to vector<16x16x128xbf16>
    %7 = arith.extf %6 : vector<16x16x128xbf16> to vector<16x16x128xf32>
    %8 = vector.broadcast %4 : vector<1x1x128xf32> to vector<16x16x128xf32>
    %9 = arith.mulf %8, %7 : vector<16x16x128xf32>
    %10 = arith.addf %1, %9 : vector<16x16x128xf32>
    %11 = vector.extract_strided_slice %0 {offsets = [0, 1, 0], sizes = [1, 1, 128], strides = [1, 1, 1]} : vector<1x2x128xf32> to vector<1x1x128xf32>
    %12 = vector.shape_cast %11 : vector<1x1x128xf32> to vector<1x128xf32>
    %13 = vector.shape_cast %12 : vector<1x128xf32> to vector<1x1x128xf32>
    %c0_6 = arith.constant 0 : index
    %c0_7 = arith.constant 0 : index
    %c0_8 = arith.constant 0 : index
    %c128 = arith.constant 128 : index
    %14 = vector.load %arg3[%c0_6, %c0_7, %c0_8, %c128] : memref<1x16x16x256xbf16, #tpu.memory_space<vmem>>, vector<1x16x16x128xbf16>
    %15 = vector.shape_cast %14 : vector<1x16x16x128xbf16> to vector<16x16x128xbf16>
    %16 = arith.extf %15 : vector<16x16x128xbf16> to vector<16x16x128xf32>
    %17 = vector.broadcast %13 : vector<1x1x128xf32> to vector<16x16x128xf32>
    %18 = arith.mulf %17, %16 : vector<16x16x128xf32>
    %19 = arith.addf %10, %18 : vector<16x16x128xf32>
    %20 = vector.shape_cast %19 : vector<16x16x128xf32> to vector<1x16x16x128xf32>
    %21 = arith.truncf %20 : vector<1x16x16x128xf32> to vector<1x16x16x128xbf16>
    %c0_9 = arith.constant 0 : index
    %c0_10 = arith.constant 0 : index
    %c0_11 = arith.constant 0 : index
    %c0_12 = arith.constant 0 : index
    %22 = vector.load %arg4[%c0_9, %c0_10, %c0_11, %c0_12] : memref<1x16x16x128xbf16, #tpu.memory_space<vmem>>, vector<1x16x16x128xbf16>
    tpu.vector_store %arg4[%c0_9, %c0_10, %c0_11, %c0_12], %21 {strides = array<i32>} : memref<1x16x16x128xbf16, #tpu.memory_space<vmem>>, vector<1x16x16x128xbf16>,
    return
  }
  func.func @transform_0(%arg0: i32, %arg1: i32) -> (i32, i32, i32) {
    %c0_i32 = arith.constant 0 : i32
    %c0_i32_0 = arith.constant 0 : i32
    %c0_i32_1 = arith.constant 0 : i32
    return %arg0, %c0_i32, %c0_i32_0 : i32, i32, i32
  }
  func.func @transform_1(%arg0: i32, %arg1: i32) -> (i32, i32, i32, i32) {
    %c0_i32 = arith.constant 0 : i32
    %c0_i32_0 = arith.constant 0 : i32
    %c0_i32_1 = arith.constant 0 : i32
    return %arg0, %arg1, %c0_i32, %c0_i32_0 : i32, i32, i32, i32
  }
  func.func @transform_2(%arg0: i32, %arg1: i32) -> (i32, i32, i32, i32) {
    %c0_i32 = arith.constant 0 : i32
    %c0_i32_0 = arith.constant 0 : i32
    %c0_i32_1 = arith.constant 0 : i32
    return %arg0, %arg1, %c0_i32, %c0_i32_0 : i32, i32, i32, i32
  }
}

</mosaic_0001>

<bundles_post_ra>
// kernel: _lambda_.3
= control target key start
LH: loop header
LB: loop body
LE: loop exit
PB: predicated region body
PF: predicated region fallthrough
CT: control target
= control target key end

     0   :  { %s808_s9 = smov 0   ;;  %s810_s10 = smov 0   ;;  %s969_s0 = inlined_call_operand.vmem [shape: f32[2,2,128], index: 0, kind: input, shape index: {}]   ;;  %s970_s1 = inlined_call_operand.vmem [shape: bf16[2,16,16,256], index: 1, kind: input, shape index: {}]   ;;  %s971_s2 = inlined_call_operand.vmem [shape: bf16[2,16,16,128], index: 2, kind: output, shape index: {}]  }
   0x1   :  { %s812_s11 = smov 0  }
   0x2 LB: > { %s24_s12 = sadd.s32 1, %s787_s10  ;;  %p640_p0 = scmp.ge.s32.totalorder %s791_s11, 1  ;;  %s791_s11 = sphi %s812_s11, %s12_s11   ;;  %s787_s10 = sphi %s810_s10, %s973_s10   ;;  %s783_s9 = sphi %s808_s9, %s972_s9  }
   0x3   : > { %p26_p1 = scmp.ge.s32.totalorder %s24_s12, 2  ;;  %p143_p2 = scmp.lt.s32.totalorder %s791_s11, 3 }
   0x5   : > { %s975_s12 = smov (%p26_p1, %s24_s12), 0  ;;  %p144_p3 = pnand %p640_p0, %p143_p2 }
   0x6   : > { %p179_p4 = scmp.lt.s32.totalorder (!%p144_p3), %s783_s9, 1 }
   0x7   : > { %147 = sbr.rel (%p144_p3) target bundleno = 66 (0x42), region = 28 }
   0xc   : > { %s977_s9 = smov (!%p179_p4, %s783_s9), 1 }
   0xd   : > { %s641_s13 = sshll.u32 %s977_s9, 1  ;;  %s648_s14 = sshll.u32 %s977_s9, 8 }
   0xe   : > { %s182_s17 = scalar_lea.vmem %s969_s0, %s641_s13  ;;  %s836_s20 = scalar_lea.vmem %s970_s1, %s648_s14 }
   0xf   : > { %v205_v0 = vld [vmem:[%s182_s17] sm:$0x3]  ;;  %v207_v2 = vld [vmem:[%s836_s20 + $0x8] sm:$0xff]   ;;  %v208_v7 = vld [vmem:[%s836_s20 + $0x10] sm:$0xff]   ;;  %s649_s21 = sshll.u32 %s977_s9, 7 }
  0x10   : > { %v206_v1 = vld [vmem:[%s836_s20] sm:$0xff]   ;;  %v239_v4 = vunpack.c.l.bf16 %v207_v2  ;;  %v840_v5 = vperm.slane %v205_v0, 0  ;;  %v209_v8 = vld [vmem:[%s836_s20 + $0x18] sm:$0xff]   ;;  %v368_v9 = vunpack.c.h.bf16 %v207_v2  ;;  %v844_v10 = vperm.slane %v205_v0, 1  ;;  %v211_v14 = vld [vmem:[%s836_s20 + $0x28] sm:$0xff]   ;;  %s862_s24 = scalar_lea.vmem %s971_s2, %s649_s21 }
  0x11   : > { %v238_v3 = vunpack.c.l.bf16 %v206_v1  ;;  %v367_v6 = vunpack.c.h.bf16 %v206_v1  ;;  %v240_v11 = vunpack.c.l.bf16 %v208_v7  ;;  %v241_v12 = vunpack.c.l.bf16 %v209_v8  ;;  %v210_v13 = vld [vmem:[%s836_s20 + $0x20] sm:$0xff]   ;;  %v212_v27 = vld [vmem:[%s836_s20 + $0x30] sm:$0xff]   ;;  %v213_v32 = vld [vmem:[%s836_s20 + $0x38] sm:$0xff]  }
  0x12   : > { %v272_v16 = vmul.f32 %v840_v5, %v239_v4  ;;  %v369_v17 = vunpack.c.h.bf16 %v208_v7  ;;  %v370_v18 = vunpack.c.h.bf16 %v209_v8  ;;  %v401_v20 = vmul.f32 %v844_v10, %v368_v9  ;;  %v214_v37 = vld [vmem:[%s836_s20 + $0x40] sm:$0xff]   ;;  %v215_v42 = vld [vmem:[%s836_s20 + $0x48] sm:$0xff]   ;;  %v216_v51 = vld [vmem:[%s836_s20 + $0x50] sm:$0xff]  }
  0x13   : > { %v271_v15 = vmul.f32 %v840_v5, %v238_v3  ;;  %v400_v19 = vmul.f32 %v844_v10, %v367_v6  ;;  %v273_v21 = vmul.f32 %v840_v5, %v240_v11  ;;  %v274_v22 = vmul.f32 %v840_v5, %v241_v12  ;;  %v217_v56 = vld [vmem:[%s836_s20 + $0x58] sm:$0xff]   ;;  %v218_v61 = vld [vmem:[%s836_s20 + $0x60] sm:$0xff]   ;;  %v219_v7 = vld [vmem:[%s836_s20 + $0x68] sm:$0xff]  }
  0x14   : > { %v402_v23 = vmul.f32 %v844_v10, %v369_v17  ;;  %v403_v24 = vmul.f32 %v844_v10, %v370_v18  ;;  %v242_v25 = vunpack.c.l.bf16 %v210_v13  ;;  %v243_v26 = vunpack.c.l.bf16 %v211_v14  ;;  %v221_v18 = vld [vmem:[%s836_s20 + $0x78] sm:$0xff]  }
  0x15   : > { %v432_v28 = vadd.f32 %v400_v19, %v271_v15  ;;  %v433_v29 = vadd.f32 %v401_v20, %v272_v16  ;;  %v371_v30 = vunpack.c.h.bf16 %v210_v13  ;;  %v372_v31 = vunpack.c.h.bf16 %v211_v14  ;;  %v220_v13 = vld [vmem:[%s836_s20 + $0x70] sm:$0xff]  }
  0x16   : > { %v434_v33 = vadd.f32 %v402_v23, %v273_v21  ;;  %v435_v34 = vadd.f32 %v403_v24, %v274_v22  ;;  %v275_v35 = vmul.f32 %v840_v5, %v242_v25  ;;  %v276_v36 = vmul.f32 %v840_v5, %v243_v26 }
  0x17   : > { %v653_v38 = vpack.c.bf16 %v433_v29, %v432_v28  ;;  %v404_v39 = vmul.f32 %v844_v10, %v371_v30  ;;  %v405_v40 = vmul.f32 %v844_v10, %v372_v31  ;;  %v244_v41 = vunpack.c.l.bf16 %v212_v27 }
  0x18   : > { %v658_v43 = vpack.c.bf16 %v435_v34, %v434_v33  ;;  %v245_v44 = vunpack.c.l.bf16 %v213_v32  ;;  %v373_v45 = vunpack.c.h.bf16 %v212_v27  ;;  %v374_v46 = vunpack.c.h.bf16 %v213_v32  ;;  %v222_v27 = vld [vmem:[%s836_s20 + $0x80] sm:$0xff]   ;;  %v223_v32 = vld [vmem:[%s836_s20 + $0x88] sm:$0xff]  }
  0x19   : > { %654 = vst [vmem:[%s862_s24] sm:$0xff] %v653_v38   ;;  %v436_v47 = vadd.f32 %v404_v39, %v275_v35  ;;  %v437_v48 = vadd.f32 %v405_v40, %v276_v36  ;;  %v277_v49 = vmul.f32 %v840_v5, %v244_v41  ;;  %v246_v50 = vunpack.c.l.bf16 %v214_v37 }
  0x1a   : > { %730 = vst [vmem:[%s862_s24 + $0x8] sm:$0xff] %v658_v43   ;;  %v278_v52 = vmul.f32 %v840_v5, %v245_v44  ;;  %v406_v53 = vmul.f32 %v844_v10, %v373_v45  ;;  %v407_v54 = vmul.f32 %v844_v10, %v374_v46  ;;  %v247_v55 = vunpack.c.l.bf16 %v215_v42  ;;  %v225_v46 = vld [vmem:[%s836_s20 + $0x98] sm:$0xff]  }
  0x1b   : > { %v663_v57 = vpack.c.bf16 %v437_v48, %v436_v47  ;;  %v279_v58 = vmul.f32 %v840_v5, %v246_v50  ;;  %v375_v59 = vunpack.c.h.bf16 %v214_v37  ;;  %v376_v60 = vunpack.c.h.bf16 %v215_v42  ;;  %v224_v37 = vld [vmem:[%s836_s20 + $0x90] sm:$0xff]  }
  0x1c   : > { %v438_v62 = vadd.f32 %v406_v53, %v277_v49  ;;  %v439_v63 = vadd.f32 %v407_v54, %v278_v52  ;;  %v280_v0 = vmul.f32 %v840_v5, %v247_v55  ;;  %v248_v1 = vunpack.c.l.bf16 %v216_v51 }
  0x1d   : > { %731 = vst [vmem:[%s862_s24 + $0x10] sm:$0xff] %v663_v57   ;;  %v408_v2 = vmul.f32 %v844_v10, %v375_v59  ;;  %v409_v3 = vmul.f32 %v844_v10, %v376_v60  ;;  %v249_v4 = vunpack.c.l.bf16 %v217_v56  ;;  %v377_v6 = vunpack.c.h.bf16 %v216_v51  ;;  %v226_v51 = vld [vmem:[%s836_s20 + $0xa0] sm:$0xff]  }
  0x1e   : > { %v668_v8 = vpack.c.bf16 %v439_v63, %v438_v62  ;;  %v281_v9 = vmul.f32 %v840_v5, %v248_v1  ;;  %v378_v11 = vunpack.c.h.bf16 %v217_v56  ;;  %v250_v12 = vunpack.c.l.bf16 %v218_v61  ;;  %v227_v56 = vld [vmem:[%s836_s20 + $0xa8] sm:$0xff]   ;;  %v228_v1 = vld [vmem:[%s836_s20 + $0xb0] sm:$0xff]  }
  0x1f   : > { %v440_v14 = vadd.f32 %v408_v2, %v279_v58  ;;  %v441_v15 = vadd.f32 %v409_v3, %v280_v0  ;;  %v282_v16 = vmul.f32 %v840_v5, %v249_v4  ;;  %v410_v17 = vmul.f32 %v844_v10, %v377_v6 }
  0x20   : > { %732 = vst [vmem:[%s862_s24 + $0x18] sm:$0xff] %v668_v8   ;;  %v411_v19 = vmul.f32 %v844_v10, %v378_v11  ;;  %v251_v20 = vunpack.c.l.bf16 %v219_v7  ;;  %v283_v21 = vmul.f32 %v840_v5, %v250_v12  ;;  %v379_v22 = vunpack.c.h.bf16 %v218_v61 }
  0x21   : > { %v673_v23 = vpack.c.bf16 %v441_v15, %v440_v14  ;;  %v442_v24 = vadd.f32 %v410_v17, %v281_v9  ;;  %v380_v25 = vunpack.c.h.bf16 %v219_v7  ;;  %v252_v26 = vunpack.c.l.bf16 %v220_v13  ;;  %v229_v7 = vld [vmem:[%s836_s20 + $0xb8] sm:$0xff]   ;;  %v230_v17 = vld [vmem:[%s836_s20 + $0xc0] sm:$0xff]  }
  0x22   : > { %v443_v28 = vadd.f32 %v411_v19, %v282_v16  ;;  %v284_v29 = vmul.f32 %v840_v5, %v251_v20  ;;  %v412_v30 = vmul.f32 %v844_v10, %v379_v22  ;;  %v253_v31 = vunpack.c.l.bf16 %v221_v18  ;;  %v231_v22 = vld [vmem:[%s836_s20 + $0xc8] sm:$0xff]  }
  0x23   : > { %733 = vst [vmem:[%s862_s24 + $0x20] sm:$0xff] %v673_v23   ;;  %v413_v33 = vmul.f32 %v844_v10, %v380_v25  ;;  %v285_v34 = vmul.f32 %v840_v5, %v252_v26  ;;  %v381_v35 = vunpack.c.h.bf16 %v220_v13  ;;  %v382_v36 = vunpack.c.h.bf16 %v221_v18 }
  0x24   : > { %v678_v38 = vpack.c.bf16 %v443_v28, %v442_v24  ;;  %v444_v39 = vadd.f32 %v412_v30, %v283_v21  ;;  %v286_v40 = vmul.f32 %v840_v5, %v253_v31  ;;  %v254_v41 = vunpack.c.l.bf16 %v222_v27 }
  0x25   : > { %v445_v42 = vadd.f32 %v413_v33, %v284_v29  ;;  %v414_v43 = vmul.f32 %v844_v10, %v381_v35  ;;  %v415_v44 = vmul.f32 %v844_v10, %v382_v36  ;;  %v255_v45 = vunpack.c.l.bf16 %v223_v32  ;;  %v233_v36 = vld [vmem:[%s836_s20 + $0xd8] sm:$0xff]  }
  0x26   : > { %734 = vst [vmem:[%s862_s24 + $0x28] sm:$0xff] %v678_v38   ;;  %v287_v47 = vmul.f32 %v840_v5, %v254_v41  ;;  %v383_v48 = vunpack.c.h.bf16 %v222_v27  ;;  %v384_v49 = vunpack.c.h.bf16 %v223_v32  ;;  %v256_v50 = vunpack.c.l.bf16 %v224_v37  ;;  %v232_v27 = vld [vmem:[%s836_s20 + $0xd0] sm:$0xff]   ;;  %v234_v41 = vld [vmem:[%s836_s20 + $0xe0] sm:$0xff]  }
  0x27   : > { %v683_v52 = vpack.c.bf16 %v445_v42, %v444_v39  ;;  %v446_v53 = vadd.f32 %v414_v43, %v285_v34  ;;  %v447_v54 = vadd.f32 %v415_v44, %v286_v40  ;;  %v288_v55 = vmul.f32 %v840_v5, %v255_v45 }
  0x28   : > { %v416_v57 = vmul.f32 %v844_v10, %v383_v48  ;;  %v417_v58 = vmul.f32 %v844_v10, %v384_v49  ;;  %v257_v59 = vunpack.c.l.bf16 %v225_v46  ;;  %v289_v60 = vmul.f32 %v840_v5, %v256_v50 }
  0x29   : > { %735 = vst [vmem:[%s862_s24 + $0x30] sm:$0xff] %v683_v52   ;;  %v688_v61 = vpack.c.bf16 %v447_v54, %v446_v53  ;;  %v385_v62 = vunpack.c.h.bf16 %v224_v37  ;;  %v386_v63 = vunpack.c.h.bf16 %v225_v46  ;;  %v258_v0 = vunpack.c.l.bf16 %v226_v51  ;;  %v235_v46 = vld [vmem:[%s836_s20 + $0xe8] sm:$0xff]  }
  0x2a   : > { %v448_v2 = vadd.f32 %v416_v57, %v287_v47  ;;  %v449_v3 = vadd.f32 %v417_v58, %v288_v55  ;;  %v290_v4 = vmul.f32 %v840_v5, %v257_v59  ;;  %v259_v6 = vunpack.c.l.bf16 %v227_v56  ;;  %v236_v55 = vld [vmem:[%s836_s20 + $0xf0] sm:$0xff]  }
  0x2b   : > { %736 = vst [vmem:[%s862_s24 + $0x38] sm:$0xff] %v688_v61   ;;  %v418_v8 = vmul.f32 %v844_v10, %v385_v62  ;;  %v419_v9 = vmul.f32 %v844_v10, %v386_v63  ;;  %v291_v11 = vmul.f32 %v840_v5, %v258_v0  ;;  %v387_v12 = vunpack.c.h.bf16 %v226_v51 }
  0x2c   : > { %v693_v13 = vpack.c.bf16 %v449_v3, %v448_v2  ;;  %v292_v14 = vmul.f32 %v840_v5, %v259_v6  ;;  %v388_v15 = vunpack.c.h.bf16 %v227_v56  ;;  %v260_v16 = vunpack.c.l.bf16 %v228_v1 }
  0x2d   : > { %v450_v18 = vadd.f32 %v418_v8, %v289_v60  ;;  %v451_v19 = vadd.f32 %v419_v9, %v290_v4  ;;  %v420_v20 = vmul.f32 %v844_v10, %v387_v12  ;;  %v261_v21 = vunpack.c.l.bf16 %v229_v7  ;;  %v237_v60 = vld [vmem:[%s836_s20 + $0xf8] sm:$0xff]  }
  0x2e   : > { %737 = vst [vmem:[%s862_s24 + $0x40] sm:$0xff] %v693_v13   ;;  %v421_v23 = vmul.f32 %v844_v10, %v388_v15  ;;  %v293_v24 = vmul.f32 %v840_v5, %v260_v16  ;;  %v389_v25 = vunpack.c.h.bf16 %v228_v1  ;;  %v390_v26 = vunpack.c.h.bf16 %v229_v7 }
  0x2f   : > { %v698_v28 = vpack.c.bf16 %v451_v19, %v450_v18  ;;  %v452_v29 = vadd.f32 %v420_v20, %v291_v11  ;;  %v294_v30 = vmul.f32 %v840_v5, %v261_v21  ;;  %v262_v31 = vunpack.c.l.bf16 %v230_v17 }
  0x30   : > { %v453_v32 = vadd.f32 %v421_v23, %v292_v14  ;;  %v422_v33 = vmul.f32 %v844_v10, %v389_v25  ;;  %v423_v34 = vmul.f32 %v844_v10, %v390_v26  ;;  %v263_v35 = vunpack.c.l.bf16 %v231_v22 }
  0x31   : > { %738 = vst [vmem:[%s862_s24 + $0x48] sm:$0xff] %v698_v28   ;;  %v295_v37 = vmul.f32 %v840_v5, %v262_v31  ;;  %v391_v38 = vunpack.c.h.bf16 %v230_v17  ;;  %v392_v39 = vunpack.c.h.bf16 %v231_v22  ;;  %v264_v40 = vunpack.c.l.bf16 %v232_v27 }
  0x32   : > { %v703_v42 = vpack.c.bf16 %v453_v32, %v452_v29  ;;  %v454_v43 = vadd.f32 %v422_v33, %v293_v24  ;;  %v455_v44 = vadd.f32 %v423_v34, %v294_v30  ;;  %v296_v45 = vmul.f32 %v840_v5, %v263_v35 }
  0x33   : > { %v424_v47 = vmul.f32 %v844_v10, %v391_v38  ;;  %v425_v48 = vmul.f32 %v844_v10, %v392_v39  ;;  %v265_v49 = vunpack.c.l.bf16 %v233_v36  ;;  %v297_v50 = vmul.f32 %v840_v5, %v264_v40 }
  0x34   : > { %739 = vst [vmem:[%s862_s24 + $0x50] sm:$0xff] %v703_v42   ;;  %v708_v51 = vpack.c.bf16 %v455_v44, %v454_v43  ;;  %v393_v52 = vunpack.c.h.bf16 %v232_v27  ;;  %v394_v53 = vunpack.c.h.bf16 %v233_v36  ;;  %v266_v54 = vunpack.c.l.bf16 %v234_v41 }
  0x35   : > { %v456_v56 = vadd.f32 %v424_v47, %v295_v37  ;;  %v457_v57 = vadd.f32 %v425_v48, %v296_v45  ;;  %v298_v58 = vmul.f32 %v840_v5, %v265_v49  ;;  %v267_v59 = vunpack.c.l.bf16 %v235_v46 }
  0x36   : > { %740 = vst [vmem:[%s862_s24 + $0x58] sm:$0xff] %v708_v51   ;;  %v426_v61 = vmul.f32 %v844_v10, %v393_v52  ;;  %v427_v62 = vmul.f32 %v844_v10, %v394_v53  ;;  %v299_v63 = vmul.f32 %v840_v5, %v266_v54  ;;  %v395_v0 = vunpack.c.h.bf16 %v234_v41 }
  0x37   : > { %v713_v1 = vpack.c.bf16 %v457_v57, %v456_v56  ;;  %v300_v2 = vmul.f32 %v840_v5, %v267_v59  ;;  %v396_v3 = vunpack.c.h.bf16 %v235_v46  ;;  %v268_v4 = vunpack.c.l.bf16 %v236_v55 }
  0x38   : > { %v458_v6 = vadd.f32 %v426_v61, %v297_v50  ;;  %v459_v7 = vadd.f32 %v427_v62, %v298_v58  ;;  %v428_v8 = vmul.f32 %v844_v10, %v395_v0  ;;  %v269_v9 = vunpack.c.l.bf16 %v237_v60 }
  0x39   : > { %741 = vst [vmem:[%s862_s24 + $0x60] sm:$0xff] %v713_v1   ;;  %v429_v11 = vmul.f32 %v844_v10, %v396_v3  ;;  %v301_v12 = vmul.f32 %v840_v5, %v268_v4  ;;  %v397_v13 = vunpack.c.h.bf16 %v236_v55  ;;  %v398_v14 = vunpack.c.h.bf16 %v237_v60 }
  0x3a   : > { %v718_v15 = vpack.c.bf16 %v459_v7, %v458_v6  ;;  %v460_v16 = vadd.f32 %v428_v8, %v299_v63  ;;  %v302_v17 = vmul.f32 %v840_v5, %v269_v9 }
  0x3b   : > { %v461_v18 = vadd.f32 %v429_v11, %v300_v2  ;;  %v430_v19 = vmul.f32 %v844_v10, %v397_v13  ;;  %v431_v20 = vmul.f32 %v844_v10, %v398_v14 }
  0x3c   : > { %742 = vst [vmem:[%s862_s24 + $0x68] sm:$0xff] %v718_v15  }
  0x3d   : > { %v723_v21 = vpack.c.bf16 %v461_v18, %v460_v16  ;;  %v462_v22 = vadd.f32 %v430_v19, %v301_v12  ;;  %v463_v23 = vadd.f32 %v431_v20, %v302_v17 }
  0x3f   : > { %743 = vst [vmem:[%s862_s24 + $0x70] sm:$0xff] %v723_v21   ;;  %v728_v24 = vpack.c.bf16 %v463_v23, %v462_v22 }
  0x41   : > { %744 = vst [vmem:[%s862_s24 + $0x78] sm:$0xff] %v728_v24  }
  0x42 PF: > { %s12_s11 = sadd.s32 1, %s791_s11   ;;  %s972_s9 = smov %s787_s10 }
  0x43   : > { %p9_p5 = scmp.ge.s32.totalorder %s12_s11, 4   ;;  %s973_s10 = smov %s975_s12 }
  0x45   :  { %11 = sbr.rel (!%p9_p5) target bundleno = 2 (0x2), region = 61 }

// kernel: _lambda_.2
= control target key start
LH: loop header
LB: loop body
LE: loop exit
PB: predicated region body
PF: predicated region fallthrough
CT: control target
= control target key end

     0   :  { %s6360_s15 = smov 0   ;;  %s6362_s16 = smov 0   ;;  %s8720_s0 = inlined_call_operand.vmem [shape: bf16[2,1,18,16,384], index: 0, kind: input, shape index: {}]   ;;  %s8721_s1 = inlined_call_operand.vmem [shape: bf16[3,384,256], index: 1, kind: input, shape index: {}]   ;;  %s8722_s2 = inlined_call_operand.vmem [shape: f32[1,256], index: 2, kind: input, shape index: {}]   ;;  %s8723_s3 = inlined_call_operand.vmem [shape: bf16[2,16,16,256], index: 3, kind: output, shape index: {0}]   ;;  %s8724_s4 = inlined_call_operand.vmem [shape: f32[2,1,1,128], index: 4, kind: output, shape index: {1}]  }
   0x1   :  { %s6364_s17 = smov 0  }
   0x2 LB: > { %s27_s18 = sadd.s32 1, %s6329_s16  ;;  %p4599_p0 = scmp.ge.s32.totalorder %s6333_s17, 1  ;;  %s6333_s17 = sphi %s6364_s17, %s15_s17   ;;  %s6329_s16 = sphi %s6362_s16, %s8993_s16   ;;  %s6325_s15 = sphi %s6360_s15, %s8992_s15  }
   0x3   : > { %p29_p1 = scmp.ge.s32.totalorder %s27_s18, 2  ;;  %p187_p2 = scmp.lt.s32.totalorder %s6333_s17, 3 }
   0x5   : > { %s8995_s18 = smov (%p29_p1, %s27_s18), 0  ;;  %p188_p3 = pnand %p4599_p0, %p187_p2 }
   0x7   : > { %191 = sbr.rel (%p188_p3) target bundleno = 1352 (0x548), region = 32 }
   0xc   : > { %v4853_v0 = vld [vmem:[%s8721_s1 + $0x70] sm:$0xf]  ;;  %v6045_v1 = vld [vmem:[%s8721_s1 + $0x74] sm:$0xf0]  ;;  %v4845_v5 = vld [vmem:[%s8721_s1 + $0x60] sm:$0xf] }
   0xd   : > { %v4917_v2 = vld [vmem:[%s8721_s1 + $0xf0] sm:$0xf]  ;;  %v4854_v3 = vor.u32 %v6045_v1, %v4853_v0  ;;  %v6061_v4 = vld [vmem:[%s8721_s1 + $0xf4] sm:$0xf0]  ;;  %v6043_v6 = vld [vmem:[%s8721_s1 + $0x64] sm:$0xf0] }
   0xe   : > { %v4918_v7 = vor.u32 %v6061_v4, %v4917_v2  ;;  %v4909_v8 = vld [vmem:[%s8721_s1 + $0xe0] sm:$0xf]  ;;  %v6059_v9 = vld [vmem:[%s8721_s1 + $0xe4] sm:$0xf0]  ;;  %v4846_v10 = vor.u32 %v6043_v6, %v4845_v5  ;;  %v4837_v12 = vld [vmem:[%s8721_s1 + $0x50] sm:$0xf] }
   0xf   : > { %862 = vmatpush.bf16.msra.mxu0 %v4854_v3  ;;  %6270 = vmatpush.bf16.msra.mxu2 %v4854_v3  ;;  %v4910_v11 = vor.u32 %v6059_v9, %v4909_v8  ;;  %v6041_v13 = vld [vmem:[%s8721_s1 + $0x54] sm:$0xf0]  ;;  %v4901_v14 = vld [vmem:[%s8721_s1 + $0xd0] sm:$0xf]  ;;  %v4829_v18 = vld [vmem:[%s8721_s1 + $0x40] sm:$0xf] }
  0x10   : > { %951 = vmatpush.bf16.msra.mxu1 %v4918_v7  ;;  %6278 = vmatpush.bf16.msra.mxu3 %v4918_v7  ;;  %v6057_v15 = vld [vmem:[%s8721_s1 + $0xd4] sm:$0xf0]  ;;  %v4838_v16 = vor.u32 %v6041_v13, %v4837_v12  ;;  %v6039_v19 = vld [vmem:[%s8721_s1 + $0x44] sm:$0xf0]  ;;  %v4893_v20 = vld [vmem:[%s8721_s1 + $0xc0] sm:$0xf] }
  0x11   : > { %v4902_v17 = vor.u32 %v6057_v15, %v4901_v14  ;;  %v6055_v21 = vld [vmem:[%s8721_s1 + $0xc4] sm:$0xf0]  ;;  %v4830_v22 = vor.u32 %v6039_v19, %v4829_v18  ;;  %p228_p4 = scmp.lt.s32.totalorder %s6325_s15, 1  ;;  %v4821_v24 = vld [vmem:[%s8721_s1 + $0x30] sm:$0xf] }
  0x12   : > { %v4894_v23 = vor.u32 %v6055_v21, %v4893_v20  ;;  %v6037_v25 = vld [vmem:[%s8721_s1 + $0x34] sm:$0xf0]  ;;  %v4885_v26 = vld [vmem:[%s8721_s1 + $0xb0] sm:$0xf]  ;;  %v4813_v30 = vld [vmem:[%s8721_s1 + $0x20] sm:$0xf] }
  0x13   : > { %863 = vmatpush.bf16.msra.mxu0 %v4846_v10  ;;  %6271 = vmatpush.bf16.msra.mxu2 %v4846_v10  ;;  %v6053_v27 = vld [vmem:[%s8721_s1 + $0xb4] sm:$0xf0]  ;;  %v4822_v28 = vor.u32 %v6037_v25, %v4821_v24  ;;  %s8997_s15 = smov (!%p228_p4, %s6325_s15), 1  ;;  %v6035_v31 = vld [vmem:[%s8721_s1 + $0x24] sm:$0xf0] }
  0x14   : > { %952 = vmatpush.bf16.msra.mxu1 %v4910_v11  ;;  %6279 = vmatpush.bf16.msra.mxu3 %v4910_v11  ;;  %v4886_v29 = vor.u32 %v6053_v27, %v4885_v26  ;;  %v4877_v32 = vld [vmem:[%s8721_s1 + $0xa0] sm:$0xf]  ;;  %v6051_v33 = vld [vmem:[%s8721_s1 + $0xa4] sm:$0xf0]  ;;  %v4814_v34 = vor.u32 %v6035_v31, %v4813_v30  ;;  %s6286_s23 = smul.u32 432, %s8997_s15  ;;  %s5981_s5 = sshll.u32 %s8997_s15, 8 }
  0x15   : > { %v4878_v35 = vor.u32 %v6051_v33, %v4877_v32  ;;  %v4805_v36 = vld [vmem:[%s8721_s1 + $0x10] sm:$0xf]  ;;  %v6033_v37 = vld [vmem:[%s8721_s1 + $0x14] sm:$0xf0]  ;;  %v4797_v41 = vld [vmem:[%s8721_s1] sm:$0xf]  ;;  %s8493_s8 = scalar_lea.vmem %s8723_s3, %s5981_s5  ;;  %s253_s11 = scalar_lea.vmem %s8724_s4, %s8997_s15 }
  0x16   : > { %v4869_v38 = vld [vmem:[%s8721_s1 + $0x90] sm:$0xf]  ;;  %v6049_v39 = vld [vmem:[%s8721_s1 + $0x94] sm:$0xf0]  ;;  %v4806_v40 = vor.u32 %v6033_v37, %v4805_v36  ;;  %s6475_s10 = scalar_lea.vmem %s8720_s0, %s6286_s23  ;;  %v6031_v43 = vld [vmem:[%s8721_s1 + $0x4] sm:$0xf0] }
  0x17   : > { %864 = vmatpush.bf16.msra.mxu0 %v4838_v16  ;;  %6272 = vmatpush.bf16.msra.mxu2 %v4838_v16  ;;  %v4870_v42 = vor.u32 %v6049_v39, %v4869_v38  ;;  %v4861_v44 = vld [vmem:[%s8721_s1 + $0x80] sm:$0xf]  ;;  %v6047_v45 = vld [vmem:[%s8721_s1 + $0x84] sm:$0xf0]  ;;  %v6044_v46 = vld [vmem:[%s8721_s1 + $0x74] sm:$0xf]  ;;  %v4798_v52 = vor.u32 %v6031_v43, %v4797_v41 }
  0x18   : > { %953 = vmatpush.bf16.msra.mxu1 %v4902_v17  ;;  %6280 = vmatpush.bf16.msra.mxu3 %v4902_v17  ;;  %v4855_v47 = vld [vmem:[%s8721_s1 + $0x78] sm:$0xf0]  ;;  %v4981_v48 = vld [vmem:[%s8721_s1 + $0x170] sm:$0xf]  ;;  %v4605_v49 = vld [vmem:[%s6475_s10] sm:$0xf]  ;;  %v4862_v58 = vor.u32 %v6047_v45, %v4861_v44 }
  0x19   : > { %v5983_v50 = vld [vmem:[%s6475_s10 + $0x8] sm:$0xf0]  ;;  %v6077_v51 = vld [vmem:[%s8721_s1 + $0x174] sm:$0xf0]  ;;  %v4701_v53 = vld [vmem:[%s6475_s10 + $0xc0] sm:$0xf]  ;;  %v4858_v62 = vor.u32 %v6044_v46, %v4855_v47 }
  0x1a   : > { %v6007_v54 = vld [vmem:[%s6475_s10 + $0xc8] sm:$0xf0]  ;;  %v5982_v55 = vld [vmem:[%s6475_s10 + $0x4] sm:$0xf]  ;;  %v6060_v56 = vld [vmem:[%s8721_s1 + $0xf4] sm:$0xf]  ;;  %v4982_v63 = vor.u32 %v6077_v51, %v4981_v48  ;;  %v6521_v3 = vor.u32 %v5983_v50, %v4605_v49 }
  0x1b   : > { %865 = vmatpush.bf16.msra.mxu0 %v4830_v22  ;;  %6273 = vmatpush.bf16.msra.mxu2 %v4830_v22  ;;  %v4919_v57 = vld [vmem:[%s8721_s1 + $0xf8] sm:$0xf0]  ;;  %v4607_v59 = vld [vmem:[%s6475_s10 + $0xc] sm:$0xf0]  ;;  %v6006_v60 = vld [vmem:[%s6475_s10 + $0xc4] sm:$0xf]  ;;  %v6523_v4 = vor.u32 %v6007_v54, %v4701_v53 }
  0x1c   : > { %954 = vmatpush.bf16.msra.mxu1 %v4894_v23  ;;  %6281 = vmatpush.bf16.msra.mxu3 %v4894_v23  ;;  %v4703_v61 = vld [vmem:[%s6475_s10 + $0xcc] sm:$0xf0]  ;;  %v6076_v0 = vld [vmem:[%s8721_s1 + $0x174] sm:$0xf]  ;;  %v4983_v1 = vld [vmem:[%s8721_s1 + $0x178] sm:$0xf0]  ;;  %v6534_v8 = vor.u32 %v5982_v55, %v4607_v59  ;;  %v4922_v10 = vor.u32 %v6060_v56, %v4919_v57 }
  0x1d   : > { %v6042_v2 = vld [vmem:[%s8721_s1 + $0x64] sm:$0xf]  ;;  %v4847_v5 = vld [vmem:[%s8721_s1 + $0x68] sm:$0xf0]  ;;  %v4973_v6 = vld [vmem:[%s8721_s1 + $0x160] sm:$0xf]  ;;  %v6536_v9 = vor.u32 %v6006_v60, %v4703_v61  ;;  %v4986_v11 = vor.u32 %v6076_v0, %v4983_v1 }
  0x1e   : > { %v6075_v7 = vld [vmem:[%s8721_s1 + $0x164] sm:$0xf0]  ;;  %v6058_v12 = vld [vmem:[%s8721_s1 + $0xe4] sm:$0xf]  ;;  %v4850_v13 = vor.u32 %v6042_v2, %v4847_v5  ;;  %v4911_v15 = vld [vmem:[%s8721_s1 + $0xe8] sm:$0xf0] }
  0x1f   : > { %866 = vmatpush.bf16.msra.mxu0 %v4822_v28  ;;  %6274 = vmatpush.bf16.msra.mxu2 %v4822_v28  ;;  %v4974_v14 = vor.u32 %v6075_v7, %v4973_v6  ;;  %v6074_v16 = vld [vmem:[%s8721_s1 + $0x164] sm:$0xf]  ;;  %v4975_v17 = vld [vmem:[%s8721_s1 + $0x168] sm:$0xf0]  ;;  %v6040_v18 = vld [vmem:[%s8721_s1 + $0x54] sm:$0xf]  ;;  %v4914_v21 = vor.u32 %v6058_v12, %v4911_v15 }
  0x20   : > { %955 = vmatpush.bf16.msra.mxu1 %v4886_v29  ;;  %6282 = vmatpush.bf16.msra.mxu3 %v4886_v29  ;;  %v4839_v19 = vld [vmem:[%s8721_s1 + $0x58] sm:$0xf0]  ;;  %v4965_v20 = vld [vmem:[%s8721_s1 + $0x150] sm:$0xf]  ;;  %v4978_v22 = vor.u32 %v6074_v16, %v4975_v17  ;;  %v6073_v23 = vld [vmem:[%s8721_s1 + $0x154] sm:$0xf0] }
  0x21   : > { %v6056_v24 = vld [vmem:[%s8721_s1 + $0xd4] sm:$0xf]  ;;  %v4842_v25 = vor.u32 %v6040_v18, %v4839_v19  ;;  %v4966_v26 = vor.u32 %v6073_v23, %v4965_v20  ;;  %v4903_v27 = vld [vmem:[%s8721_s1 + $0xd8] sm:$0xf0]  ;;  %v4617_v32 = vld [vmem:[%s6475_s10 + $0x18] sm:$0xf] }
  0x22   : > { %v6072_v28 = vld [vmem:[%s8721_s1 + $0x154] sm:$0xf]  ;;  %v4967_v29 = vld [vmem:[%s8721_s1 + $0x158] sm:$0xf0]  ;;  %v4906_v30 = vor.u32 %v6056_v24, %v4903_v27  ;;  %v5986_v33 = vld [vmem:[%s6475_s10 + $0x20] sm:$0xf0] }
  0x23   : > { %867 = vmatpush.bf16.msra.mxu0 %v4814_v34  ;;  %6275 = vmatpush.bf16.msra.mxu2 %v4814_v34  ;;  %v4970_v31 = vor.u32 %v6072_v28, %v4967_v29  ;;  %v4713_v34 = vld [vmem:[%s6475_s10 + $0xd8] sm:$0xf]  ;;  %v5985_v36 = vld [vmem:[%s6475_s10 + $0x1c] sm:$0xf]  ;;  %v4619_v37 = vld [vmem:[%s6475_s10 + $0x24] sm:$0xf0] }
  0x24   : > { %956 = vmatpush.bf16.msra.mxu1 %v4878_v35  ;;  %6283 = vmatpush.bf16.msra.mxu3 %v4878_v35  ;;  %v6010_v35 = vld [vmem:[%s6475_s10 + $0xe0] sm:$0xf0]  ;;  %v6009_v38 = vld [vmem:[%s6475_s10 + $0xdc] sm:$0xf]  ;;  %v4715_v39 = vld [vmem:[%s6475_s10 + $0xe4] sm:$0xf0] }
  0x25   : > { %v6588_v41 = vor.u32 %v6010_v35, %v4713_v34  ;;  %v6592_v43 = vor.u32 %v6009_v38, %v4715_v39  ;;  %v6038_v44 = vld [vmem:[%s8721_s1 + $0x44] sm:$0xf]  ;;  %v4831_v45 = vld [vmem:[%s8721_s1 + $0x48] sm:$0xf0]  ;;  %v4957_v46 = vld [vmem:[%s8721_s1 + $0x140] sm:$0xf] }
  0x26   : > { %v4834_v47 = vor.u32 %v6038_v44, %v4831_v45  ;;  %v6071_v48 = vld [vmem:[%s8721_s1 + $0x144] sm:$0xf0]  ;;  %v6054_v49 = vld [vmem:[%s8721_s1 + $0xc4] sm:$0xf]  ;;  %v4895_v50 = vld [vmem:[%s8721_s1 + $0xc8] sm:$0xf0] }
  0x27   : > { %868 = vmatpush.bf16.msra.mxu0 %v4806_v40  ;;  %6276 = vmatpush.bf16.msra.mxu2 %v4806_v40  ;;  %v6586_v40 = vor.u32 %v5986_v33, %v4617_v32  ;;  %v4958_v51 = vor.u32 %v6071_v48, %v4957_v46  ;;  %v6070_v53 = vld [vmem:[%s8721_s1 + $0x144] sm:$0xf]  ;;  %v4959_v54 = vld [vmem:[%s8721_s1 + $0x148] sm:$0xf0]  ;;  %v4629_v56 = vld [vmem:[%s6475_s10 + $0x30] sm:$0xf] }
  0x28   : > { %957 = vmatpush.bf16.msra.mxu1 %v4870_v42  ;;  %6284 = vmatpush.bf16.msra.mxu3 %v4870_v42  ;;  %v6590_v42 = vor.u32 %v5985_v36, %v4619_v37  ;;  %v4962_v55 = vor.u32 %v6070_v53, %v4959_v54  ;;  %v5989_v57 = vld [vmem:[%s6475_s10 + $0x38] sm:$0xf0]  ;;  %v5988_v60 = vld [vmem:[%s6475_s10 + $0x34] sm:$0xf]  ;;  %v4631_v61 = vld [vmem:[%s6475_s10 + $0x3c] sm:$0xf0] }
  0x29   : > { %v6013_v59 = vld [vmem:[%s6475_s10 + $0xf8] sm:$0xf0]  ;;  %v6630_v0 = vor.u32 %v5989_v57, %v4629_v56  ;;  %v6634_v2 = vor.u32 %v5988_v60, %v4631_v61  ;;  %v6036_v6 = vld [vmem:[%s8721_s1 + $0x34] sm:$0xf]  ;;  %v6069_v12 = vld [vmem:[%s8721_s1 + $0x134] sm:$0xf0] }
  0x2a   : > { %v4823_v7 = vld [vmem:[%s8721_s1 + $0x38] sm:$0xf0]  ;;  %v6068_v17 = vld [vmem:[%s8721_s1 + $0x134] sm:$0xf]  ;;  %v4641_v20 = vld [vmem:[%s6475_s10 + $0x48] sm:$0xf] }
  0x2b   : > { %869 = vmatpush.bf16.msra.mxu0 %v4798_v52  ;;  %6277 = vmatpush.bf16.msra.mxu2 %v4798_v52  ;;  %v4898_v52 = vor.u32 %v6054_v49, %v4895_v50  ;;  %v4951_v18 = vld [vmem:[%s8721_s1 + $0x138] sm:$0xf0]  ;;  %v6016_v23 = vld [vmem:[%s6475_s10 + $0x110] sm:$0xf0]  ;;  %v5991_v24 = vld [vmem:[%s6475_s10 + $0x4c] sm:$0xf] }
  0x2c   : > { %958 = vmatpush.bf16.msra.mxu1 %v4862_v58  ;;  %6285 = vmatpush.bf16.msra.mxu3 %v4862_v58  ;;  %v4725_v58 = vld [vmem:[%s6475_s10 + $0xf0] sm:$0xf]  ;;  %v4954_v19 = vor.u32 %v6068_v17, %v4951_v18  ;;  %v4739_v27 = vld [vmem:[%s6475_s10 + $0x114] sm:$0xf0]  ;;  %v6034_v32 = vld [vmem:[%s8721_s1 + $0x24] sm:$0xf] }
  0x2d   : > { %v6632_v1 = vor.u32 %v6013_v59, %v4725_v58  ;;  %v4815_v33 = vld [vmem:[%s8721_s1 + $0x28] sm:$0xf0]  ;;  %v4941_v34 = vld [vmem:[%s8721_s1 + $0x120] sm:$0xf]  ;;  %v6067_v36 = vld [vmem:[%s8721_s1 + $0x124] sm:$0xf0] }
  0x2e   : > { %870 = vmatmul.bf16.vlgmr.msra.gmra.mxu0 %v6521_v3  ;;  %910 = vmatmul.bf16.vlgmr.msra.gmra.mxu2 %v6523_v4  ;;  %v4818_v35 = vor.u32 %v6034_v32, %v4815_v33  ;;  %v6050_v37 = vld [vmem:[%s8721_s1 + $0xa4] sm:$0xf]  ;;  %v4879_v38 = vld [vmem:[%s8721_s1 + $0xa8] sm:$0xf0]  ;;  %v4942_v39 = vor.u32 %v6067_v36, %v4941_v34  ;;  %v4653_v48 = vld [vmem:[%s6475_s10 + $0x60] sm:$0xf] }
  0x2f   : > { %1040 = vmatpush.bf16.msrb.mxu2 %v4982_v63  ;;  %959 = vmatmul.bf16.vlgmr.msra.gmra.mxu1 %v6534_v8  ;;  %v4727_v63 = vld [vmem:[%s6475_s10 + $0xfc] sm:$0xf0]  ;;  %v4882_v44 = vor.u32 %v6050_v37, %v4879_v38  ;;  %v6066_v45 = vld [vmem:[%s8721_s1 + $0x124] sm:$0xf]  ;;  %v4943_v46 = vld [vmem:[%s8721_s1 + $0x128] sm:$0xf0] }
  0x30   : > { %1129 = vmatpush.bf16.msrb.mxu3 %v4858_v62  ;;  %1218 = vmatpush.bf16.msrb.mxu0 %v4922_v10  ;;  %v6012_v62 = vld [vmem:[%s6475_s10 + $0xf4] sm:$0xf]  ;;  %v4949_v10 = vld [vmem:[%s8721_s1 + $0x130] sm:$0xf]  ;;  %v5995_v49 = vld [vmem:[%s6475_s10 + $0x68] sm:$0xf0] }
  0x31   : > { %999 = vmatmul.bf16.vlgmr.msra.gmra.mxu3 %v6536_v9  ;;  %1307 = vmatpush.bf16.msrb.mxu1 %v4986_v11  ;;  %v6636_v5 = vor.u32 %v6012_v62, %v4727_v63  ;;  %v4826_v11 = vor.u32 %v6036_v6, %v4823_v7  ;;  %v4950_v15 = vor.u32 %v6069_v12, %v4949_v10  ;;  %v4749_v50 = vld [vmem:[%s6475_s10 + $0x120] sm:$0xf]  ;;  %v4655_v53 = vld [vmem:[%s6475_s10 + $0x6c] sm:$0xf0]  ;;  %v6018_v54 = vld [vmem:[%s6475_s10 + $0x124] sm:$0xf] }
  0x32   : > { %v6718_v56 = vor.u32 %v5995_v49, %v4653_v48  ;;  %v6032_v60 = vld [vmem:[%s8721_s1 + $0x14] sm:$0xf]  ;;  %v4807_v61 = vld [vmem:[%s8721_s1 + $0x18] sm:$0xf0]  ;;  %v4933_v62 = vld [vmem:[%s8721_s1 + $0x110] sm:$0xf] }
  0x33   : > { %1041 = vmatpush.bf16.msrb.mxu2 %v4974_v14  ;;  %v4887_v14 = vld [vmem:[%s8721_s1 + $0xb8] sm:$0xf0]  ;;  %v4810_v63 = vor.u32 %v6032_v60, %v4807_v61  ;;  %v6065_v6 = vld [vmem:[%s8721_s1 + $0x114] sm:$0xf0]  ;;  %v6048_v7 = vld [vmem:[%s8721_s1 + $0x94] sm:$0xf] }
  0x34   : > { %1130 = vmatpush.bf16.msrb.mxu3 %v4850_v13  ;;  %1219 = vmatpush.bf16.msrb.mxu0 %v4914_v21  ;;  %v6052_v13 = vld [vmem:[%s8721_s1 + $0xb4] sm:$0xf]  ;;  %v4871_v10 = vld [vmem:[%s8721_s1 + $0x98] sm:$0xf0]  ;;  %v5998_v17 = vld [vmem:[%s6475_s10 + $0x80] sm:$0xf0] }
  0x35   : > { %1308 = vmatpush.bf16.msrb.mxu1 %v4978_v22  ;;  %v4890_v16 = vor.u32 %v6052_v13, %v4887_v14  ;;  %v5992_v21 = vld [vmem:[%s6475_s10 + $0x50] sm:$0xf0]  ;;  %v4737_v22 = vld [vmem:[%s6475_s10 + $0x108] sm:$0xf]  ;;  %v4874_v12 = vor.u32 %v6048_v7, %v4871_v10  ;;  %v4935_v14 = vld [vmem:[%s8721_s1 + $0x118] sm:$0xf0] }
  0x36   : > { %v6674_v28 = vor.u32 %v5992_v21, %v4641_v20  ;;  %v6676_v29 = vor.u32 %v6016_v23, %v4737_v22  ;;  %v6064_v13 = vld [vmem:[%s8721_s1 + $0x114] sm:$0xf]  ;;  %v4761_v18 = vld [vmem:[%s6475_s10 + $0x138] sm:$0xf]  ;;  %v5997_v20 = vld [vmem:[%s6475_s10 + $0x7c] sm:$0xf] }
  0x37   : > { %1042 = vmatpush.bf16.msrb.mxu2 %v4966_v26  ;;  %v6015_v26 = vld [vmem:[%s6475_s10 + $0x10c] sm:$0xf]  ;;  %v4667_v21 = vld [vmem:[%s6475_s10 + $0x84] sm:$0xf0]  ;;  %v6021_v22 = vld [vmem:[%s6475_s10 + $0x13c] sm:$0xf] }
  0x38   : > { %1131 = vmatpush.bf16.msrb.mxu3 %v4842_v25  ;;  %1220 = vmatpush.bf16.msrb.mxu0 %v4906_v30  ;;  %v4643_v25 = vld [vmem:[%s6475_s10 + $0x54] sm:$0xf0]  ;;  %v4763_v23 = vld [vmem:[%s6475_s10 + $0x144] sm:$0xf0]  ;;  %v6030_v32 = vld [vmem:[%s8721_s1 + $0x4] sm:$0xf] }
  0x39   : > { %1309 = vmatpush.bf16.msrb.mxu1 %v4970_v31  ;;  %v6678_v30 = vor.u32 %v5991_v24, %v4643_v25  ;;  %v6680_v31 = vor.u32 %v6015_v26, %v4739_v27  ;;  %v6766_v26 = vor.u32 %v5997_v20, %v4667_v21  ;;  %v6768_v27 = vor.u32 %v6021_v22, %v4763_v23  ;;  %v4799_v33 = vld [vmem:[%s8721_s1 + $0x8] sm:$0xf0]  ;;  %v4925_v34 = vld [vmem:[%s8721_s1 + $0x100] sm:$0xf]  ;;  %v6063_v36 = vld [vmem:[%s8721_s1 + $0x104] sm:$0xf0] }
  0x3a   : > { %v6046_v37 = vld [vmem:[%s8721_s1 + $0x84] sm:$0xf]  ;;  %v4863_v38 = vld [vmem:[%s8721_s1 + $0x88] sm:$0xf0]  ;;  %v4677_v48 = vld [vmem:[%s6475_s10 + $0x90] sm:$0xf] }
  0x3b   : > { %1043 = vmatpush.bf16.msrb.mxu2 %v4958_v51  ;;  %v6019_v51 = vld [vmem:[%s6475_s10 + $0x128] sm:$0xf0]  ;;  %v6001_v49 = vld [vmem:[%s6475_s10 + $0x98] sm:$0xf0]  ;;  %v6157_v7 = vld [vmem:[%s8721_s1 + $0x274] sm:$0xf0] }
  0x3c   : > { %1132 = vmatpush.bf16.msrb.mxu3 %v4834_v47  ;;  %1221 = vmatpush.bf16.msrb.mxu0 %v4898_v52  ;;  %v4946_v47 = vor.u32 %v6066_v45, %v4943_v46  ;;  %v5994_v52 = vld [vmem:[%s6475_s10 + $0x64] sm:$0xf]  ;;  %v6720_v57 = vor.u32 %v6019_v51, %v4749_v50  ;;  %v4927_v46 = vld [vmem:[%s8721_s1 + $0x108] sm:$0xf0]  ;;  %v4773_v50 = vld [vmem:[%s6475_s10 + $0x150] sm:$0xf]  ;;  %v6806_v60 = vor.u32 %v6001_v49, %v4677_v48 }
  0x3d   : > { %1310 = vmatpush.bf16.msrb.mxu1 %v4962_v55  ;;  %v4751_v55 = vld [vmem:[%s6475_s10 + $0x12c] sm:$0xf0]  ;;  %v6722_v58 = vor.u32 %v5994_v52, %v4655_v53  ;;  %v6062_v45 = vld [vmem:[%s8721_s1 + $0x104] sm:$0xf]  ;;  %v6025_v51 = vld [vmem:[%s6475_s10 + $0x158] sm:$0xf0] }
  0x3e   : > { %875 = vmatmul.bf16.gmra.mxu0 %v6586_v40  ;;  %915 = vmatmul.bf16.gmra.mxu2 %v6588_v41  ;;  %v6724_v59 = vor.u32 %v6018_v54, %v4751_v55  ;;  %v6000_v52 = vld [vmem:[%s6475_s10 + $0x94] sm:$0xf]  ;;  %v4679_v53 = vld [vmem:[%s6475_s10 + $0x9c] sm:$0xf0]  ;;  %v6808_v61 = vor.u32 %v6025_v51, %v4773_v50  ;;  %v5349_v10 = vld [vmem:[%s8721_s1 + $0x1f0] sm:$0xf] }
  0x3f   : > { %964 = vmatmul.bf16.gmra.mxu1 %v6590_v42  ;;  %1044 = vmatpush.bf16.msrb.mxu2 %v4950_v15  ;;  %v4938_v15 = vor.u32 %v6064_v13, %v4935_v14  ;;  %v6024_v54 = vld [vmem:[%s6475_s10 + $0x154] sm:$0xf]  ;;  %v4775_v55 = vld [vmem:[%s6475_s10 + $0x15c] sm:$0xf0]  ;;  %v5477_v14 = vld [vmem:[%s8721_s1 + $0x2f0] sm:$0xf] }
  0x40   : > { %1133 = vmatpush.bf16.msrb.mxu3 %v4826_v11  ;;  %1222 = vmatpush.bf16.msrb.mxu0 %v4890_v16  ;;  %v4934_v11 = vor.u32 %v6065_v6, %v4933_v62  ;;  %v4665_v16 = vld [vmem:[%s6475_s10 + $0x78] sm:$0xf]  ;;  %v6810_v62 = vor.u32 %v6000_v52, %v4679_v53  ;;  %v5413_v6 = vld [vmem:[%s8721_s1 + $0x270] sm:$0xf]  ;;  %v5351_v20 = vld [vmem:[%s8721_s1 + $0x1f8] sm:$0xf0] }
  0x41   : > { %1004 = vmatmul.bf16.gmra.mxu3 %v6592_v43  ;;  %1311 = vmatpush.bf16.msrb.mxu1 %v4954_v19  ;;  %v6022_v19 = vld [vmem:[%s6475_s10 + $0x140] sm:$0xf0]  ;;  %v6762_v24 = vor.u32 %v5998_v17, %v4665_v16  ;;  %v6140_v16 = vld [vmem:[%s8721_s1 + $0x1f4] sm:$0xf]  ;;  %v4689_v17 = vld [vmem:[%s6475_s10 + $0xa8] sm:$0xf] }
  0x42   : > { %v6764_v25 = vor.u32 %v6022_v19, %v4761_v18  ;;  %v6004_v18 = vld [vmem:[%s6475_s10 + $0xb0] sm:$0xf0]  ;;  %v4785_v21 = vld [vmem:[%s6475_s10 + $0x168] sm:$0xf]  ;;  %v6003_v23 = vld [vmem:[%s6475_s10 + $0xac] sm:$0xf] }
  0x43   : > { %1045 = vmatpush.bf16.msrb.mxu2 %v4942_v39  ;;  %v4926_v39 = vor.u32 %v6063_v36, %v4925_v34  ;;  %v6028_v22 = vld [vmem:[%s6475_s10 + $0x170] sm:$0xf0]  ;;  %v6027_v34 = vld [vmem:[%s6475_s10 + $0x16c] sm:$0xf]  ;;  %v6850_v36 = vor.u32 %v6004_v18, %v4689_v17  ;;  %v5405_v50 = vld [vmem:[%s8721_s1 + $0x260] sm:$0xf] }
  0x44   : > { %1134 = vmatpush.bf16.msrb.mxu3 %v4818_v35  ;;  %1223 = vmatpush.bf16.msrb.mxu0 %v4882_v44  ;;  %v4802_v35 = vor.u32 %v6030_v32, %v4799_v33  ;;  %v4866_v44 = vor.u32 %v6046_v37, %v4863_v38  ;;  %v5354_v32 = vor.u32 %v6140_v16, %v5351_v20  ;;  %v4691_v33 = vld [vmem:[%s6475_s10 + $0xb4] sm:$0xf0]  ;;  %v6155_v51 = vld [vmem:[%s8721_s1 + $0x264] sm:$0xf0]  ;;  %v5341_v52 = vld [vmem:[%s8721_s1 + $0x1e0] sm:$0xf] }
  0x45   : > { %1312 = vmatpush.bf16.msrb.mxu1 %v4946_v47  ;;  %v4930_v47 = vor.u32 %v6062_v45, %v4927_v46  ;;  %v6852_v37 = vor.u32 %v6028_v22, %v4785_v21  ;;  %v6854_v38 = vor.u32 %v6003_v23, %v4691_v33  ;;  %v5984_v45 = vld [vmem:[%s6475_s10 + $0x10] sm:$0xf0]  ;;  %v5406_v53 = vor.u32 %v6155_v51, %v5405_v50  ;;  %v5343_v16 = vld [vmem:[%s8721_s1 + $0x1e8] sm:$0xf0]  ;;  %v4625_v17 = vld [vmem:[%s6475_s10 + $0x20] sm:$0xf] }
  0x46   : > { %v5987_v18 = vld [vmem:[%s6475_s10 + $0x28] sm:$0xf0]  ;;  %v4637_v50 = vld [vmem:[%s6475_s10 + $0x38] sm:$0xf]  ;;  %v5990_v51 = vld [vmem:[%s6475_s10 + $0x40] sm:$0xf0] }
  0x47   : > { %1046 = vmatpush.bf16.msrb.mxu2 %v4934_v11  ;;  %v5414_v11 = vor.u32 %v6157_v7, %v5413_v6  ;;  %v4626_v22 = vor.u32 %v5987_v18, %v4625_v17 }
  0x48   : > { %1135 = vmatpush.bf16.msrb.mxu3 %v4810_v63  ;;  %1224 = vmatpush.bf16.msrb.mxu0 %v4874_v12  ;;  %v6812_v63 = vor.u32 %v6024_v54, %v4775_v55  ;;  %v6141_v12 = vld [vmem:[%s8721_s1 + $0x1f4] sm:$0xf0] }
  0x49   : > { %1313 = vmatpush.bf16.msrb.mxu1 %v4938_v15  ;;  %v5350_v13 = vor.u32 %v6141_v12, %v5349_v10  ;;  %v6173_v15 = vld [vmem:[%s8721_s1 + $0x2f4] sm:$0xf0]  ;;  %v5469_v12 = vld [vmem:[%s8721_s1 + $0x2e0] sm:$0xf] }
  0x4a   : > { %v5478_v19 = vor.u32 %v6173_v15, %v5477_v14  ;;  %v6138_v14 = vld [vmem:[%s8721_s1 + $0x1e4] sm:$0xf] }
  0x4b   : > { %1047 = vmatpush.bf16.msrb.mxu2 %v4926_v39 }
  0x4c   : > { %1136 = vmatpush.bf16.msrb.mxu3 %v4802_v35  ;;  %1225 = vmatpush.bf16.msrb.mxu0 %v4866_v44  ;;  %v4787_v35 = vld [vmem:[%s6475_s10 + $0x174] sm:$0xf0]  ;;  %v4613_v44 = vld [vmem:[%s6475_s10 + $0x8] sm:$0xf] }
  0x4d   : > { %1314 = vmatpush.bf16.msrb.mxu1 %v4930_v47  ;;  %v6856_v39 = vor.u32 %v6027_v34, %v4787_v35  ;;  %v4614_v46 = vor.u32 %v5984_v45, %v4613_v44 }
  0x4e   : > { %880 = vmatmul.bf16.gmra.mxu0 %v6630_v0  ;;  %920 = vmatmul.bf16.gmra.mxu2 %v6632_v1 }
  0x4f   : > { %969 = vmatmul.bf16.gmra.mxu1 %v6634_v2  ;;  %2070 = vmatpush.bf16.msra.mxu2 %v5350_v13  ;;  %v6171_v13 = vld [vmem:[%s8721_s1 + $0x2e4] sm:$0xf0] }
  0x50   : > { %2159 = vmatpush.bf16.msra.mxu3 %v5414_v11  ;;  %2248 = vmatpush.bf16.msra.mxu0 %v5478_v19  ;;  %v5470_v15 = vor.u32 %v6171_v13, %v5469_v12  ;;  %v5346_v19 = vor.u32 %v6138_v14, %v5343_v16 }
  0x51   : > { %1009 = vmatmul.bf16.gmra.mxu3 %v6636_v5  ;;  %2337 = vmatpush.bf16.msra.mxu1 %v5354_v32 }
  0x54   : > { %2160 = vmatpush.bf16.msra.mxu3 %v5406_v53  ;;  %2249 = vmatpush.bf16.msra.mxu0 %v5470_v15 }
  0x55   : > { %2338 = vmatpush.bf16.msra.mxu1 %v5346_v19  ;;  %v5461_v19 = vld [vmem:[%s8721_s1 + $0x2d0] sm:$0xf] }
  0x5e   : > { %885 = vmatmul.bf16.gmra.mxu0 %v6674_v28  ;;  %925 = vmatmul.bf16.gmra.mxu2 %v6676_v29 }
  0x5f   : > { %974 = vmatmul.bf16.gmra.mxu1 %v6678_v30 }
  0x61   : > { %1014 = vmatmul.bf16.gmra.mxu3 %v6680_v31 }
  0x6e   : > { %890 = vmatmul.bf16.gmra.mxu0 %v6718_v56  ;;  %930 = vmatmul.bf16.gmra.mxu2 %v6720_v57 }
  0x6f   : > { %979 = vmatmul.bf16.gmra.mxu1 %v6722_v58 }
  0x71   : > { %1019 = vmatmul.bf16.gmra.mxu3 %v6724_v59 }
  0x7e   : > { %895 = vmatmul.bf16.gmra.mxu0 %v6762_v24  ;;  %935 = vmatmul.bf16.gmra.mxu2 %v6764_v25 }
  0x7f   : > { %984 = vmatmul.bf16.gmra.mxu1 %v6766_v26 }
  0x81   : > { %1024 = vmatmul.bf16.gmra.mxu3 %v6768_v27 }
  0x8e   : > { %900 = vmatmul.bf16.gmra.mxu0 %v6806_v60  ;;  %940 = vmatmul.bf16.gmra.mxu2 %v6808_v61 }
  0x8f   : > { %989 = vmatmul.bf16.gmra.mxu1 %v6810_v62 }
  0x91   : > { %1029 = vmatmul.bf16.gmra.mxu3 %v6812_v63 }
  0x9e   : > { %905 = vmatmul.bf16.gmra.mxu0 %v6850_v36  ;;  %945 = vmatmul.bf16.gmra.mxu2 %v6852_v37 }
  0x9f   : > { %994 = vmatmul.bf16.gmra.mxu1 %v6854_v38 }
  0xa1   : > { %1034 = vmatmul.bf16.gmra.mxu3 %v6856_v39 }
  0xab   : > { %v871_v47 = vpop.f32.mrf.mxu0 }
  0xac   : > { %v960_v48 = vpop.f32.mrf.mxu1 }
  0xad   : > { %v6864_v49 = vadd.f32 %v960_v48, %v871_v47 }
  0xae   : > { %1048 = vmatmul.bf16.vlgmr.msrb.gmra.mxu2 %v4614_v46  ;;  %1226 = vmatmul.bf16.vlgmr.msrb.gmra.mxu0 %v6534_v8  ;;  %v6139_v8 = vld [vmem:[%s8721_s1 + $0x1e4] sm:$0xf0] }
  0xaf   : > { %1315 = vmatmul.bf16.vlgmr.msrb.gmra.mxu1 %v4614_v46  ;;  %v5342_v54 = vor.u32 %v6139_v8, %v5341_v52  ;;  %v4638_v8 = vor.u32 %v5990_v51, %v4637_v50 }
  0xb1   : > { %1137 = vmatmul.bf16.vlgmr.msrb.gmra.mxu3 %v6521_v3  ;;  %v911_v3 = vpop.f32.mrf.mxu2  ;;  %2071 = vmatpush.bf16.msra.mxu2 %v5342_v54 }
  0xb3   : > { %v873_v7 = vpop.f32.mrf.mxu0 }
  0xb4   : > { %v1000_v55 = vpop.f32.mrf.mxu3  ;;  %v962_v10 = vpop.f32.mrf.mxu1 }
  0xb5   : > { %v6880_v6 = vadd.f32 %v1000_v55, %v911_v3  ;;  %v6882_v11 = vadd.f32 %v962_v10, %v873_v7  ;;  %v6153_v7 = vld [vmem:[%s8721_s1 + $0x254] sm:$0xf0]  ;;  %v5333_v10 = vld [vmem:[%s8721_s1 + $0x1d0] sm:$0xf] }
  0xb9   : > { %v913_v20 = vpop.f32.mrf.mxu2 }
  0xbb   : > { %v876_v32 = vpop.f32.mrf.mxu0 }
  0xbc   : > { %v1002_v21 = vpop.f32.mrf.mxu3  ;;  %v965_v33 = vpop.f32.mrf.mxu1 }
  0xbd   : > { %v6898_v23 = vadd.f32 %v1002_v21, %v913_v20  ;;  %v6900_v34 = vadd.f32 %v965_v33, %v876_v32  ;;  %v6169_v20 = vld [vmem:[%s8721_s1 + $0x2d4] sm:$0xf0]  ;;  %v6136_v21 = vld [vmem:[%s8721_s1 + $0x1d4] sm:$0xf]  ;;  %v5335_v32 = vld [vmem:[%s8721_s1 + $0x1d8] sm:$0xf0] }
  0xbe   : > { %1053 = vmatmul.bf16.gmra.mxu2 %v4626_v22  ;;  %1231 = vmatmul.bf16.gmra.mxu0 %v6590_v42  ;;  %v4649_v33 = vld [vmem:[%s6475_s10 + $0x50] sm:$0xf] }
  0xbf   : > { %1320 = vmatmul.bf16.gmra.mxu1 %v4626_v22  ;;  %v5462_v22 = vor.u32 %v6169_v20, %v5461_v19 }
  0xc1   : > { %1142 = vmatmul.bf16.gmra.mxu3 %v6586_v40  ;;  %v916_v35 = vpop.f32.mrf.mxu2  ;;  %v5397_v40 = vld [vmem:[%s8721_s1 + $0x250] sm:$0xf]  ;;  %2250 = vmatpush.bf16.msra.mxu0 %v5462_v22  ;;  %v5325_v22 = vld [vmem:[%s8721_s1 + $0x1c0] sm:$0xf] }
  0xc2   : > { %v5398_v12 = vor.u32 %v6153_v7, %v5397_v40 }
  0xc3   : > { %v878_v46 = vpop.f32.mrf.mxu0 }
  0xc4   : > { %v1005_v44 = vpop.f32.mrf.mxu3  ;;  %v967_v47 = vpop.f32.mrf.mxu1  ;;  %2161 = vmatpush.bf16.msra.mxu3 %v5398_v12 }
  0xc5   : > { %v6904_v45 = vadd.f32 %v1005_v44, %v916_v35  ;;  %v6906_v48 = vadd.f32 %v967_v47, %v878_v46  ;;  %v5993_v35 = vld [vmem:[%s6475_s10 + $0x58] sm:$0xf0]  ;;  %v5338_v44 = vor.u32 %v6136_v21, %v5335_v32  ;;  %v6151_v21 = vld [vmem:[%s8721_s1 + $0x244] sm:$0xf0] }
  0xc6   : > { %v4650_v50 = vor.u32 %v5993_v35, %v4649_v33 }
  0xc7   : > { %2339 = vmatpush.bf16.msra.mxu1 %v5338_v44 }
  0xc9   : > { %v918_v52 = vpop.f32.mrf.mxu2 }
  0xcb   : > { %v881_v54 = vpop.f32.mrf.mxu0 }
  0xcc   : > { %v1007_v53 = vpop.f32.mrf.mxu3  ;;  %v970_v42 = vpop.f32.mrf.mxu1 }
  0xcd   : > { %v6910_v3 = vadd.f32 %v1007_v53, %v918_v52  ;;  %v6912_v55 = vadd.f32 %v970_v42, %v881_v54 }
  0xce   : > { %1058 = vmatmul.bf16.gmra.mxu2 %v4638_v8  ;;  %1236 = vmatmul.bf16.gmra.mxu0 %v6634_v2  ;;  %v6137_v2 = vld [vmem:[%s8721_s1 + $0x1d4] sm:$0xf0] }
  0xcf   : > { %1325 = vmatmul.bf16.gmra.mxu1 %v4638_v8  ;;  %v5334_v13 = vor.u32 %v6137_v2, %v5333_v10  ;;  %v4661_v2 = vld [vmem:[%s6475_s10 + $0x68] sm:$0xf] }
  0xd1   : > { %1147 = vmatmul.bf16.gmra.mxu3 %v6630_v0  ;;  %v921_v0 = vpop.f32.mrf.mxu2  ;;  %2072 = vmatpush.bf16.msra.mxu2 %v5334_v13 }
  0xd3   : > { %v883_v16 = vpop.f32.mrf.mxu0 }
  0xd4   : > { %v1010_v14 = vpop.f32.mrf.mxu3  ;;  %v972_v17 = vpop.f32.mrf.mxu1 }
  0xd5   : > { %v6928_v15 = vadd.f32 %v1010_v14, %v921_v0  ;;  %v6930_v18 = vadd.f32 %v972_v17, %v883_v16  ;;  %v5996_v0 = vld [vmem:[%s6475_s10 + $0x70] sm:$0xf0] }
  0xd6   : > { %v4662_v16 = vor.u32 %v5996_v0, %v4661_v2  ;;  %v5999_v2 = vld [vmem:[%s6475_s10 + $0x88] sm:$0xf0] }
  0xd9   : > { %v923_v46 = vpop.f32.mrf.mxu2 }
  0xdb   : > { %v886_v52 = vpop.f32.mrf.mxu0 }
  0xdc   : > { %v1012_v47 = vpop.f32.mrf.mxu3  ;;  %v975_v53 = vpop.f32.mrf.mxu1 }
  0xdd   : > { %v6946_v51 = vadd.f32 %v1012_v47, %v923_v46  ;;  %v6948_v8 = vadd.f32 %v975_v53, %v886_v52  ;;  %v5453_v52 = vld [vmem:[%s8721_s1 + $0x2c0] sm:$0xf]  ;;  %v6167_v53 = vld [vmem:[%s8721_s1 + $0x2c4] sm:$0xf0] }
  0xde   : > { %1063 = vmatmul.bf16.gmra.mxu2 %v4650_v50  ;;  %1241 = vmatmul.bf16.gmra.mxu0 %v6678_v30 }
  0xdf   : > { %1330 = vmatmul.bf16.gmra.mxu1 %v4650_v50 }
  0xe1   : > { %1152 = vmatmul.bf16.gmra.mxu3 %v6674_v28  ;;  %v926_v54 = vpop.f32.mrf.mxu2  ;;  %v5389_v28 = vld [vmem:[%s8721_s1 + $0x240] sm:$0xf] }
  0xe2   : > { %v5390_v32 = vor.u32 %v6151_v21, %v5389_v28 }
  0xe3   : > { %v888_v7 = vpop.f32.mrf.mxu0 }
  0xe4   : > { %v1015_v42 = vpop.f32.mrf.mxu3  ;;  %v977_v10 = vpop.f32.mrf.mxu1  ;;  %2162 = vmatpush.bf16.msra.mxu3 %v5390_v32 }
  0xe5   : > { %v6952_v40 = vadd.f32 %v1015_v42, %v926_v54  ;;  %v6954_v12 = vadd.f32 %v977_v10, %v888_v7  ;;  %v6134_v54 = vld [vmem:[%s8721_s1 + $0x1c4] sm:$0xf]  ;;  %v5454_v42 = vor.u32 %v6167_v53, %v5453_v52  ;;  %v5327_v7 = vld [vmem:[%s8721_s1 + $0x1c8] sm:$0xf0]  ;;  %v4673_v10 = vld [vmem:[%s6475_s10 + $0x80] sm:$0xf] }
  0xe6   : > { %v5330_v0 = vor.u32 %v6134_v54, %v5327_v7 }
  0xe7   : > { %2251 = vmatpush.bf16.msra.mxu0 %v5454_v42 }
  0xe8   : > { %2340 = vmatpush.bf16.msra.mxu1 %v5330_v0  ;;  %v5317_v0 = vld [vmem:[%s8721_s1 + $0x1b0] sm:$0xf] }
  0xe9   : > { %v928_v13 = vpop.f32.mrf.mxu2 }
  0xeb   : > { %v891_v19 = vpop.f32.mrf.mxu0 }
  0xec   : > { %v1017_v14 = vpop.f32.mrf.mxu3  ;;  %v980_v30 = vpop.f32.mrf.mxu1 }
  0xed   : > { %v6958_v17 = vadd.f32 %v1017_v14, %v928_v13  ;;  %v6960_v20 = vadd.f32 %v980_v30, %v891_v19 }
  0xee   : > { %1068 = vmatmul.bf16.gmra.mxu2 %v4662_v16  ;;  %1246 = vmatmul.bf16.gmra.mxu0 %v6722_v58  ;;  %v6135_v58 = vld [vmem:[%s8721_s1 + $0x1c4] sm:$0xf0] }
  0xef   : > { %1335 = vmatmul.bf16.gmra.mxu1 %v4662_v16  ;;  %v5326_v33 = vor.u32 %v6135_v58, %v5325_v22  ;;  %v4674_v16 = vor.u32 %v5999_v2, %v4673_v10  ;;  %v6149_v2 = vld [vmem:[%s8721_s1 + $0x234] sm:$0xf0] }
  0xf1   : > { %1157 = vmatmul.bf16.gmra.mxu3 %v6718_v56  ;;  %v931_v56 = vpop.f32.mrf.mxu2  ;;  %2073 = vmatpush.bf16.msra.mxu2 %v5326_v33 }
  0xf3   : > { %v893_v46 = vpop.f32.mrf.mxu0 }
  0xf4   : > { %v1020_v35 = vpop.f32.mrf.mxu3  ;;  %v982_v47 = vpop.f32.mrf.mxu1 }
  0xf5   : > { %v6976_v44 = vadd.f32 %v1020_v35, %v931_v56  ;;  %v6978_v50 = vadd.f32 %v982_v47, %v893_v46  ;;  %v4685_v46 = vld [vmem:[%s6475_s10 + $0x98] sm:$0xf]  ;;  %v6002_v47 = vld [vmem:[%s6475_s10 + $0xa0] sm:$0xf0] }
  0xf6   : > { %v4686_v54 = vor.u32 %v6002_v47, %v4685_v46  ;;  %v6132_v46 = vld [vmem:[%s8721_s1 + $0x1b4] sm:$0xf] }
  0xf9   : > { %v933_v13 = vpop.f32.mrf.mxu2 }
  0xfb   : > { %v896_v30 = vpop.f32.mrf.mxu0 }
  0xfc   : > { %v1022_v14 = vpop.f32.mrf.mxu3  ;;  %v985_v28 = vpop.f32.mrf.mxu1 }
  0xfd   : > { %v6994_v19 = vadd.f32 %v1022_v14, %v933_v13  ;;  %v6996_v21 = vadd.f32 %v985_v28, %v896_v30 }
  0xfe   : > { %1073 = vmatmul.bf16.gmra.mxu2 %v4674_v16  ;;  %1251 = vmatmul.bf16.gmra.mxu0 %v6766_v26 }
  0xff   : > { %1340 = vmatmul.bf16.gmra.mxu1 %v4674_v16 }
 0x101   : > { %1162 = vmatmul.bf16.gmra.mxu3 %v6762_v24  ;;  %v936_v22 = vpop.f32.mrf.mxu2  ;;  %v5381_v24 = vld [vmem:[%s8721_s1 + $0x230] sm:$0xf] }
 0x102   : > { %v5382_v13 = vor.u32 %v6149_v2, %v5381_v24 }
 0x103   : > { %v898_v56 = vpop.f32.mrf.mxu0 }
 0x104   : > { %v1025_v32 = vpop.f32.mrf.mxu3  ;;  %v987_v33 = vpop.f32.mrf.mxu1  ;;  %2163 = vmatpush.bf16.msra.mxu3 %v5382_v13 }
 0x105   : > { %v7000_v58 = vadd.f32 %v1025_v32, %v936_v22  ;;  %v7002_v35 = vadd.f32 %v987_v33, %v898_v56  ;;  %v5445_v56 = vld [vmem:[%s8721_s1 + $0x2b0] sm:$0xf]  ;;  %v6165_v33 = vld [vmem:[%s8721_s1 + $0x2b4] sm:$0xf0] }
 0x106   : > { %v5446_v47 = vor.u32 %v6165_v33, %v5445_v56 }
 0x108   : > { %2252 = vmatpush.bf16.msra.mxu0 %v5446_v47  ;;  %v6008_v47 = vld [vmem:[%s6475_s10 + $0xd0] sm:$0xf0] }
 0x109   : > { %v938_v52 = vpop.f32.mrf.mxu2 }
 0x10b   : > { %v901_v7 = vpop.f32.mrf.mxu0 }
 0x10c   : > { %v1027_v53 = vpop.f32.mrf.mxu3  ;;  %v990_v26 = vpop.f32.mrf.mxu1 }
 0x10d   : > { %v7006_v42 = vadd.f32 %v1027_v53, %v938_v52  ;;  %v7008_v10 = vadd.f32 %v990_v26, %v901_v7  ;;  %v5319_v52 = vld [vmem:[%s8721_s1 + $0x1b8] sm:$0xf0]  ;;  %v4697_v53 = vld [vmem:[%s6475_s10 + $0xb0] sm:$0xf] }
 0x10e   : > { %1078 = vmatmul.bf16.gmra.mxu2 %v4686_v54  ;;  %1256 = vmatmul.bf16.gmra.mxu0 %v6810_v62  ;;  %v6133_v62 = vld [vmem:[%s8721_s1 + $0x1b4] sm:$0xf0]  ;;  %v5322_v7 = vor.u32 %v6132_v46, %v5319_v52  ;;  %v4709_v46 = vld [vmem:[%s6475_s10 + $0xc8] sm:$0xf] }
 0x10f   : > { %1345 = vmatmul.bf16.gmra.mxu1 %v4686_v54  ;;  %v5318_v14 = vor.u32 %v6133_v62, %v5317_v0  ;;  %v6005_v54 = vld [vmem:[%s6475_s10 + $0xb8] sm:$0xf0] }
 0x110   : > { %2341 = vmatpush.bf16.msra.mxu1 %v5322_v7  ;;  %v4698_v2 = vor.u32 %v6005_v54, %v4697_v53  ;;  %v4710_v54 = vor.u32 %v6008_v47, %v4709_v46 }
 0x111   : > { %1167 = vmatmul.bf16.gmra.mxu3 %v6806_v60  ;;  %v941_v60 = vpop.f32.mrf.mxu2  ;;  %2074 = vmatpush.bf16.msra.mxu2 %v5318_v14 }
 0x113   : > { %v903_v28 = vpop.f32.mrf.mxu0 }
 0x114   : > { %v1030_v16 = vpop.f32.mrf.mxu3  ;;  %v992_v22 = vpop.f32.mrf.mxu1 }
 0x115   : > { %v7024_v30 = vadd.f32 %v1030_v16, %v941_v60  ;;  %v7026_v32 = vadd.f32 %v992_v22, %v903_v28 }
 0x119   : > { %v943_v26 = vpop.f32.mrf.mxu2 }
 0x11b   : > { %v906_v13 = vpop.f32.mrf.mxu0 }
 0x11c   : > { %v1032_v24 = vpop.f32.mrf.mxu3  ;;  %v995_v62 = vpop.f32.mrf.mxu1 }
 0x11d   : > { %v7042_v0 = vadd.f32 %v1032_v24, %v943_v26  ;;  %v7044_v60 = vadd.f32 %v995_v62, %v906_v13  ;;  %v6147_v24 = vld [vmem:[%s8721_s1 + $0x224] sm:$0xf0] }
 0x11e   : > { %1083 = vmatmul.bf16.gmra.mxu2 %v4698_v2  ;;  %1261 = vmatmul.bf16.gmra.mxu0 %v6854_v38 }
 0x11f   : > { %1350 = vmatmul.bf16.gmra.mxu1 %v4698_v2  ;;  %v5309_v2 = vld [vmem:[%s8721_s1 + $0x1a0] sm:$0xf] }
 0x121   : > { %1172 = vmatmul.bf16.gmra.mxu3 %v6850_v36  ;;  %v946_v14 = vpop.f32.mrf.mxu2  ;;  %v5373_v36 = vld [vmem:[%s8721_s1 + $0x220] sm:$0xf] }
 0x122   : > { %v5374_v13 = vor.u32 %v6147_v24, %v5373_v36  ;;  %v4721_v36 = vld [vmem:[%s6475_s10 + $0xe0] sm:$0xf] }
 0x123   : > { %v908_v22 = vpop.f32.mrf.mxu0 }
 0x124   : > { %v1035_v16 = vpop.f32.mrf.mxu3  ;;  %v997_v56 = vpop.f32.mrf.mxu1  ;;  %2164 = vmatpush.bf16.msra.mxu3 %v5374_v13 }
 0x125   : > { %v7048_v28 = vadd.f32 %v1035_v16, %v946_v14  ;;  %v7050_v33 = vadd.f32 %v997_v56, %v908_v22 }
 0x129   : > { %v948_v52 = vpop.f32.mrf.mxu2 }
 0x12b   : > { %v1227_v26 = vpop.f32.mrf.mxu0 }
 0x12c   : > { %v1037_v53 = vpop.f32.mrf.mxu3  ;;  %v1316_v38 = vpop.f32.mrf.mxu1 }
 0x12d   : > { %v7054_v7 = vadd.f32 %v1037_v53, %v948_v52  ;;  %v5437_v52 = vld [vmem:[%s8721_s1 + $0x2a0] sm:$0xf]  ;;  %v6163_v53 = vld [vmem:[%s8721_s1 + $0x2a4] sm:$0xf0] }
 0x12e   : > { %1088 = vmatmul.bf16.gmra.mxu2 %v4710_v54  ;;  %1266 = vmatmul.bf16.gmra.mxu0 %v6536_v9  ;;  %v6131_v9 = vld [vmem:[%s8721_s1 + $0x1a4] sm:$0xf0] }
 0x12f   : > { %1355 = vmatmul.bf16.gmra.mxu1 %v4710_v54  ;;  %v5310_v62 = vor.u32 %v6131_v9, %v5309_v2  ;;  %v5438_v54 = vor.u32 %v6163_v53, %v5437_v52 }
 0x131   : > { %1177 = vmatmul.bf16.gmra.mxu3 %v6523_v4  ;;  %v1049_v4 = vpop.f32.mrf.mxu2  ;;  %2075 = vmatpush.bf16.msra.mxu2 %v5310_v62 }
 0x132   : > { %v7071_v14 = vadd.f32 %v1049_v4, %v6864_v49  ;;  %v6130_v49 = vld [vmem:[%s8721_s1 + $0x1a4] sm:$0xf]  ;;  %2253 = vmatpush.bf16.msra.mxu0 %v5438_v54 }
 0x133   : > { %v1229_v56 = vpop.f32.mrf.mxu0 }
 0x134   : > { %v1138_v16 = vpop.f32.mrf.mxu3  ;;  %v1318_v46 = vpop.f32.mrf.mxu1 }
 0x135   : > { %v1228_v22 = vadd.f32 %v1227_v26, %v1138_v16  ;;  %v5311_v26 = vld [vmem:[%s8721_s1 + $0x1a8] sm:$0xf0] }
 0x136   : > { %v5314_v24 = vor.u32 %v6130_v49, %v5311_v26 }
 0x137   : > { %v7073_v47 = vadd.f32 %v1316_v38, %v1228_v22  ;;  %v6011_v38 = vld [vmem:[%s6475_s10 + $0xe8] sm:$0xf0] }
 0x138   : > { %2342 = vmatpush.bf16.msra.mxu1 %v5314_v24  ;;  %v4722_v4 = vor.u32 %v6011_v38, %v4721_v36  ;;  %v4733_v38 = vld [vmem:[%s6475_s10 + $0xf8] sm:$0xf]  ;;  %v6014_v24 = vld [vmem:[%s6475_s10 + $0x100] sm:$0xf0] }
 0x139   : > { %8740 = vst [vmem:[#allocation3_spill] sm:$0xff] %v7073_v47  ;;  %v1051_v2 = vpop.f32.mrf.mxu2 }
 0x13a   : > { %v7090_v13 = vadd.f32 %v1051_v2, %v6882_v11 }
 0x13b   : > { %v1232_v16 = vpop.f32.mrf.mxu0 }
 0x13c   : > { %v1140_v9 = vpop.f32.mrf.mxu3  ;;  %v1321_v22 = vpop.f32.mrf.mxu1 }
 0x13d   : > { %v1230_v62 = vadd.f32 %v1229_v56, %v1140_v9  ;;  %v4734_v9 = vor.u32 %v6014_v24, %v4733_v38 }
 0x13e   : > { %1093 = vmatmul.bf16.gmra.mxu2 %v4722_v4  ;;  %1271 = vmatmul.bf16.gmra.mxu0 %v6592_v43 }
 0x13f   : > { %v7092_v52 = vadd.f32 %v1318_v46, %v1230_v62  ;;  %1360 = vmatmul.bf16.gmra.mxu1 %v4722_v4 }
 0x141   : > { %8741 = vst [vmem:[#allocation4_spill] sm:$0xff] %v7092_v52  ;;  %1182 = vmatmul.bf16.gmra.mxu3 %v6588_v41  ;;  %v1054_v53 = vpop.f32.mrf.mxu2 }
 0x142   : > { %v7097_v49 = vadd.f32 %v1054_v53, %v6900_v34  ;;  %v5365_v34 = vld [vmem:[%s8721_s1 + $0x210] sm:$0xf] }
 0x143   : > { %v1234_v26 = vpop.f32.mrf.mxu0 }
 0x144   : > { %v1143_v11 = vpop.f32.mrf.mxu3  ;;  %v1323_v36 = vpop.f32.mrf.mxu1 }
 0x145   : > { %v1233_v54 = vadd.f32 %v1232_v16, %v1143_v11  ;;  %v5301_v16 = vld [vmem:[%s8721_s1 + $0x190] sm:$0xf] }
 0x147   : > { %v7099_v56 = vadd.f32 %v1321_v22, %v1233_v54 }
 0x149   : > { %8742 = vst [vmem:[#allocation5_spill] sm:$0xff] %v7099_v56  ;;  %v1056_v46 = vpop.f32.mrf.mxu2 }
 0x14a   : > { %v7104_v2 = vadd.f32 %v1056_v46, %v6906_v48  ;;  %v6145_v48 = vld [vmem:[%s8721_s1 + $0x214] sm:$0xf0]  ;;  %v5429_v46 = vld [vmem:[%s8721_s1 + $0x290] sm:$0xf] }
 0x14b   : > { %v1237_v4 = vpop.f32.mrf.mxu0  ;;  %v5366_v22 = vor.u32 %v6145_v48, %v5365_v34 }
 0x14c   : > { %v1145_v43 = vpop.f32.mrf.mxu3  ;;  %v1326_v62 = vpop.f32.mrf.mxu1 }
 0x14d   : > { %v1235_v41 = vadd.f32 %v1234_v26, %v1145_v43  ;;  %2165 = vmatpush.bf16.msra.mxu3 %v5366_v22  ;;  %v6161_v43 = vld [vmem:[%s8721_s1 + $0x294] sm:$0xf0] }
 0x14e   : > { %1098 = vmatmul.bf16.gmra.mxu2 %v4734_v9  ;;  %1276 = vmatmul.bf16.gmra.mxu0 %v6636_v5  ;;  %v6129_v5 = vld [vmem:[%s8721_s1 + $0x194] sm:$0xf0] }
 0x14f   : > { %v7106_v52 = vadd.f32 %v1323_v36, %v1235_v41  ;;  %1365 = vmatmul.bf16.gmra.mxu1 %v4734_v9  ;;  %v5302_v53 = vor.u32 %v6129_v5, %v5301_v16  ;;  %v5430_v9 = vor.u32 %v6161_v43, %v5429_v46  ;;  %v5303_v41 = vld [vmem:[%s8721_s1 + $0x198] sm:$0xf0] }
 0x151   : > { %8743 = vst [vmem:[#allocation6_spill] sm:$0xff] %v7106_v52  ;;  %1187 = vmatmul.bf16.gmra.mxu3 %v6632_v1  ;;  %v1059_v1 = vpop.f32.mrf.mxu2  ;;  %2076 = vmatpush.bf16.msra.mxu2 %v5302_v53 }
 0x152   : > { %v7123_v11 = vadd.f32 %v1059_v1, %v6912_v55  ;;  %v6128_v55 = vld [vmem:[%s8721_s1 + $0x194] sm:$0xf]  ;;  %2254 = vmatpush.bf16.msra.mxu0 %v5430_v9 }
 0x153   : > { %v1239_v36 = vpop.f32.mrf.mxu0  ;;  %v5306_v34 = vor.u32 %v6128_v55, %v5303_v41 }
 0x154   : > { %v1148_v54 = vpop.f32.mrf.mxu3  ;;  %v1328_v38 = vpop.f32.mrf.mxu1 }
 0x155   : > { %v1238_v26 = vadd.f32 %v1237_v4, %v1148_v54  ;;  %v4745_v4 = vld [vmem:[%s6475_s10 + $0x110] sm:$0xf]  ;;  %2343 = vmatpush.bf16.msra.mxu1 %v5306_v34 }
 0x157   : > { %v7125_v24 = vadd.f32 %v1326_v62, %v1238_v26  ;;  %v6017_v62 = vld [vmem:[%s6475_s10 + $0x118] sm:$0xf0] }
 0x158   : > { %v4746_v5 = vor.u32 %v6017_v62, %v4745_v4  ;;  %v4757_v4 = vld [vmem:[%s6475_s10 + $0x128] sm:$0xf]  ;;  %v6020_v62 = vld [vmem:[%s6475_s10 + $0x130] sm:$0xf0] }
 0x159   : > { %8744 = vst [vmem:[#allocation7_spill] sm:$0xff] %v7125_v24  ;;  %v1061_v48 = vpop.f32.mrf.mxu2 }
 0x15a   : > { %v7142_v16 = vadd.f32 %v1061_v48, %v6930_v18  ;;  %v4758_v48 = vor.u32 %v6020_v62, %v4757_v4 }
 0x15b   : > { %v1242_v53 = vpop.f32.mrf.mxu0 }
 0x15c   : > { %v1150_v22 = vpop.f32.mrf.mxu3  ;;  %v1331_v54 = vpop.f32.mrf.mxu1 }
 0x15d   : > { %v1240_v1 = vadd.f32 %v1239_v36, %v1150_v22 }
 0x15e   : > { %1103 = vmatmul.bf16.gmra.mxu2 %v4746_v5  ;;  %1281 = vmatmul.bf16.gmra.mxu0 %v6680_v31 }
 0x15f   : > { %v7144_v26 = vadd.f32 %v1328_v38, %v1240_v1  ;;  %1370 = vmatmul.bf16.gmra.mxu1 %v4746_v5 }
 0x161   : > { %8745 = vst [vmem:[#allocation8_spill] sm:$0xff] %v7144_v26  ;;  %1192 = vmatmul.bf16.gmra.mxu3 %v6676_v29  ;;  %v1064_v46 = vpop.f32.mrf.mxu2 }
 0x162   : > { %v7149_v43 = vadd.f32 %v1064_v46, %v6948_v8  ;;  %v5357_v8 = vld [vmem:[%s8721_s1 + $0x200] sm:$0xf] }
 0x163   : > { %v1244_v9 = vpop.f32.mrf.mxu0 }
 0x164   : > { %v1153_v18 = vpop.f32.mrf.mxu3  ;;  %v1333_v41 = vpop.f32.mrf.mxu1 }
 0x165   : > { %v1243_v55 = vadd.f32 %v1242_v53, %v1153_v18  ;;  %v5293_v53 = vld [vmem:[%s8721_s1 + $0x180] sm:$0xf] }
 0x167   : > { %v7151_v36 = vadd.f32 %v1331_v54, %v1243_v55 }
 0x169   : > { %8746 = vst [vmem:[#allocation9_spill] sm:$0xff] %v7151_v36  ;;  %v1066_v38 = vpop.f32.mrf.mxu2 }
 0x16a   : > { %v7156_v34 = vadd.f32 %v1066_v38, %v6954_v12  ;;  %v6143_v12 = vld [vmem:[%s8721_s1 + $0x204] sm:$0xf0]  ;;  %v5421_v38 = vld [vmem:[%s8721_s1 + $0x280] sm:$0xf] }
 0x16b   : > { %v1247_v22 = vpop.f32.mrf.mxu0  ;;  %v5358_v54 = vor.u32 %v6143_v12, %v5357_v8 }
 0x16c   : > { %v1155_v31 = vpop.f32.mrf.mxu3  ;;  %v1336_v5 = vpop.f32.mrf.mxu1 }
 0x16d   : > { %v1245_v29 = vadd.f32 %v1244_v9, %v1155_v31  ;;  %2166 = vmatpush.bf16.msra.mxu3 %v5358_v54  ;;  %v6159_v31 = vld [vmem:[%s8721_s1 + $0x284] sm:$0xf0] }
 0x16e   : > { %1108 = vmatmul.bf16.gmra.mxu2 %v4758_v48  ;;  %1286 = vmatmul.bf16.gmra.mxu0 %v6724_v59  ;;  %v6127_v59 = vld [vmem:[%s8721_s1 + $0x184] sm:$0xf0] }
 0x16f   : > { %v7158_v1 = vadd.f32 %v1333_v41, %v1245_v29  ;;  %1375 = vmatmul.bf16.gmra.mxu1 %v4758_v48  ;;  %v5294_v46 = vor.u32 %v6127_v59, %v5293_v53  ;;  %v5422_v48 = vor.u32 %v6159_v31, %v5421_v38  ;;  %v5295_v29 = vld [vmem:[%s8721_s1 + $0x188] sm:$0xf0] }
 0x171   : > { %8747 = vst [vmem:[#allocation10_spill] sm:$0xff] %v7158_v1  ;;  %1197 = vmatmul.bf16.gmra.mxu3 %v6720_v57  ;;  %v1069_v57 = vpop.f32.mrf.mxu2  ;;  %2077 = vmatpush.bf16.msra.mxu2 %v5294_v46 }
 0x172   : > { %v7175_v18 = vadd.f32 %v1069_v57, %v6960_v20  ;;  %v6126_v20 = vld [vmem:[%s8721_s1 + $0x184] sm:$0xf]  ;;  %2255 = vmatpush.bf16.msra.mxu0 %v5422_v48 }
 0x173   : > { %v1249_v41 = vpop.f32.mrf.mxu0  ;;  %v5298_v8 = vor.u32 %v6126_v20, %v5295_v29 }
 0x174   : > { %v1158_v55 = vpop.f32.mrf.mxu3  ;;  %v1338_v4 = vpop.f32.mrf.mxu1 }
 0x175   : > { %v1248_v9 = vadd.f32 %v1247_v22, %v1158_v55  ;;  %v4769_v22 = vld [vmem:[%s6475_s10 + $0x140] sm:$0xf]  ;;  %2344 = vmatpush.bf16.msra.mxu1 %v5298_v8 }
 0x177   : > { %v7177_v62 = vadd.f32 %v1336_v5, %v1248_v9  ;;  %v6023_v5 = vld [vmem:[%s6475_s10 + $0x148] sm:$0xf0] }
 0x178   : > { %v4770_v59 = vor.u32 %v6023_v5, %v4769_v22  ;;  %v4781_v22 = vld [vmem:[%s6475_s10 + $0x158] sm:$0xf]  ;;  %v6026_v5 = vld [vmem:[%s6475_s10 + $0x160] sm:$0xf0] }
 0x179   : > { %8748 = vst [vmem:[#allocation11_spill] sm:$0xff] %v7177_v62  ;;  %v1071_v12 = vpop.f32.mrf.mxu2 }
 0x17a   : > { %v7194_v53 = vadd.f32 %v1071_v12, %v6978_v50  ;;  %v4782_v12 = vor.u32 %v6026_v5, %v4781_v22 }
 0x17b   : > { %v1252_v46 = vpop.f32.mrf.mxu0 }
 0x17c   : > { %v1160_v54 = vpop.f32.mrf.mxu3  ;;  %v1341_v55 = vpop.f32.mrf.mxu1 }
 0x17d   : > { %v1250_v57 = vadd.f32 %v1249_v41, %v1160_v54 }
 0x17e   : > { %1113 = vmatmul.bf16.gmra.mxu2 %v4770_v59  ;;  %1291 = vmatmul.bf16.gmra.mxu0 %v6768_v27 }
 0x17f   : > { %v7196_v9 = vadd.f32 %v1338_v4, %v1250_v57  ;;  %1380 = vmatmul.bf16.gmra.mxu1 %v4770_v59 }
 0x181   : > { %8749 = vst [vmem:[#allocation12_spill] sm:$0xff] %v7196_v9  ;;  %1202 = vmatmul.bf16.gmra.mxu3 %v6764_v25  ;;  %v1074_v38 = vpop.f32.mrf.mxu2 }
 0x182   : > { %v7201_v31 = vadd.f32 %v1074_v38, %v6996_v21  ;;  %v6172_v21 = vld [vmem:[%s8721_s1 + $0x2f4] sm:$0xf] }
 0x183   : > { %v1254_v48 = vpop.f32.mrf.mxu0 }
 0x184   : > { %v1163_v50 = vpop.f32.mrf.mxu3  ;;  %v1343_v29 = vpop.f32.mrf.mxu1 }
 0x185   : > { %v1253_v20 = vadd.f32 %v1252_v46, %v1163_v50  ;;  %v6156_v46 = vld [vmem:[%s8721_s1 + $0x274] sm:$0xf] }
 0x187   : > { %v7203_v41 = vadd.f32 %v1341_v55, %v1253_v20 }
 0x189   : > { %8750 = vst [vmem:[#allocation13_spill] sm:$0xff] %v7203_v41  ;;  %v1076_v4 = vpop.f32.mrf.mxu2 }
 0x18a   : > { %v7208_v8 = vadd.f32 %v1076_v4, %v7002_v35  ;;  %v5479_v35 = vld [vmem:[%s8721_s1 + $0x2f8] sm:$0xf0]  ;;  %v5845_v4 = vld [vmem:[%s8721_s1 + $0x370] sm:$0xf] }
 0x18b   : > { %v1257_v54 = vpop.f32.mrf.mxu0  ;;  %v5482_v55 = vor.u32 %v6172_v21, %v5479_v35 }
 0x18c   : > { %v1165_v27 = vpop.f32.mrf.mxu3  ;;  %v1346_v59 = vpop.f32.mrf.mxu1 }
 0x18d   : > { %v1255_v25 = vadd.f32 %v1254_v48, %v1165_v27  ;;  %2515 = vmatpush.bf16.msrb.mxu3 %v5482_v55  ;;  %v6237_v27 = vld [vmem:[%s8721_s1 + $0x374] sm:$0xf0] }
 0x18e   : > { %1118 = vmatmul.bf16.gmra.mxu2 %v4782_v12  ;;  %1296 = vmatmul.bf16.gmra.mxu0 %v6812_v63  ;;  %v5415_v63 = vld [vmem:[%s8721_s1 + $0x278] sm:$0xf0] }
 0x18f   : > { %v7210_v57 = vadd.f32 %v1343_v29, %v1255_v25  ;;  %1385 = vmatmul.bf16.gmra.mxu1 %v4782_v12  ;;  %v5418_v38 = vor.u32 %v6156_v46, %v5415_v63  ;;  %v5846_v12 = vor.u32 %v6237_v27, %v5845_v4  ;;  %v6253_v25 = vld [vmem:[%s8721_s1 + $0x3f4] sm:$0xf0] }
 0x191   : > { %8751 = vst [vmem:[#allocation14_spill] sm:$0xff] %v7210_v57  ;;  %1207 = vmatmul.bf16.gmra.mxu3 %v6808_v61  ;;  %v1079_v61 = vpop.f32.mrf.mxu2  ;;  %2426 = vmatpush.bf16.msrb.mxu2 %v5418_v38 }
 0x192   : > { %v7227_v50 = vadd.f32 %v1079_v61, %v7008_v10  ;;  %v5909_v10 = vld [vmem:[%s8721_s1 + $0x3f0] sm:$0xf]  ;;  %3406 = vmatpush.bf16.msrb.mxu0 %v5846_v12 }
 0x193   : > { %v1259_v29 = vpop.f32.mrf.mxu0  ;;  %v5910_v21 = vor.u32 %v6253_v25, %v5909_v10 }
 0x194   : > { %v1168_v20 = vpop.f32.mrf.mxu3  ;;  %v1348_v22 = vpop.f32.mrf.mxu1 }
 0x195   : > { %v1258_v48 = vadd.f32 %v1257_v54, %v1168_v20  ;;  %v4793_v54 = vld [vmem:[%s6475_s10 + $0x170] sm:$0xf]  ;;  %3495 = vmatpush.bf16.msrb.mxu1 %v5910_v21  ;;  %v6080_v21 = vld [vmem:[%s6475_s10 + $0x28] sm:$0xf0] }
 0x197   : > { %v7229_v5 = vadd.f32 %v1346_v59, %v1258_v48  ;;  %v6029_v59 = vld [vmem:[%s6475_s10 + $0x178] sm:$0xf0] }
 0x198   : > { %v4794_v63 = vor.u32 %v6029_v59, %v4793_v54  ;;  %v6079_v54 = vld [vmem:[%s6475_s10 + $0x20] sm:$0xf0]  ;;  %v5109_v59 = vld [vmem:[%s6475_s10 + $0x20] sm:$0xf] }
 0x199   : > { %8752 = vst [vmem:[#allocation15_spill] sm:$0xff] %v7229_v5  ;;  %v1081_v35 = vpop.f32.mrf.mxu2 }
 0x19a   : > { %v7246_v46 = vadd.f32 %v1081_v35, %v7026_v32  ;;  %v6078_v35 = vld [vmem:[%s6475_s10 + $0x1c] sm:$0xf] }
 0x19b   : > { %v1262_v38 = vpop.f32.mrf.mxu0 }
 0x19c   : > { %v1170_v55 = vpop.f32.mrf.mxu3  ;;  %v1351_v20 = vpop.f32.mrf.mxu1 }
 0x19d   : > { %v1260_v61 = vadd.f32 %v1259_v29, %v1170_v55  ;;  %v5103_v55 = vld [vmem:[%s6475_s10 + $0x24] sm:$0xf0] }
 0x19e   : > { %1123 = vmatmul.bf16.gmra.mxu2 %v4794_v63  ;;  %1301 = vmatmul.bf16.gmra.mxu0 %v6856_v39 }
 0x19f   : > { %v7248_v48 = vadd.f32 %v1348_v22, %v1260_v61  ;;  %1390 = vmatmul.bf16.gmra.mxu1 %v4794_v63  ;;  %v5101_v22 = vld [vmem:[%s6475_s10 + $0x18] sm:$0xf] }
 0x1a0   : > { %v5102_v61 = vor.u32 %v6079_v54, %v5101_v22  ;;  %v6154_v22 = vld [vmem:[%s8721_s1 + $0x264] sm:$0xf]  ;;  %v5407_v54 = vld [vmem:[%s8721_s1 + $0x268] sm:$0xf0] }
 0x1a1   : > { %8753 = vst [vmem:[#allocation16_spill] sm:$0xff] %v7248_v48  ;;  %1212 = vmatmul.bf16.gmra.mxu3 %v6852_v37  ;;  %v1084_v32 = vpop.f32.mrf.mxu2 }
 0x1a2   : > { %v7253_v4 = vadd.f32 %v1084_v32, %v7044_v60  ;;  %v7266_v60 = vor.u32 %v6080_v21, %v5109_v59  ;;  %v5410_v21 = vor.u32 %v6154_v22, %v5407_v54  ;;  %v5113_v22 = vld [vmem:[%s6475_s10 + $0x30] sm:$0xf]  ;;  %v5121_v54 = vld [vmem:[%s6475_s10 + $0x38] sm:$0xf] }
 0x1a3   : > { %v1264_v10 = vpop.f32.mrf.mxu0 }
 0x1a4   : > { %v1173_v29 = vpop.f32.mrf.mxu3  ;;  %v1353_v12 = vpop.f32.mrf.mxu1  ;;  %2427 = vmatpush.bf16.msrb.mxu2 %v5410_v21 }
 0x1a5   : > { %v1263_v27 = vadd.f32 %v1262_v38, %v1173_v29  ;;  %v7268_v29 = vor.u32 %v6078_v35, %v5103_v55 }
 0x1a7   : > { %v7255_v25 = vadd.f32 %v1351_v20, %v1263_v27 }
 0x1a9   : > { %8754 = vst [vmem:[#allocation17_spill] sm:$0xff] %v7255_v25  ;;  %v1086_v39 = vpop.f32.mrf.mxu2 }
 0x1aa   : > { %v7264_v37 = vadd.f32 %v1086_v39, %v7050_v33  ;;  %v6170_v33 = vld [vmem:[%s8721_s1 + $0x2e4] sm:$0xf] }
 0x1ab   : > { %v1267_v38 = vpop.f32.mrf.mxu0 }
 0x1ac   : > { %v1175_v63 = vpop.f32.mrf.mxu3  ;;  %v1356_v20 = vpop.f32.mrf.mxu1 }
 0x1ad   : > { %v1265_v32 = vadd.f32 %v1264_v10, %v1175_v63  ;;  %v5471_v10 = vld [vmem:[%s8721_s1 + $0x2e8] sm:$0xf0] }
 0x1ae   : > { %2078 = vmatmul.bf16.vlgmr.msra.gmra.mxu2 %v5102_v61  ;;  %2256 = vmatmul.bf16.vlgmr.msra.gmra.mxu0 %v7266_v60 }
 0x1af   : > { %v7270_v27 = vadd.f32 %v1353_v12, %v1265_v32  ;;  %2345 = vmatmul.bf16.vlgmr.msra.gmra.mxu1 %v5102_v61  ;;  %v5474_v12 = vor.u32 %v6170_v33, %v5471_v10  ;;  %v5837_v33 = vld [vmem:[%s8721_s1 + $0x360] sm:$0xf] }
 0x1b0   : > { %v5901_v10 = vld [vmem:[%s8721_s1 + $0x3e0] sm:$0xf] }
 0x1b1   : > { %8755 = vst [vmem:[#allocation18_spill] sm:$0xff] %v7270_v27  ;;  %2167 = vmatmul.bf16.vlgmr.msra.gmra.mxu3 %v7268_v29  ;;  %v1089_v59 = vpop.f32.mrf.mxu2 }
 0x1b2   : > { %v7287_v35 = vadd.f32 %v1089_v59, %v6880_v6  ;;  %2516 = vmatpush.bf16.msrb.mxu3 %v5474_v12  ;;  %v6235_v6 = vld [vmem:[%s8721_s1 + $0x364] sm:$0xf0]  ;;  %v6083_v59 = vld [vmem:[%s6475_s10 + $0x40] sm:$0xf0] }
 0x1b3   : > { %v1269_v63 = vpop.f32.mrf.mxu0  ;;  %v6251_v12 = vld [vmem:[%s8721_s1 + $0x3e4] sm:$0xf0]  ;;  %v7312_v5 = vor.u32 %v6083_v59, %v5121_v54  ;;  %v6085_v54 = vld [vmem:[%s6475_s10 + $0x50] sm:$0xf0]  ;;  %v5133_v59 = vld [vmem:[%s6475_s10 + $0x50] sm:$0xf] }
 0x1b4   : > { %v1178_v55 = vpop.f32.mrf.mxu3  ;;  %v1358_v61 = vpop.f32.mrf.mxu1  ;;  %v5902_v21 = vor.u32 %v6251_v12, %v5901_v10 }
 0x1b5   : > { %v1268_v39 = vadd.f32 %v1267_v38, %v1178_v55  ;;  %v5838_v38 = vor.u32 %v6235_v6, %v5837_v33  ;;  %v6081_v55 = vld [vmem:[%s6475_s10 + $0x34] sm:$0xf] }
 0x1b6   : > { %3496 = vmatpush.bf16.msrb.mxu1 %v5902_v21  ;;  %v6086_v21 = vld [vmem:[%s6475_s10 + $0x58] sm:$0xf0] }
 0x1b7   : > { %v7289_v32 = vadd.f32 %v1356_v20, %v1268_v39  ;;  %v6082_v20 = vld [vmem:[%s6475_s10 + $0x38] sm:$0xf0]  ;;  %v5115_v39 = vld [vmem:[%s6475_s10 + $0x3c] sm:$0xf0]  ;;  %3407 = vmatpush.bf16.msrb.mxu0 %v5838_v38 }
 0x1b8   : > { %v5114_v48 = vor.u32 %v6082_v20, %v5113_v22  ;;  %v7314_v57 = vor.u32 %v6081_v55, %v5115_v39  ;;  %v6084_v55 = vld [vmem:[%s6475_s10 + $0x4c] sm:$0xf]  ;;  %v5127_v39 = vld [vmem:[%s6475_s10 + $0x54] sm:$0xf0] }
 0x1b9   : > { %8756 = vst [vmem:[#allocation19_spill] sm:$0xff] %v7289_v32  ;;  %v1091_v32 = vpop.f32.mrf.mxu2 }
 0x1ba   : > { %v7310_v27 = vadd.f32 %v1091_v32, %v6898_v23 }
 0x1bb   : > { %v1272_v6 = vpop.f32.mrf.mxu0 }
 0x1bc   : > { %v1180_v25 = vpop.f32.mrf.mxu3  ;;  %v1361_v10 = vpop.f32.mrf.mxu1 }
 0x1bd   : > { %v1270_v33 = vadd.f32 %v1269_v63, %v1180_v25 }
 0x1be   : > { %2083 = vmatmul.bf16.gmra.mxu2 %v5114_v48  ;;  %2261 = vmatmul.bf16.gmra.mxu0 %v7312_v5 }
 0x1bf   : > { %v7316_v12 = vadd.f32 %v1358_v61, %v1270_v33  ;;  %2350 = vmatmul.bf16.gmra.mxu1 %v5114_v48  ;;  %v5125_v61 = vld [vmem:[%s6475_s10 + $0x48] sm:$0xf] }
 0x1c0   : > { %v5126_v41 = vor.u32 %v6085_v54, %v5125_v61  ;;  %v6152_v61 = vld [vmem:[%s8721_s1 + $0x254] sm:$0xf]  ;;  %v5399_v54 = vld [vmem:[%s8721_s1 + $0x258] sm:$0xf0] }
 0x1c1   : > { %8757 = vst [vmem:[#allocation20_spill] sm:$0xff] %v7316_v12  ;;  %2172 = vmatmul.bf16.gmra.mxu3 %v7314_v57  ;;  %v1094_v23 = vpop.f32.mrf.mxu2 }
 0x1c2   : > { %v7321_v25 = vadd.f32 %v1094_v23, %v6904_v45  ;;  %v7334_v45 = vor.u32 %v6086_v21, %v5133_v59 }
 0x1c3   : > { %v1274_v22 = vpop.f32.mrf.mxu0 }
 0x1c4   : > { %v1183_v63 = vpop.f32.mrf.mxu3  ;;  %v1363_v38 = vpop.f32.mrf.mxu1 }
 0x1c5   : > { %v1273_v32 = vadd.f32 %v1272_v6, %v1183_v63  ;;  %v7336_v63 = vor.u32 %v6084_v55, %v5127_v39 }
 0x1c7   : > { %v7323_v20 = vadd.f32 %v1361_v10, %v1273_v32 }
 0x1c9   : > { %8758 = vst [vmem:[#allocation21_spill] sm:$0xff] %v7323_v20  ;;  %v1096_v33 = vpop.f32.mrf.mxu2 }
 0x1ca   : > { %v7332_v12 = vadd.f32 %v1096_v33, %v6910_v3  ;;  %v6168_v3 = vld [vmem:[%s8721_s1 + $0x2d4] sm:$0xf] }
 0x1cb   : > { %v1277_v6 = vpop.f32.mrf.mxu0 }
 0x1cc   : > { %v1185_v48 = vpop.f32.mrf.mxu3  ;;  %v1366_v10 = vpop.f32.mrf.mxu1 }
 0x1cd   : > { %v1275_v23 = vadd.f32 %v1274_v22, %v1185_v48  ;;  %v5463_v22 = vld [vmem:[%s8721_s1 + $0x2d8] sm:$0xf0] }
 0x1ce   : > { %2088 = vmatmul.bf16.gmra.mxu2 %v5126_v41  ;;  %2266 = vmatmul.bf16.gmra.mxu0 %v7334_v45 }
 0x1cf   : > { %v7338_v32 = vadd.f32 %v1363_v38, %v1275_v23  ;;  %2355 = vmatmul.bf16.gmra.mxu1 %v5126_v41  ;;  %v5466_v38 = vor.u32 %v6168_v3, %v5463_v22  ;;  %v5402_v41 = vor.u32 %v6152_v61, %v5399_v54  ;;  %v5829_v3 = vld [vmem:[%s8721_s1 + $0x350] sm:$0xf]  ;;  %v5137_v61 = vld [vmem:[%s6475_s10 + $0x60] sm:$0xf]  ;;  %v5145_v54 = vld [vmem:[%s6475_s10 + $0x68] sm:$0xf] }
 0x1d0   : > { %v5893_v22 = vld [vmem:[%s8721_s1 + $0x3d0] sm:$0xf] }
 0x1d1   : > { %8759 = vst [vmem:[#allocation22_spill] sm:$0xff] %v7338_v32  ;;  %2177 = vmatmul.bf16.gmra.mxu3 %v7336_v63  ;;  %v1099_v59 = vpop.f32.mrf.mxu2  ;;  %2428 = vmatpush.bf16.msrb.mxu2 %v5402_v41 }
 0x1d2   : > { %v7355_v21 = vadd.f32 %v1099_v59, %v6928_v15  ;;  %2517 = vmatpush.bf16.msrb.mxu3 %v5466_v38  ;;  %v6233_v15 = vld [vmem:[%s8721_s1 + $0x354] sm:$0xf0]  ;;  %v6089_v59 = vld [vmem:[%s6475_s10 + $0x70] sm:$0xf0] }
 0x1d3   : > { %v1279_v33 = vpop.f32.mrf.mxu0  ;;  %v6249_v38 = vld [vmem:[%s8721_s1 + $0x3d4] sm:$0xf0]  ;;  %v7380_v62 = vor.u32 %v6089_v59, %v5145_v54  ;;  %v6091_v54 = vld [vmem:[%s6475_s10 + $0x80] sm:$0xf0]  ;;  %v5157_v59 = vld [vmem:[%s6475_s10 + $0x80] sm:$0xf] }
 0x1d4   : > { %v1188_v55 = vpop.f32.mrf.mxu3  ;;  %v1368_v48 = vpop.f32.mrf.mxu1  ;;  %v5894_v41 = vor.u32 %v6249_v38, %v5893_v22 }
 0x1d5   : > { %v1278_v39 = vadd.f32 %v1277_v6, %v1188_v55  ;;  %v5830_v6 = vor.u32 %v6233_v15, %v5829_v3  ;;  %v6087_v55 = vld [vmem:[%s6475_s10 + $0x64] sm:$0xf] }
 0x1d6   : > { %3497 = vmatpush.bf16.msrb.mxu1 %v5894_v41  ;;  %v6092_v41 = vld [vmem:[%s6475_s10 + $0x88] sm:$0xf0] }
 0x1d7   : > { %v7357_v23 = vadd.f32 %v1366_v10, %v1278_v39  ;;  %v6088_v10 = vld [vmem:[%s6475_s10 + $0x68] sm:$0xf0]  ;;  %v5139_v39 = vld [vmem:[%s6475_s10 + $0x6c] sm:$0xf0]  ;;  %3408 = vmatpush.bf16.msrb.mxu0 %v5830_v6 }
 0x1d8   : > { %v5138_v9 = vor.u32 %v6088_v10, %v5137_v61  ;;  %v7382_v1 = vor.u32 %v6087_v55, %v5139_v39  ;;  %v6090_v55 = vld [vmem:[%s6475_s10 + $0x7c] sm:$0xf]  ;;  %v5151_v39 = vld [vmem:[%s6475_s10 + $0x84] sm:$0xf0] }
 0x1d9   : > { %8760 = vst [vmem:[#allocation23_spill] sm:$0xff] %v7357_v23  ;;  %v1101_v23 = vpop.f32.mrf.mxu2 }
 0x1da   : > { %v7378_v32 = vadd.f32 %v1101_v23, %v6946_v51 }
 0x1db   : > { %v1282_v15 = vpop.f32.mrf.mxu0 }
 0x1dc   : > { %v1190_v20 = vpop.f32.mrf.mxu3  ;;  %v1371_v22 = vpop.f32.mrf.mxu1 }
 0x1dd   : > { %v1280_v3 = vadd.f32 %v1279_v33, %v1190_v20 }
 0x1de   : > { %2093 = vmatmul.bf16.gmra.mxu2 %v5138_v9  ;;  %2271 = vmatmul.bf16.gmra.mxu0 %v7380_v62 }
 0x1df   : > { %v7384_v38 = vadd.f32 %v1368_v48, %v1280_v3  ;;  %2360 = vmatmul.bf16.gmra.mxu1 %v5138_v9  ;;  %v5149_v48 = vld [vmem:[%s6475_s10 + $0x78] sm:$0xf] }
 0x1e0   : > { %v5150_v36 = vor.u32 %v6091_v54, %v5149_v48  ;;  %v6150_v48 = vld [vmem:[%s8721_s1 + $0x244] sm:$0xf]  ;;  %v5391_v54 = vld [vmem:[%s8721_s1 + $0x248] sm:$0xf0] }
 0x1e1   : > { %8761 = vst [vmem:[#allocation24_spill] sm:$0xff] %v7384_v38  ;;  %2182 = vmatmul.bf16.gmra.mxu3 %v7382_v1  ;;  %v1104_v51 = vpop.f32.mrf.mxu2 }
 0x1e2   : > { %v7389_v20 = vadd.f32 %v1104_v51, %v6952_v40  ;;  %v7402_v40 = vor.u32 %v6092_v41, %v5157_v59 }
 0x1e3   : > { %v1284_v61 = vpop.f32.mrf.mxu0 }
 0x1e4   : > { %v1193_v33 = vpop.f32.mrf.mxu3  ;;  %v1373_v6 = vpop.f32.mrf.mxu1 }
 0x1e5   : > { %v1283_v23 = vadd.f32 %v1282_v15, %v1193_v33  ;;  %v7404_v33 = vor.u32 %v6090_v55, %v5151_v39 }
 0x1e7   : > { %v7391_v10 = vadd.f32 %v1371_v22, %v1283_v23 }
 0x1e9   : > { %8762 = vst [vmem:[#allocation25_spill] sm:$0xff] %v7391_v10  ;;  %v1106_v3 = vpop.f32.mrf.mxu2 }
 0x1ea   : > { %v7400_v38 = vadd.f32 %v1106_v3, %v6958_v17  ;;  %v6166_v17 = vld [vmem:[%s8721_s1 + $0x2c4] sm:$0xf] }
 0x1eb   : > { %v1287_v15 = vpop.f32.mrf.mxu0 }
 0x1ec   : > { %v1195_v9 = vpop.f32.mrf.mxu3  ;;  %v1376_v22 = vpop.f32.mrf.mxu1 }
 0x1ed   : > { %v1285_v51 = vadd.f32 %v1284_v61, %v1195_v9  ;;  %v5455_v61 = vld [vmem:[%s8721_s1 + $0x2c8] sm:$0xf0] }
 0x1ee   : > { %2098 = vmatmul.bf16.gmra.mxu2 %v5150_v36  ;;  %2276 = vmatmul.bf16.gmra.mxu0 %v7402_v40 }
 0x1ef   : > { %v7406_v23 = vadd.f32 %v1373_v6, %v1285_v51  ;;  %2365 = vmatmul.bf16.gmra.mxu1 %v5150_v36  ;;  %v5458_v6 = vor.u32 %v6166_v17, %v5455_v61  ;;  %v5394_v36 = vor.u32 %v6150_v48, %v5391_v54  ;;  %v5821_v17 = vld [vmem:[%s8721_s1 + $0x340] sm:$0xf]  ;;  %v5161_v48 = vld [vmem:[%s6475_s10 + $0x90] sm:$0xf]  ;;  %v5169_v54 = vld [vmem:[%s6475_s10 + $0x98] sm:$0xf] }
 0x1f0   : > { %v5885_v61 = vld [vmem:[%s8721_s1 + $0x3c0] sm:$0xf] }
 0x1f1   : > { %8763 = vst [vmem:[#allocation26_spill] sm:$0xff] %v7406_v23  ;;  %2187 = vmatmul.bf16.gmra.mxu3 %v7404_v33  ;;  %v1109_v59 = vpop.f32.mrf.mxu2  ;;  %2429 = vmatpush.bf16.msrb.mxu2 %v5394_v36 }
 0x1f2   : > { %v7423_v41 = vadd.f32 %v1109_v59, %v6976_v44  ;;  %2518 = vmatpush.bf16.msrb.mxu3 %v5458_v6  ;;  %v6231_v44 = vld [vmem:[%s8721_s1 + $0x344] sm:$0xf0]  ;;  %v6095_v59 = vld [vmem:[%s6475_s10 + $0xa0] sm:$0xf0] }
 0x1f3   : > { %v1289_v3 = vpop.f32.mrf.mxu0  ;;  %v6247_v6 = vld [vmem:[%s8721_s1 + $0x3c4] sm:$0xf0]  ;;  %v7448_v24 = vor.u32 %v6095_v59, %v5169_v54  ;;  %v6097_v54 = vld [vmem:[%s6475_s10 + $0xb0] sm:$0xf0]  ;;  %v5181_v59 = vld [vmem:[%s6475_s10 + $0xb0] sm:$0xf] }
 0x1f4   : > { %v1198_v55 = vpop.f32.mrf.mxu3  ;;  %v1378_v9 = vpop.f32.mrf.mxu1  ;;  %v5886_v36 = vor.u32 %v6247_v6, %v5885_v61 }
 0x1f5   : > { %v1288_v39 = vadd.f32 %v1287_v15, %v1198_v55  ;;  %v5822_v15 = vor.u32 %v6231_v44, %v5821_v17  ;;  %v6093_v55 = vld [vmem:[%s6475_s10 + $0x94] sm:$0xf] }
 0x1f6   : > { %3498 = vmatpush.bf16.msrb.mxu1 %v5886_v36  ;;  %v6098_v36 = vld [vmem:[%s6475_s10 + $0xb8] sm:$0xf0] }
 0x1f7   : > { %v7425_v51 = vadd.f32 %v1376_v22, %v1288_v39  ;;  %v6094_v22 = vld [vmem:[%s6475_s10 + $0x98] sm:$0xf0]  ;;  %v5163_v39 = vld [vmem:[%s6475_s10 + $0x9c] sm:$0xf0]  ;;  %3409 = vmatpush.bf16.msrb.mxu0 %v5822_v15 }
 0x1f8   : > { %v5162_v26 = vor.u32 %v6094_v22, %v5161_v48  ;;  %v7450_v52 = vor.u32 %v6093_v55, %v5163_v39  ;;  %v6096_v55 = vld [vmem:[%s6475_s10 + $0xac] sm:$0xf]  ;;  %v5175_v39 = vld [vmem:[%s6475_s10 + $0xb4] sm:$0xf0] }
 0x1f9   : > { %8764 = vst [vmem:[#allocation27_spill] sm:$0xff] %v7425_v51  ;;  %v1111_v51 = vpop.f32.mrf.mxu2 }
 0x1fa   : > { %v7446_v23 = vadd.f32 %v1111_v51, %v6994_v19 }
 0x1fb   : > { %v1292_v44 = vpop.f32.mrf.mxu0 }
 0x1fc   : > { %v1200_v10 = vpop.f32.mrf.mxu3  ;;  %v1381_v61 = vpop.f32.mrf.mxu1 }
 0x1fd   : > { %v1290_v17 = vadd.f32 %v1289_v3, %v1200_v10 }
 0x1fe   : > { %2103 = vmatmul.bf16.gmra.mxu2 %v5162_v26  ;;  %2281 = vmatmul.bf16.gmra.mxu0 %v7448_v24 }
 0x1ff   : > { %v7452_v6 = vadd.f32 %v1378_v9, %v1290_v17  ;;  %2370 = vmatmul.bf16.gmra.mxu1 %v5162_v26  ;;  %v5173_v9 = vld [vmem:[%s6475_s10 + $0xa8] sm:$0xf] }
 0x200   : > { %v5174_v56 = vor.u32 %v6097_v54, %v5173_v9  ;;  %v6148_v9 = vld [vmem:[%s8721_s1 + $0x234] sm:$0xf]  ;;  %v5383_v54 = vld [vmem:[%s8721_s1 + $0x238] sm:$0xf0] }
 0x201   : > { %8765 = vst [vmem:[#allocation28_spill] sm:$0xff] %v7452_v6  ;;  %2192 = vmatmul.bf16.gmra.mxu3 %v7450_v52  ;;  %v1114_v19 = vpop.f32.mrf.mxu2 }
 0x202   : > { %v7457_v10 = vadd.f32 %v1114_v19, %v7000_v58  ;;  %v7470_v58 = vor.u32 %v6098_v36, %v5181_v59 }
 0x203   : > { %v1294_v48 = vpop.f32.mrf.mxu0 }
 0x204   : > { %v1203_v3 = vpop.f32.mrf.mxu3  ;;  %v1383_v15 = vpop.f32.mrf.mxu1 }
 0x205   : > { %v1293_v51 = vadd.f32 %v1292_v44, %v1203_v3  ;;  %v7472_v3 = vor.u32 %v6096_v55, %v5175_v39 }
 0x207   : > { %v7459_v22 = vadd.f32 %v1381_v61, %v1293_v51 }
 0x209   : > { %8766 = vst [vmem:[#allocation29_spill] sm:$0xff] %v7459_v22  ;;  %v1116_v17 = vpop.f32.mrf.mxu2 }
 0x20a   : > { %v7468_v6 = vadd.f32 %v1116_v17, %v7006_v42  ;;  %v6164_v42 = vld [vmem:[%s8721_s1 + $0x2b4] sm:$0xf] }
 0x20b   : > { %v1297_v44 = vpop.f32.mrf.mxu0 }
 0x20c   : > { %8767 = vst [vmem:[#allocation30_spill] sm:$0xff] %v7468_v6  ;;  %v1205_v26 = vpop.f32.mrf.mxu3  ;;  %v1386_v61 = vpop.f32.mrf.mxu1 }
 0x20d   : > { %v1295_v19 = vadd.f32 %v1294_v48, %v1205_v26  ;;  %v5447_v48 = vld [vmem:[%s8721_s1 + $0x2b8] sm:$0xf0] }
 0x20e   : > { %2108 = vmatmul.bf16.gmra.mxu2 %v5174_v56  ;;  %2286 = vmatmul.bf16.gmra.mxu0 %v7470_v58 }
 0x20f   : > { %v7474_v51 = vadd.f32 %v1383_v15, %v1295_v19  ;;  %2375 = vmatmul.bf16.gmra.mxu1 %v5174_v56  ;;  %v5450_v15 = vor.u32 %v6164_v42, %v5447_v48  ;;  %v5386_v56 = vor.u32 %v6148_v9, %v5383_v54  ;;  %v5813_v42 = vld [vmem:[%s8721_s1 + $0x330] sm:$0xf]  ;;  %v5185_v9 = vld [vmem:[%s6475_s10 + $0xc0] sm:$0xf]  ;;  %v5193_v54 = vld [vmem:[%s6475_s10 + $0xc8] sm:$0xf] }
 0x210   : > { %v5877_v48 = vld [vmem:[%s8721_s1 + $0x3b0] sm:$0xf] }
 0x211   : > { %8768 = vst [vmem:[#allocation31_spill] sm:$0xff] %v7474_v51  ;;  %2197 = vmatmul.bf16.gmra.mxu3 %v7472_v3  ;;  %v1119_v59 = vpop.f32.mrf.mxu2  ;;  %2430 = vmatpush.bf16.msrb.mxu2 %v5386_v56 }
 0x212   : > { %v7491_v36 = vadd.f32 %v1119_v59, %v7024_v30  ;;  %2519 = vmatpush.bf16.msrb.mxu3 %v5450_v15  ;;  %v6229_v30 = vld [vmem:[%s8721_s1 + $0x334] sm:$0xf0]  ;;  %v6101_v59 = vld [vmem:[%s6475_s10 + $0xd0] sm:$0xf0] }
 0x213   : > { %v1299_v17 = vpop.f32.mrf.mxu0  ;;  %v6245_v15 = vld [vmem:[%s8721_s1 + $0x3b4] sm:$0xf0] }
 0x214   : > { %8769 = vst [vmem:[#allocation32_spill] sm:$0xff] %v7491_v36  ;;  %v1208_v55 = vpop.f32.mrf.mxu3  ;;  %v1388_v26 = vpop.f32.mrf.mxu1  ;;  %v5878_v56 = vor.u32 %v6245_v15, %v5877_v48  ;;  %v7516_v36 = vor.u32 %v6101_v59, %v5193_v54  ;;  %v6103_v54 = vld [vmem:[%s6475_s10 + $0xe0] sm:$0xf0]  ;;  %v5205_v59 = vld [vmem:[%s6475_s10 + $0xe0] sm:$0xf] }
 0x215   : > { %v1298_v39 = vadd.f32 %v1297_v44, %v1208_v55  ;;  %v5814_v44 = vor.u32 %v6229_v30, %v5813_v42  ;;  %v6099_v55 = vld [vmem:[%s6475_s10 + $0xc4] sm:$0xf] }
 0x216   : > { %3499 = vmatpush.bf16.msrb.mxu1 %v5878_v56  ;;  %v6104_v56 = vld [vmem:[%s6475_s10 + $0xe8] sm:$0xf0] }
 0x217   : > { %v7493_v19 = vadd.f32 %v1386_v61, %v1298_v39  ;;  %v6100_v61 = vld [vmem:[%s6475_s10 + $0xc8] sm:$0xf0]  ;;  %v5187_v39 = vld [vmem:[%s6475_s10 + $0xcc] sm:$0xf0]  ;;  %3410 = vmatpush.bf16.msrb.mxu0 %v5814_v44 }
 0x218   : > { %v5186_v47 = vor.u32 %v6100_v61, %v5185_v9  ;;  %v7518_v6 = vor.u32 %v6099_v55, %v5187_v39  ;;  %v6102_v55 = vld [vmem:[%s6475_s10 + $0xdc] sm:$0xf]  ;;  %v5199_v39 = vld [vmem:[%s6475_s10 + $0xe4] sm:$0xf0] }
 0x219   : > { %8770 = vst [vmem:[#allocation33_spill] sm:$0xff] %v7493_v19  ;;  %v1121_v19 = vpop.f32.mrf.mxu2 }
 0x21a   : > { %v7514_v51 = vadd.f32 %v1121_v19, %v7042_v0 }
 0x21b   : > { %v1302_v30 = vpop.f32.mrf.mxu0 }
 0x21c   : > { %8771 = vst [vmem:[#allocation34_spill] sm:$0xff] %v7514_v51  ;;  %v1210_v22 = vpop.f32.mrf.mxu3  ;;  %v1391_v48 = vpop.f32.mrf.mxu1 }
 0x21d   : > { %v1300_v42 = vadd.f32 %v1299_v17, %v1210_v22 }
 0x21e   : > { %2113 = vmatmul.bf16.gmra.mxu2 %v5186_v47  ;;  %2291 = vmatmul.bf16.gmra.mxu0 %v7516_v36 }
 0x21f   : > { %v7520_v15 = vadd.f32 %v1388_v26, %v1300_v42  ;;  %2380 = vmatmul.bf16.gmra.mxu1 %v5186_v47  ;;  %v5197_v26 = vld [vmem:[%s6475_s10 + $0xd8] sm:$0xf] }
 0x220   : > { %v5198_v51 = vor.u32 %v6103_v54, %v5197_v26  ;;  %v5375_v54 = vld [vmem:[%s8721_s1 + $0x228] sm:$0xf0] }
 0x221   : > { %8772 = vst [vmem:[#allocation35_spill] sm:$0xff] %v7520_v15  ;;  %2202 = vmatmul.bf16.gmra.mxu3 %v7518_v6  ;;  %v1124_v0 = vpop.f32.mrf.mxu2 }
 0x222   : > { %v7525_v22 = vadd.f32 %v1124_v0, %v7048_v28  ;;  %v7538_v28 = vor.u32 %v6104_v56, %v5205_v59 }
 0x223   : > { %v1304_v9 = vpop.f32.mrf.mxu0 }
 0x224   : > { %v1213_v17 = vpop.f32.mrf.mxu3  ;;  %v1393_v44 = vpop.f32.mrf.mxu1  ;;  %8775 = vst [vmem:[#allocation38_spill] sm:$0xff] %v7538_v28 }
 0x225   : > { %v1303_v19 = vadd.f32 %v1302_v30, %v1213_v17  ;;  %v7540_v17 = vor.u32 %v6102_v55, %v5199_v39 }
 0x227   : > { %v7527_v61 = vadd.f32 %v1391_v48, %v1303_v19  ;;  %8776 = vst [vmem:[#allocation39_spill] sm:$0xff] %v7540_v17 }
 0x229   : > { %8773 = vst [vmem:[#allocation36_spill] sm:$0xff] %v7527_v61  ;;  %v1126_v42 = vpop.f32.mrf.mxu2  ;;  %v5211_v61 = vld [vmem:[%s6475_s10 + $0xfc] sm:$0xf0] }
 0x22a   : > { %v7536_v15 = vadd.f32 %v1126_v42, %v7054_v7  ;;  %v6162_v7 = vld [vmem:[%s8721_s1 + $0x2a4] sm:$0xf] }
 0x22b   : > { %v2257_v30 = vpop.f32.mrf.mxu0 }
 0x22c   : > { %8774 = vst [vmem:[#allocation37_spill] sm:$0xff] %v7536_v15  ;;  %v1215_v47 = vpop.f32.mrf.mxu3  ;;  %v7542_v48 = vpop.f32.mrf.mxu1 }
 0x22d   : > { %v1305_v0 = vadd.f32 %v1304_v9, %v1215_v47  ;;  %8777 = vst [vmem:[#allocation40_spill] sm:$0xff] %v7542_v48  ;;  %v5439_v9 = vld [vmem:[%s8721_s1 + $0x2a8] sm:$0xf0] }
 0x22e   : > { %2118 = vmatmul.bf16.gmra.mxu2 %v5198_v51  ;;  %2296 = vmatmul.bf16.gmra.mxu0 %v7538_v28  ;;  %v5442_v26 = vor.u32 %v6162_v7, %v5439_v9  ;;  %v6227_v7 = vld [vmem:[%s8721_s1 + $0x324] sm:$0xf0]  ;;  %v5869_v9 = vld [vmem:[%s8721_s1 + $0x3a0] sm:$0xf] }
 0x22f   : > { %v7544_v19 = vadd.f32 %v1393_v44, %v1305_v0  ;;  %2385 = vmatmul.bf16.gmra.mxu1 %v5198_v51  ;;  %v6146_v44 = vld [vmem:[%s8721_s1 + $0x224] sm:$0xf]  ;;  %v5805_v0 = vld [vmem:[%s8721_s1 + $0x320] sm:$0xf] }
 0x230   : > { %v5378_v59 = vor.u32 %v6146_v44, %v5375_v54  ;;  %2520 = vmatpush.bf16.msrb.mxu3 %v5442_v26  ;;  %v5209_v44 = vld [vmem:[%s6475_s10 + $0xf0] sm:$0xf]  ;;  %v5806_v26 = vor.u32 %v6227_v7, %v5805_v0  ;;  %v6243_v54 = vld [vmem:[%s8721_s1 + $0x3a4] sm:$0xf0] }
 0x231   : > { %8778 = vst [vmem:[#allocation41_spill] sm:$0xff] %v7544_v19  ;;  %2207 = vmatmul.bf16.gmra.mxu3 %v7540_v17  ;;  %v2079_v51 = vpop.f32.mrf.mxu2  ;;  %v6105_v19 = vld [vmem:[%s6475_s10 + $0xf4] sm:$0xf] }
 0x232   : > { %2431 = vmatpush.bf16.msrb.mxu2 %v5378_v59  ;;  %v6107_v59 = vld [vmem:[%s6475_s10 + $0x100] sm:$0xf0]  ;;  %3411 = vmatpush.bf16.msrb.mxu0 %v5806_v26  ;;  %v7585_v17 = vor.u32 %v6105_v19, %v5211_v61 }
 0x233   : > { %v2259_v39 = vpop.f32.mrf.mxu0 }
 0x234   : > { %v2168_v56 = vpop.f32.mrf.mxu3  ;;  %v7560_v42 = vpop.f32.mrf.mxu1 }
 0x235   : > { %v2169_v55 = vadd.f32 %v2168_v56, %v2079_v51  ;;  %8779 = vst [vmem:[#allocation42_spill] sm:$0xff] %v7560_v42  ;;  %v6106_v51 = vld [vmem:[%s6475_s10 + $0xf8] sm:$0xf0]  ;;  %v5870_v56 = vor.u32 %v6243_v54, %v5869_v9  ;;  %v5221_v54 = vld [vmem:[%s6475_s10 + $0x108] sm:$0xf] }
 0x236   : > { %v5210_v15 = vor.u32 %v6106_v51, %v5209_v44  ;;  %v5229_v51 = vld [vmem:[%s6475_s10 + $0x110] sm:$0xf] }
 0x237   : > { %v2258_v47 = vadd.f32 %v2257_v30, %v2169_v55  ;;  %v5217_v30 = vld [vmem:[%s6475_s10 + $0xf8] sm:$0xf]  ;;  %3500 = vmatpush.bf16.msrb.mxu1 %v5870_v56  ;;  %v6108_v56 = vld [vmem:[%s6475_s10 + $0x10c] sm:$0xf] }
 0x238   : > { %v7583_v28 = vor.u32 %v6107_v59, %v5217_v30  ;;  %v6110_v30 = vld [vmem:[%s6475_s10 + $0x118] sm:$0xf0] }
 0x239   : > { %v7579_v55 = vadd.f32 %v2258_v47, %v7071_v14  ;;  %v2081_v42 = vpop.f32.mrf.mxu2 }
 0x23b   : > { %8780 = vst [vmem:[#allocation43_spill] sm:$0xff] %v7579_v55  ;;  %v2262_v7 = vpop.f32.mrf.mxu0 }
 0x23c   : > { %v2170_v48 = vpop.f32.mrf.mxu3  ;;  %v7587_v9 = vpop.f32.mrf.mxu1 }
 0x23d   : > { %v2171_v0 = vadd.f32 %v2170_v48, %v2081_v42 }
 0x23e   : > { %2123 = vmatmul.bf16.gmra.mxu2 %v5210_v15  ;;  %2301 = vmatmul.bf16.gmra.mxu0 %v7583_v28 }
 0x23f   : > { %v2260_v14 = vadd.f32 %v2259_v39, %v2171_v0  ;;  %2390 = vmatmul.bf16.gmra.mxu1 %v5210_v15  ;;  %v6109_v39 = vld [vmem:[%s6475_s10 + $0x110] sm:$0xf0]  ;;  %v5223_v0 = vld [vmem:[%s6475_s10 + $0x114] sm:$0xf0] }
 0x241   : > { %2212 = vmatmul.bf16.gmra.mxu3 %v7585_v17  ;;  %v7592_v48 = vadd.f32 %v2260_v14, %v7090_v13  ;;  %v2084_v42 = vpop.f32.mrf.mxu2  ;;  %v5222_v13 = vor.u32 %v6109_v39, %v5221_v54  ;;  %v7605_v14 = vor.u32 %v6110_v30, %v5229_v51 }
 0x243   : > { %8781 = vst [vmem:[#allocation44_spill] sm:$0xff] %v7592_v48  ;;  %v2264_v19 = vpop.f32.mrf.mxu0 }
 0x244   : > { %v2173_v47 = vpop.f32.mrf.mxu3  ;;  %v7594_v44 = vpop.f32.mrf.mxu1  ;;  %8784 = vst [vmem:[#allocation47_spill] sm:$0xff] %v7605_v14 }
 0x245   : > { %v2174_v61 = vadd.f32 %v2173_v47, %v2084_v42  ;;  %8782 = vst [vmem:[#allocation45_spill] sm:$0xff] %v7594_v44  ;;  %v7607_v47 = vor.u32 %v6108_v56, %v5223_v0 }
 0x247   : > { %v2263_v26 = vadd.f32 %v2262_v7, %v2174_v61  ;;  %v6144_v61 = vld [vmem:[%s8721_s1 + $0x214] sm:$0xf] }
 0x249   : > { %v7601_v59 = vadd.f32 %v2263_v26, %v7097_v49  ;;  %v2086_v15 = vpop.f32.mrf.mxu2  ;;  %v6160_v49 = vld [vmem:[%s8721_s1 + $0x294] sm:$0xf]  ;;  %v5367_v26 = vld [vmem:[%s8721_s1 + $0x218] sm:$0xf0] }
 0x24a   : > { %v5370_v39 = vor.u32 %v6144_v61, %v5367_v26  ;;  %v6241_v61 = vld [vmem:[%s8721_s1 + $0x394] sm:$0xf0]  ;;  %v6113_v26 = vld [vmem:[%s6475_s10 + $0x130] sm:$0xf0] }
 0x24b   : > { %8783 = vst [vmem:[#allocation46_spill] sm:$0xff] %v7601_v59  ;;  %v2267_v42 = vpop.f32.mrf.mxu0 }
 0x24c   : > { %v2175_v55 = vpop.f32.mrf.mxu3  ;;  %v7609_v44 = vpop.f32.mrf.mxu1  ;;  %2432 = vmatpush.bf16.msrb.mxu2 %v5370_v39 }
 0x24d   : > { %v2176_v48 = vadd.f32 %v2175_v55, %v2086_v15  ;;  %8785 = vst [vmem:[#allocation48_spill] sm:$0xff] %v7609_v44  ;;  %v5431_v55 = vld [vmem:[%s8721_s1 + $0x298] sm:$0xf0]  ;;  %v5797_v15 = vld [vmem:[%s8721_s1 + $0x310] sm:$0xf] }
 0x24e   : > { %2128 = vmatmul.bf16.gmra.mxu2 %v5222_v13  ;;  %2306 = vmatmul.bf16.gmra.mxu0 %v7605_v14 }
 0x24f   : > { %v2265_v7 = vadd.f32 %v2264_v19, %v2176_v48  ;;  %2395 = vmatmul.bf16.gmra.mxu1 %v5222_v13  ;;  %v5434_v19 = vor.u32 %v6160_v49, %v5431_v55  ;;  %v6225_v13 = vld [vmem:[%s8721_s1 + $0x314] sm:$0xf0]  ;;  %v5233_v49 = vld [vmem:[%s6475_s10 + $0x120] sm:$0xf] }
 0x250   : > { %v5798_v55 = vor.u32 %v6225_v13, %v5797_v15 }
 0x251   : > { %2217 = vmatmul.bf16.gmra.mxu3 %v7607_v47  ;;  %v7623_v48 = vadd.f32 %v2265_v7, %v7104_v2  ;;  %v2089_v54 = vpop.f32.mrf.mxu2  ;;  %v5861_v7 = vld [vmem:[%s8721_s1 + $0x390] sm:$0xf] }
 0x252   : > { %2521 = vmatpush.bf16.msrb.mxu3 %v5434_v19  ;;  %v6112_v19 = vld [vmem:[%s6475_s10 + $0x128] sm:$0xf0]  ;;  %3412 = vmatpush.bf16.msrb.mxu0 %v5798_v55 }
 0x253   : > { %8786 = vst [vmem:[#allocation49_spill] sm:$0xff] %v7623_v48  ;;  %v2269_v56 = vpop.f32.mrf.mxu0 }
 0x254   : > { %v2178_v51 = vpop.f32.mrf.mxu3  ;;  %v7628_v0 = vpop.f32.mrf.mxu1 }
 0x255   : > { %v2179_v30 = vadd.f32 %v2178_v51, %v2089_v54  ;;  %8787 = vst [vmem:[#allocation50_spill] sm:$0xff] %v7628_v0  ;;  %v5862_v54 = vor.u32 %v6241_v61, %v5861_v7  ;;  %v6111_v51 = vld [vmem:[%s6475_s10 + $0x124] sm:$0xf]  ;;  %v5234_v0 = vor.u32 %v6112_v19, %v5233_v49 }
 0x257   : > { %v2268_v2 = vadd.f32 %v2267_v42, %v2179_v30  ;;  %v5241_v42 = vld [vmem:[%s6475_s10 + $0x128] sm:$0xf]  ;;  %v5235_v30 = vld [vmem:[%s6475_s10 + $0x12c] sm:$0xf0]  ;;  %3501 = vmatpush.bf16.msrb.mxu1 %v5862_v54  ;;  %v6116_v54 = vld [vmem:[%s6475_s10 + $0x148] sm:$0xf0] }
 0x258   : > { %v7651_v44 = vor.u32 %v6113_v26, %v5241_v42  ;;  %v7653_v14 = vor.u32 %v6111_v51, %v5235_v30  ;;  %v5245_v42 = vld [vmem:[%s6475_s10 + $0x138] sm:$0xf]  ;;  %v5253_v26 = vld [vmem:[%s6475_s10 + $0x140] sm:$0xf]  ;;  %v6114_v30 = vld [vmem:[%s6475_s10 + $0x13c] sm:$0xf] }
 0x259   : > { %v7647_v39 = vadd.f32 %v2268_v2, %v7123_v11  ;;  %v2091_v48 = vpop.f32.mrf.mxu2 }
 0x25b   : > { %8788 = vst [vmem:[#allocation51_spill] sm:$0xff] %v7647_v39  ;;  %v2272_v13 = vpop.f32.mrf.mxu0 }
 0x25c   : > { %v2180_v59 = vpop.f32.mrf.mxu3  ;;  %v7655_v7 = vpop.f32.mrf.mxu1 }
 0x25d   : > { %v2181_v15 = vadd.f32 %v2180_v59, %v2091_v48 }
 0x25e   : > { %2133 = vmatmul.bf16.gmra.mxu2 %v5234_v0  ;;  %2311 = vmatmul.bf16.gmra.mxu0 %v7651_v44 }
 0x25f   : > { %v2270_v11 = vadd.f32 %v2269_v56, %v2181_v15  ;;  %2400 = vmatmul.bf16.gmra.mxu1 %v5234_v0  ;;  %v6115_v56 = vld [vmem:[%s6475_s10 + $0x140] sm:$0xf0]  ;;  %v5247_v15 = vld [vmem:[%s6475_s10 + $0x144] sm:$0xf0] }
 0x261   : > { %2222 = vmatmul.bf16.gmra.mxu3 %v7653_v14  ;;  %v7660_v59 = vadd.f32 %v2270_v11, %v7142_v16  ;;  %v2094_v48 = vpop.f32.mrf.mxu2  ;;  %v5246_v16 = vor.u32 %v6115_v56, %v5245_v42  ;;  %v7673_v11 = vor.u32 %v6116_v54, %v5253_v26 }
 0x263   : > { %8789 = vst [vmem:[#allocation52_spill] sm:$0xff] %v7660_v59  ;;  %v2274_v55 = vpop.f32.mrf.mxu0 }
 0x264   : > { %v2183_v2 = vpop.f32.mrf.mxu3  ;;  %v7662_v61 = vpop.f32.mrf.mxu1  ;;  %8792 = vst [vmem:[#allocation55_spill] sm:$0xff] %v7673_v11 }
 0x265   : > { %v2184_v49 = vadd.f32 %v2183_v2, %v2094_v48  ;;  %8790 = vst [vmem:[#allocation53_spill] sm:$0xff] %v7662_v61  ;;  %v7675_v2 = vor.u32 %v6114_v30, %v5247_v15 }
 0x267   : > { %v2273_v19 = vadd.f32 %v2272_v13, %v2184_v49  ;;  %v6142_v49 = vld [vmem:[%s8721_s1 + $0x204] sm:$0xf] }
 0x269   : > { %v7669_v51 = vadd.f32 %v2273_v19, %v7149_v43  ;;  %v2096_v0 = vpop.f32.mrf.mxu2  ;;  %v6158_v43 = vld [vmem:[%s8721_s1 + $0x284] sm:$0xf]  ;;  %v5359_v19 = vld [vmem:[%s8721_s1 + $0x208] sm:$0xf0] }
 0x26a   : > { %v5362_v56 = vor.u32 %v6142_v49, %v5359_v19  ;;  %v6239_v49 = vld [vmem:[%s8721_s1 + $0x384] sm:$0xf0]  ;;  %v6119_v19 = vld [vmem:[%s6475_s10 + $0x160] sm:$0xf0] }
 0x26b   : > { %8791 = vst [vmem:[#allocation54_spill] sm:$0xff] %v7669_v51  ;;  %v2277_v48 = vpop.f32.mrf.mxu0 }
 0x26c   : > { %v2185_v39 = vpop.f32.mrf.mxu3  ;;  %v7677_v61 = vpop.f32.mrf.mxu1  ;;  %2433 = vmatpush.bf16.msrb.mxu2 %v5362_v56 }
 0x26d   : > { %v2186_v59 = vadd.f32 %v2185_v39, %v2096_v0  ;;  %8793 = vst [vmem:[#allocation56_spill] sm:$0xff] %v7677_v61  ;;  %v5423_v39 = vld [vmem:[%s8721_s1 + $0x288] sm:$0xf0]  ;;  %v5789_v0 = vld [vmem:[%s8721_s1 + $0x300] sm:$0xf] }
 0x26e   : > { %2138 = vmatmul.bf16.gmra.mxu2 %v5246_v16  ;;  %2316 = vmatmul.bf16.gmra.mxu0 %v7673_v11 }
 0x26f   : > { %v2275_v13 = vadd.f32 %v2274_v55, %v2186_v59  ;;  %2405 = vmatmul.bf16.gmra.mxu1 %v5246_v16  ;;  %v5426_v55 = vor.u32 %v6158_v43, %v5423_v39  ;;  %v6223_v16 = vld [vmem:[%s8721_s1 + $0x304] sm:$0xf0]  ;;  %v5257_v43 = vld [vmem:[%s6475_s10 + $0x150] sm:$0xf] }
 0x270   : > { %v5790_v39 = vor.u32 %v6223_v16, %v5789_v0 }
 0x271   : > { %2227 = vmatmul.bf16.gmra.mxu3 %v7675_v2  ;;  %v7691_v59 = vadd.f32 %v2275_v13, %v7156_v34  ;;  %v2099_v42 = vpop.f32.mrf.mxu2  ;;  %v5853_v13 = vld [vmem:[%s8721_s1 + $0x380] sm:$0xf] }
 0x272   : > { %2522 = vmatpush.bf16.msrb.mxu3 %v5426_v55  ;;  %v6118_v55 = vld [vmem:[%s6475_s10 + $0x158] sm:$0xf0]  ;;  %3413 = vmatpush.bf16.msrb.mxu0 %v5790_v39 }
 0x273   : > { %8794 = vst [vmem:[#allocation57_spill] sm:$0xff] %v7691_v59  ;;  %v2279_v30 = vpop.f32.mrf.mxu0 }
 0x274   : > { %v2188_v26 = vpop.f32.mrf.mxu3  ;;  %v7696_v15 = vpop.f32.mrf.mxu1 }
 0x275   : > { %v2189_v54 = vadd.f32 %v2188_v26, %v2099_v42  ;;  %8795 = vst [vmem:[#allocation58_spill] sm:$0xff] %v7696_v15  ;;  %v5854_v42 = vor.u32 %v6239_v49, %v5853_v13  ;;  %v6117_v26 = vld [vmem:[%s6475_s10 + $0x154] sm:$0xf]  ;;  %v5258_v15 = vor.u32 %v6118_v55, %v5257_v43 }
 0x277   : > { %v2278_v34 = vadd.f32 %v2277_v48, %v2189_v54  ;;  %v5265_v48 = vld [vmem:[%s6475_s10 + $0x158] sm:$0xf]  ;;  %v5259_v54 = vld [vmem:[%s6475_s10 + $0x15c] sm:$0xf0]  ;;  %3502 = vmatpush.bf16.msrb.mxu1 %v5854_v42  ;;  %v6122_v42 = vld [vmem:[%s6475_s10 + $0x178] sm:$0xf0] }
 0x278   : > { %v7719_v61 = vor.u32 %v6119_v19, %v5265_v48  ;;  %v7721_v11 = vor.u32 %v6117_v26, %v5259_v54  ;;  %v5269_v48 = vld [vmem:[%s6475_s10 + $0x168] sm:$0xf]  ;;  %v5277_v19 = vld [vmem:[%s6475_s10 + $0x170] sm:$0xf]  ;;  %v6120_v54 = vld [vmem:[%s6475_s10 + $0x16c] sm:$0xf] }
 0x279   : > { %v7715_v56 = vadd.f32 %v2278_v34, %v7175_v18  ;;  %v2101_v59 = vpop.f32.mrf.mxu2 }
 0x27b   : > { %8796 = vst [vmem:[#allocation59_spill] sm:$0xff] %v7715_v56  ;;  %v2282_v16 = vpop.f32.mrf.mxu0 }
 0x27c   : > { %v2190_v51 = vpop.f32.mrf.mxu3  ;;  %v7723_v13 = vpop.f32.mrf.mxu1 }
 0x27d   : > { %v2191_v0 = vadd.f32 %v2190_v51, %v2101_v59 }
 0x27e   : > { %2143 = vmatmul.bf16.gmra.mxu2 %v5258_v15  ;;  %2321 = vmatmul.bf16.gmra.mxu0 %v7719_v61 }
 0x27f   : > { %v2280_v18 = vadd.f32 %v2279_v30, %v2191_v0  ;;  %2410 = vmatmul.bf16.gmra.mxu1 %v5258_v15  ;;  %v6121_v30 = vld [vmem:[%s6475_s10 + $0x170] sm:$0xf0]  ;;  %v5271_v0 = vld [vmem:[%s6475_s10 + $0x174] sm:$0xf0] }
 0x281   : > { %2232 = vmatmul.bf16.gmra.mxu3 %v7721_v11  ;;  %v7728_v51 = vadd.f32 %v2280_v18, %v7194_v53  ;;  %v2104_v59 = vpop.f32.mrf.mxu2  ;;  %v5270_v53 = vor.u32 %v6121_v30, %v5269_v48  ;;  %v7741_v18 = vor.u32 %v6122_v42, %v5277_v19 }
 0x283   : > { %8797 = vst [vmem:[#allocation60_spill] sm:$0xff] %v7728_v51  ;;  %v2284_v39 = vpop.f32.mrf.mxu0 }
 0x284   : > { %v2193_v34 = vpop.f32.mrf.mxu3  ;;  %v7730_v49 = vpop.f32.mrf.mxu1  ;;  %8800 = vst [vmem:[#allocation63_spill] sm:$0xff] %v7741_v18 }
 0x285   : > { %v2194_v43 = vadd.f32 %v2193_v34, %v2104_v59  ;;  %8798 = vst [vmem:[#allocation61_spill] sm:$0xff] %v7730_v49  ;;  %v7743_v34 = vor.u32 %v6120_v54, %v5271_v0 }
 0x287   : > { %v2283_v55 = vadd.f32 %v2282_v16, %v2194_v43  ;;  %8801 = vst [vmem:[#allocation64_spill] sm:$0xff] %v7743_v34  ;;  %v5973_v43 = vld [vmem:[%s8721_s1 + $0x470] sm:$0xf] }
 0x289   : > { %v7737_v26 = vadd.f32 %v2283_v55, %v7201_v31  ;;  %v2106_v15 = vpop.f32.mrf.mxu2  ;;  %v6236_v31 = vld [vmem:[%s8721_s1 + $0x374] sm:$0xf]  ;;  %v6269_v55 = vld [vmem:[%s8721_s1 + $0x474] sm:$0xf0] }
 0x28a   : > { %v5974_v30 = vor.u32 %v6269_v55, %v5973_v43  ;;  %v5975_v43 = vld [vmem:[%s8721_s1 + $0x478] sm:$0xf0]  ;;  %v6125_v55 = vld [vmem:[%s6475_s10 + $0x190] sm:$0xf0] }
 0x28b   : > { %8799 = vst [vmem:[#allocation62_spill] sm:$0xff] %v7737_v26  ;;  %v2287_v59 = vpop.f32.mrf.mxu0 }
 0x28c   : > { %v2195_v56 = vpop.f32.mrf.mxu3  ;;  %v7745_v49 = vpop.f32.mrf.mxu1  ;;  %3584 = vmatpush.bf16.msra.mxu2 %v5974_v30 }
 0x28d   : > { %v2196_v51 = vadd.f32 %v2195_v56, %v2106_v15  ;;  %8802 = vst [vmem:[#allocation65_spill] sm:$0xff] %v7745_v49  ;;  %v5847_v56 = vld [vmem:[%s8721_s1 + $0x378] sm:$0xf0]  ;;  %v6252_v15 = vld [vmem:[%s8721_s1 + $0x3f4] sm:$0xf] }
 0x28e   : > { %2148 = vmatmul.bf16.gmra.mxu2 %v5270_v53  ;;  %2326 = vmatmul.bf16.gmra.mxu0 %v7741_v18 }
 0x28f   : > { %v2285_v16 = vadd.f32 %v2284_v39, %v2196_v51  ;;  %2415 = vmatmul.bf16.gmra.mxu1 %v5270_v53  ;;  %v5850_v39 = vor.u32 %v6236_v31, %v5847_v56  ;;  %v5911_v53 = vld [vmem:[%s8721_s1 + $0x3f8] sm:$0xf0]  ;;  %v5281_v31 = vld [vmem:[%s6475_s10 + $0x180] sm:$0xf] }
 0x290   : > { %v5914_v56 = vor.u32 %v6252_v15, %v5911_v53 }
 0x291   : > { %2237 = vmatmul.bf16.gmra.mxu3 %v7743_v34  ;;  %v7759_v51 = vadd.f32 %v2285_v16, %v7208_v8  ;;  %v2109_v48 = vpop.f32.mrf.mxu2  ;;  %v6268_v16 = vld [vmem:[%s8721_s1 + $0x474] sm:$0xf] }
 0x292   : > { %3673 = vmatpush.bf16.msra.mxu3 %v5850_v39  ;;  %v6124_v39 = vld [vmem:[%s6475_s10 + $0x188] sm:$0xf0]  ;;  %3762 = vmatpush.bf16.msra.mxu0 %v5914_v56 }
 0x293   : > { %8803 = vst [vmem:[#allocation66_spill] sm:$0xff] %v7759_v51  ;;  %v2289_v54 = vpop.f32.mrf.mxu0 }
 0x294   : > { %v2198_v19 = vpop.f32.mrf.mxu3  ;;  %v7764_v0 = vpop.f32.mrf.mxu1 }
 0x295   : > { %v2199_v42 = vadd.f32 %v2198_v19, %v2109_v48  ;;  %8804 = vst [vmem:[#allocation67_spill] sm:$0xff] %v7764_v0  ;;  %v5978_v48 = vor.u32 %v6268_v16, %v5975_v43  ;;  %v6123_v19 = vld [vmem:[%s6475_s10 + $0x184] sm:$0xf]  ;;  %v5282_v0 = vor.u32 %v6124_v39, %v5281_v31  ;;  %v5597_v39 = vld [vmem:[%s6475_s10 + $0x30] sm:$0xf] }
 0x297   : > { %v2288_v8 = vadd.f32 %v2287_v59, %v2199_v42  ;;  %v5289_v59 = vld [vmem:[%s6475_s10 + $0x188] sm:$0xf]  ;;  %v5283_v42 = vld [vmem:[%s6475_s10 + $0x18c] sm:$0xf0]  ;;  %3851 = vmatpush.bf16.msra.mxu1 %v5978_v48  ;;  %v5599_v48 = vld [vmem:[%s6475_s10 + $0x3c] sm:$0xf0] }
 0x298   : > { %v7787_v49 = vor.u32 %v6125_v55, %v5289_v59  ;;  %v7789_v18 = vor.u32 %v6123_v19, %v5283_v42  ;;  %v6175_v59 = vld [vmem:[%s6475_s10 + $0x38] sm:$0xf0]  ;;  %v6174_v55 = vld [vmem:[%s6475_s10 + $0x34] sm:$0xf] }
 0x299   : > { %v7783_v30 = vadd.f32 %v2288_v8, %v7227_v50  ;;  %v2111_v51 = vpop.f32.mrf.mxu2 }
 0x29b   : > { %8805 = vst [vmem:[#allocation68_spill] sm:$0xff] %v7783_v30  ;;  %v2292_v53 = vpop.f32.mrf.mxu0 }
 0x29c   : > { %v2200_v26 = vpop.f32.mrf.mxu3  ;;  %v7791_v34 = vpop.f32.mrf.mxu1 }
 0x29d   : > { %v2201_v15 = vadd.f32 %v2200_v26, %v2111_v51 }
 0x29e   : > { %2153 = vmatmul.bf16.gmra.mxu2 %v5282_v0  ;;  %2331 = vmatmul.bf16.gmra.mxu0 %v7787_v49 }
 0x29f   : > { %v2290_v50 = vadd.f32 %v2289_v54, %v2201_v15  ;;  %2420 = vmatmul.bf16.gmra.mxu1 %v5282_v0  ;;  %v7807_v0 = vor.u32 %v6175_v59, %v5597_v39 }
 0x2a1   : > { %2242 = vmatmul.bf16.gmra.mxu3 %v7789_v18  ;;  %v7796_v8 = vadd.f32 %v2290_v50, %v7246_v46  ;;  %v2114_v26 = vpop.f32.mrf.mxu2  ;;  %v7809_v50 = vor.u32 %v6174_v55, %v5599_v48 }
 0x2a3   : > { %8806 = vst [vmem:[#allocation69_spill] sm:$0xff] %v7796_v8  ;;  %v2294_v31 = vpop.f32.mrf.mxu0 }
 0x2a4   : > { %v2203_v51 = vpop.f32.mrf.mxu3  ;;  %v7798_v56 = vpop.f32.mrf.mxu1 }
 0x2a5   : > { %v2204_v16 = vadd.f32 %v2203_v51, %v2114_v26 }
 0x2a7   : > { %v2293_v43 = vadd.f32 %v2292_v53, %v2204_v16  ;;  %v5839_v53 = vld [vmem:[%s8721_s1 + $0x368] sm:$0xf0]  ;;  %v5965_v16 = vld [vmem:[%s8721_s1 + $0x460] sm:$0xf] }
 0x2a9   : > { %v7803_v54 = vadd.f32 %v2293_v43, %v7253_v4  ;;  %v2116_v19 = vpop.f32.mrf.mxu2  ;;  %v6234_v4 = vld [vmem:[%s8721_s1 + $0x364] sm:$0xf] }
 0x2ab   : > { %8807 = vst [vmem:[#allocation70_spill] sm:$0xff] %v7803_v54  ;;  %v2297_v15 = vpop.f32.mrf.mxu0 }
 0x2ac   : > { %v2205_v42 = vpop.f32.mrf.mxu3  ;;  %v7811_v26 = vpop.f32.mrf.mxu1 }
 0x2ad   : > { %v2206_v46 = vadd.f32 %v2205_v42, %v2116_v19  ;;  %v6250_v42 = vld [vmem:[%s8721_s1 + $0x3e4] sm:$0xf] }
 0x2ae   : > { %2434 = vmatmul.bf16.vlgmr.msrb.gmra.mxu2 %v7268_v29  ;;  %3414 = vmatmul.bf16.vlgmr.msrb.gmra.mxu0 %v7807_v0 }
 0x2af   : > { %v2295_v51 = vadd.f32 %v2294_v31, %v2206_v46  ;;  %3503 = vmatmul.bf16.vlgmr.msrb.gmra.mxu1 %v7809_v50  ;;  %v5842_v31 = vor.u32 %v6234_v4, %v5839_v53  ;;  %v5903_v46 = vld [vmem:[%s8721_s1 + $0x3e8] sm:$0xf0] }
 0x2b0   : > { %v5906_v4 = vor.u32 %v6250_v42, %v5903_v46  ;;  %v5967_v53 = vld [vmem:[%s8721_s1 + $0x468] sm:$0xf0] }
 0x2b1   : > { %2523 = vmatmul.bf16.vlgmr.msrb.gmra.mxu3 %v7266_v60  ;;  %v7827_v29 = vadd.f32 %v2295_v51, %v7264_v37  ;;  %v6267_v60 = vld [vmem:[%s8721_s1 + $0x464] sm:$0xf0]  ;;  %v2119_v43 = vpop.f32.mrf.mxu2  ;;  %v6266_v51 = vld [vmem:[%s8721_s1 + $0x464] sm:$0xf] }
 0x2b2   : > { %v5966_v39 = vor.u32 %v6267_v60, %v5965_v16  ;;  %3674 = vmatpush.bf16.msra.mxu3 %v5842_v31  ;;  %v5609_v16 = vld [vmem:[%s6475_s10 + $0x48] sm:$0xf]  ;;  %v6178_v31 = vld [vmem:[%s6475_s10 + $0x50] sm:$0xf0]  ;;  %3763 = vmatpush.bf16.msra.mxu0 %v5906_v4 }
 0x2b3   : > { %8808 = vst [vmem:[#allocation71_spill] sm:$0xff] %v7827_v29  ;;  %v2299_v48 = vpop.f32.mrf.mxu0  ;;  %v7853_v29 = vor.u32 %v6178_v31, %v5609_v16 }
 0x2b4   : > { %v2208_v59 = vpop.f32.mrf.mxu3  ;;  %3585 = vmatpush.bf16.msra.mxu2 %v5966_v39  ;;  %v7832_v19 = vpop.f32.mrf.mxu1  ;;  %v5611_v39 = vld [vmem:[%s6475_s10 + $0x54] sm:$0xf0] }
 0x2b5   : > { %v2209_v55 = vadd.f32 %v2208_v59, %v2119_v43  ;;  %v6177_v43 = vld [vmem:[%s6475_s10 + $0x4c] sm:$0xf] }
 0x2b6   : > { %v7855_v46 = vor.u32 %v6177_v43, %v5611_v39  ;;  %v6180_v43 = vld [vmem:[%s6475_s10 + $0x64] sm:$0xf]  ;;  %v5623_v39 = vld [vmem:[%s6475_s10 + $0x6c] sm:$0xf0] }
 0x2b7   : > { %v2298_v37 = vadd.f32 %v2297_v15, %v2209_v55  ;;  %v5970_v15 = vor.u32 %v6266_v51, %v5967_v53 }
 0x2b9   : > { %v7849_v60 = vadd.f32 %v2298_v37, %v7287_v35  ;;  %v2121_v59 = vpop.f32.mrf.mxu2  ;;  %3852 = vmatpush.bf16.msra.mxu1 %v5970_v15 }
 0x2bb   : > { %8809 = vst [vmem:[#allocation72_spill] sm:$0xff] %v7849_v60  ;;  %v2302_v42 = vpop.f32.mrf.mxu0 }
 0x2bc   : > { %v2210_v55 = vpop.f32.mrf.mxu3  ;;  %v7857_v8 = vpop.f32.mrf.mxu1 }
 0x2bd   : > { %v2211_v54 = vadd.f32 %v2210_v55, %v2121_v59 }
 0x2be   : > { %2439 = vmatmul.bf16.gmra.mxu2 %v7314_v57  ;;  %3419 = vmatmul.bf16.gmra.mxu0 %v7853_v29 }
 0x2bf   : > { %v2300_v51 = vadd.f32 %v2299_v48, %v2211_v54  ;;  %3508 = vmatmul.bf16.gmra.mxu1 %v7855_v46  ;;  %v5621_v54 = vld [vmem:[%s6475_s10 + $0x60] sm:$0xf]  ;;  %v6181_v48 = vld [vmem:[%s6475_s10 + $0x68] sm:$0xf0] }
 0x2c0   : > { %v7875_v55 = vor.u32 %v6181_v48, %v5621_v54 }
 0x2c1   : > { %2528 = vmatmul.bf16.gmra.mxu3 %v7312_v5  ;;  %v7864_v35 = vadd.f32 %v2300_v51, %v7310_v27  ;;  %v2124_v37 = vpop.f32.mrf.mxu2 }
 0x2c3   : > { %8810 = vst [vmem:[#allocation73_spill] sm:$0xff] %v7864_v35  ;;  %v2304_v16 = vpop.f32.mrf.mxu0  ;;  %v7877_v35 = vor.u32 %v6180_v43, %v5623_v39 }
 0x2c4   : > { %v2213_v4 = vpop.f32.mrf.mxu3  ;;  %v7866_v31 = vpop.f32.mrf.mxu1 }
 0x2c5   : > { %v2214_v53 = vadd.f32 %v2213_v4, %v2124_v37 }
 0x2c7   : > { %v2303_v15 = vadd.f32 %v2302_v42, %v2214_v53  ;;  %v5831_v42 = vld [vmem:[%s8721_s1 + $0x358] sm:$0xf0]  ;;  %v5957_v53 = vld [vmem:[%s8721_s1 + $0x450] sm:$0xf] }
 0x2c9   : > { %v7871_v57 = vadd.f32 %v2303_v15, %v7321_v25  ;;  %v2126_v5 = vpop.f32.mrf.mxu2  ;;  %v6232_v25 = vld [vmem:[%s8721_s1 + $0x354] sm:$0xf] }
 0x2cb   : > { %8811 = vst [vmem:[#allocation74_spill] sm:$0xff] %v7871_v57  ;;  %v2307_v51 = vpop.f32.mrf.mxu0 }
 0x2cc   : > { %v2215_v59 = vpop.f32.mrf.mxu3  ;;  %v7879_v37 = vpop.f32.mrf.mxu1 }
 0x2cd   : > { %v2216_v27 = vadd.f32 %v2215_v59, %v2126_v5  ;;  %v6248_v59 = vld [vmem:[%s8721_s1 + $0x3d4] sm:$0xf] }
 0x2ce   : > { %2444 = vmatmul.bf16.gmra.mxu2 %v7336_v63  ;;  %3424 = vmatmul.bf16.gmra.mxu0 %v7875_v55 }
 0x2cf   : > { %v2305_v4 = vadd.f32 %v2304_v16, %v2216_v27  ;;  %3513 = vmatmul.bf16.gmra.mxu1 %v7877_v35  ;;  %v5834_v16 = vor.u32 %v6232_v25, %v5831_v42  ;;  %v5895_v27 = vld [vmem:[%s8721_s1 + $0x3d8] sm:$0xf0] }
 0x2d0   : > { %v5898_v25 = vor.u32 %v6248_v59, %v5895_v27  ;;  %v5959_v42 = vld [vmem:[%s8721_s1 + $0x458] sm:$0xf0] }
 0x2d1   : > { %2533 = vmatmul.bf16.gmra.mxu3 %v7334_v45  ;;  %v7895_v63 = vadd.f32 %v2305_v4, %v7332_v12  ;;  %v6265_v45 = vld [vmem:[%s8721_s1 + $0x454] sm:$0xf0]  ;;  %v2129_v15 = vpop.f32.mrf.mxu2  ;;  %v6264_v4 = vld [vmem:[%s8721_s1 + $0x454] sm:$0xf] }
 0x2d2   : > { %v5958_v54 = vor.u32 %v6265_v45, %v5957_v53  ;;  %3675 = vmatpush.bf16.msra.mxu3 %v5834_v16  ;;  %v5633_v53 = vld [vmem:[%s6475_s10 + $0x78] sm:$0xf]  ;;  %v6184_v16 = vld [vmem:[%s6475_s10 + $0x80] sm:$0xf0]  ;;  %3764 = vmatpush.bf16.msra.mxu0 %v5898_v25 }
 0x2d3   : > { %8812 = vst [vmem:[#allocation75_spill] sm:$0xff] %v7895_v63  ;;  %v2309_v39 = vpop.f32.mrf.mxu0  ;;  %v7921_v63 = vor.u32 %v6184_v16, %v5633_v53 }
 0x2d4   : > { %v2218_v48 = vpop.f32.mrf.mxu3  ;;  %3586 = vmatpush.bf16.msra.mxu2 %v5958_v54  ;;  %v7900_v5 = vpop.f32.mrf.mxu1  ;;  %v5635_v54 = vld [vmem:[%s6475_s10 + $0x84] sm:$0xf0] }
 0x2d5   : > { %v2219_v43 = vadd.f32 %v2218_v48, %v2129_v15  ;;  %v6183_v15 = vld [vmem:[%s6475_s10 + $0x7c] sm:$0xf] }
 0x2d6   : > { %v7923_v27 = vor.u32 %v6183_v15, %v5635_v54  ;;  %v6186_v15 = vld [vmem:[%s6475_s10 + $0x94] sm:$0xf]  ;;  %v5647_v54 = vld [vmem:[%s6475_s10 + $0x9c] sm:$0xf0] }
 0x2d7   : > { %v2308_v12 = vadd.f32 %v2307_v51, %v2219_v43  ;;  %v5962_v51 = vor.u32 %v6264_v4, %v5959_v42 }
 0x2d9   : > { %v7917_v45 = vadd.f32 %v2308_v12, %v7355_v21  ;;  %v2131_v48 = vpop.f32.mrf.mxu2  ;;  %3853 = vmatpush.bf16.msra.mxu1 %v5962_v51 }
 0x2db   : > { %8813 = vst [vmem:[#allocation76_spill] sm:$0xff] %v7917_v45  ;;  %v2312_v59 = vpop.f32.mrf.mxu0 }
 0x2dc   : > { %v2220_v43 = vpop.f32.mrf.mxu3  ;;  %v7925_v60 = vpop.f32.mrf.mxu1 }
 0x2dd   : > { %v2221_v57 = vadd.f32 %v2220_v43, %v2131_v48 }
 0x2de   : > { %2449 = vmatmul.bf16.gmra.mxu2 %v7382_v1  ;;  %3429 = vmatmul.bf16.gmra.mxu0 %v7921_v63 }
 0x2df   : > { %v2310_v4 = vadd.f32 %v2309_v39, %v2221_v57  ;;  %3518 = vmatmul.bf16.gmra.mxu1 %v7923_v27  ;;  %v5645_v57 = vld [vmem:[%s6475_s10 + $0x90] sm:$0xf]  ;;  %v6187_v39 = vld [vmem:[%s6475_s10 + $0x98] sm:$0xf0] }
 0x2e0   : > { %v7943_v43 = vor.u32 %v6187_v39, %v5645_v57 }
 0x2e1   : > { %2538 = vmatmul.bf16.gmra.mxu3 %v7380_v62  ;;  %v7932_v21 = vadd.f32 %v2310_v4, %v7378_v32  ;;  %v2134_v12 = vpop.f32.mrf.mxu2 }
 0x2e3   : > { %8814 = vst [vmem:[#allocation77_spill] sm:$0xff] %v7932_v21  ;;  %v2314_v53 = vpop.f32.mrf.mxu0  ;;  %v7945_v21 = vor.u32 %v6186_v15, %v5647_v54 }
 0x2e4   : > { %v2223_v25 = vpop.f32.mrf.mxu3  ;;  %v7934_v16 = vpop.f32.mrf.mxu1 }
 0x2e5   : > { %v2224_v42 = vadd.f32 %v2223_v25, %v2134_v12 }
 0x2e7   : > { %v2313_v51 = vadd.f32 %v2312_v59, %v2224_v42  ;;  %v5823_v59 = vld [vmem:[%s8721_s1 + $0x348] sm:$0xf0]  ;;  %v5949_v42 = vld [vmem:[%s8721_s1 + $0x440] sm:$0xf] }
 0x2e9   : > { %v7939_v1 = vadd.f32 %v2313_v51, %v7389_v20  ;;  %v2136_v62 = vpop.f32.mrf.mxu2  ;;  %v6230_v20 = vld [vmem:[%s8721_s1 + $0x344] sm:$0xf] }
 0x2eb   : > { %8815 = vst [vmem:[#allocation78_spill] sm:$0xff] %v7939_v1  ;;  %v2317_v4 = vpop.f32.mrf.mxu0 }
 0x2ec   : > { %v2225_v48 = vpop.f32.mrf.mxu3  ;;  %v7947_v12 = vpop.f32.mrf.mxu1 }
 0x2ed   : > { %v2226_v32 = vadd.f32 %v2225_v48, %v2136_v62  ;;  %v6246_v48 = vld [vmem:[%s8721_s1 + $0x3c4] sm:$0xf] }
 0x2ee   : > { %2454 = vmatmul.bf16.gmra.mxu2 %v7404_v33  ;;  %3434 = vmatmul.bf16.gmra.mxu0 %v7943_v43 }
 0x2ef   : > { %v2315_v25 = vadd.f32 %v2314_v53, %v2226_v32  ;;  %3523 = vmatmul.bf16.gmra.mxu1 %v7945_v21  ;;  %v5826_v53 = vor.u32 %v6230_v20, %v5823_v59  ;;  %v5887_v32 = vld [vmem:[%s8721_s1 + $0x3c8] sm:$0xf0] }
 0x2f0   : > { %v5890_v20 = vor.u32 %v6246_v48, %v5887_v32  ;;  %v5951_v59 = vld [vmem:[%s8721_s1 + $0x448] sm:$0xf0] }
 0x2f1   : > { %2543 = vmatmul.bf16.gmra.mxu3 %v7402_v40  ;;  %v7963_v33 = vadd.f32 %v2315_v25, %v7400_v38  ;;  %v6263_v40 = vld [vmem:[%s8721_s1 + $0x444] sm:$0xf0]  ;;  %v2139_v51 = vpop.f32.mrf.mxu2  ;;  %v6262_v25 = vld [vmem:[%s8721_s1 + $0x444] sm:$0xf] }
 0x2f2   : > { %v5950_v57 = vor.u32 %v6263_v40, %v5949_v42  ;;  %3676 = vmatpush.bf16.msra.mxu3 %v5826_v53  ;;  %v5657_v42 = vld [vmem:[%s6475_s10 + $0xa8] sm:$0xf]  ;;  %v6190_v53 = vld [vmem:[%s6475_s10 + $0xb0] sm:$0xf0]  ;;  %3765 = vmatpush.bf16.msra.mxu0 %v5890_v20 }
 0x2f3   : > { %8816 = vst [vmem:[#allocation79_spill] sm:$0xff] %v7963_v33  ;;  %v2319_v54 = vpop.f32.mrf.mxu0  ;;  %v7989_v33 = vor.u32 %v6190_v53, %v5657_v42 }
 0x2f4   : > { %v2228_v39 = vpop.f32.mrf.mxu3  ;;  %3587 = vmatpush.bf16.msra.mxu2 %v5950_v57  ;;  %v7968_v62 = vpop.f32.mrf.mxu1  ;;  %v5659_v57 = vld [vmem:[%s6475_s10 + $0xb4] sm:$0xf0] }
 0x2f5   : > { %v2229_v15 = vadd.f32 %v2228_v39, %v2139_v51  ;;  %v6189_v51 = vld [vmem:[%s6475_s10 + $0xac] sm:$0xf] }
 0x2f6   : > { %v7991_v32 = vor.u32 %v6189_v51, %v5659_v57  ;;  %v6192_v51 = vld [vmem:[%s6475_s10 + $0xc4] sm:$0xf]  ;;  %v5671_v57 = vld [vmem:[%s6475_s10 + $0xcc] sm:$0xf0] }
 0x2f7   : > { %v2318_v38 = vadd.f32 %v2317_v4, %v2229_v15  ;;  %v5954_v4 = vor.u32 %v6262_v25, %v5951_v59 }
 0x2f9   : > { %v7985_v40 = vadd.f32 %v2318_v38, %v7423_v41  ;;  %v2141_v39 = vpop.f32.mrf.mxu2  ;;  %3854 = vmatpush.bf16.msra.mxu1 %v5954_v4 }
 0x2fb   : > { %8817 = vst [vmem:[#allocation80_spill] sm:$0xff] %v7985_v40  ;;  %v2322_v48 = vpop.f32.mrf.mxu0 }
 0x2fc   : > { %v2230_v15 = vpop.f32.mrf.mxu3  ;;  %v7993_v45 = vpop.f32.mrf.mxu1 }
 0x2fd   : > { %v2231_v1 = vadd.f32 %v2230_v15, %v2141_v39 }
 0x2fe   : > { %2459 = vmatmul.bf16.gmra.mxu2 %v7450_v52  ;;  %3439 = vmatmul.bf16.gmra.mxu0 %v7989_v33 }
 0x2ff   : > { %v2320_v25 = vadd.f32 %v2319_v54, %v2231_v1  ;;  %3528 = vmatmul.bf16.gmra.mxu1 %v7991_v32  ;;  %v5669_v1 = vld [vmem:[%s6475_s10 + $0xc0] sm:$0xf]  ;;  %v6193_v54 = vld [vmem:[%s6475_s10 + $0xc8] sm:$0xf0] }
 0x300   : > { %v8011_v15 = vor.u32 %v6193_v54, %v5669_v1 }
 0x301   : > { %2548 = vmatmul.bf16.gmra.mxu3 %v7448_v24  ;;  %v8000_v41 = vadd.f32 %v2320_v25, %v7446_v23  ;;  %v2144_v38 = vpop.f32.mrf.mxu2 }
 0x303   : > { %8818 = vst [vmem:[#allocation81_spill] sm:$0xff] %v8000_v41  ;;  %v2324_v42 = vpop.f32.mrf.mxu0  ;;  %v8013_v41 = vor.u32 %v6192_v51, %v5671_v57 }
 0x304   : > { %v2233_v20 = vpop.f32.mrf.mxu3  ;;  %v8002_v53 = vpop.f32.mrf.mxu1 }
 0x305   : > { %v2234_v59 = vadd.f32 %v2233_v20, %v2144_v38 }
 0x307   : > { %v2323_v4 = vadd.f32 %v2322_v48, %v2234_v59  ;;  %v5815_v48 = vld [vmem:[%s8721_s1 + $0x338] sm:$0xf0]  ;;  %v5941_v59 = vld [vmem:[%s8721_s1 + $0x430] sm:$0xf] }
 0x309   : > { %v8007_v52 = vadd.f32 %v2323_v4, %v7457_v10  ;;  %v2146_v24 = vpop.f32.mrf.mxu2  ;;  %v6228_v10 = vld [vmem:[%s8721_s1 + $0x334] sm:$0xf]  ;;  %v6261_v4 = vld [vmem:[%s8721_s1 + $0x434] sm:$0xf0] }
 0x30a   : > { %v5942_v54 = vor.u32 %v6261_v4, %v5941_v59  ;;  %v5681_v59 = vld [vmem:[%s6475_s10 + $0xd8] sm:$0xf]  ;;  %v5943_v4 = vld [vmem:[%s8721_s1 + $0x438] sm:$0xf0] }
 0x30b   : > { %8819 = vst [vmem:[#allocation82_spill] sm:$0xff] %v8007_v52  ;;  %v2327_v25 = vpop.f32.mrf.mxu0 }
 0x30c   : > { %v2235_v39 = vpop.f32.mrf.mxu3  ;;  %v8015_v38 = vpop.f32.mrf.mxu1  ;;  %3588 = vmatpush.bf16.msra.mxu2 %v5942_v54  ;;  %v6195_v54 = vld [vmem:[%s6475_s10 + $0xdc] sm:$0xf] }
 0x30d   : > { %v2236_v23 = vadd.f32 %v2235_v39, %v2146_v24 }
 0x30e   : > { %2464 = vmatmul.bf16.gmra.mxu2 %v7472_v3  ;;  %3444 = vmatmul.bf16.gmra.mxu0 %v8011_v15 }
 0x30f   : > { %v2325_v20 = vadd.f32 %v2324_v42, %v2236_v23  ;;  %3533 = vmatmul.bf16.gmra.mxu1 %v8013_v41  ;;  %v8820_v42 = vld [vmem:[#allocation30_spill] sm:$0xff] }
 0x311   : > { %2553 = vmatmul.bf16.gmra.mxu3 %v7470_v58  ;;  %v8031_v3 = vadd.f32 %v2325_v20, %v8820_v42  ;;  %v5818_v58 = vor.u32 %v6228_v10, %v5815_v48  ;;  %v2149_v1 = vpop.f32.mrf.mxu2  ;;  %v6244_v20 = vld [vmem:[%s8721_s1 + $0x3b4] sm:$0xf]  ;;  %v5879_v10 = vld [vmem:[%s8721_s1 + $0x3b8] sm:$0xf0]  ;;  %v6196_v42 = vld [vmem:[%s6475_s10 + $0xe0] sm:$0xf0] }
 0x312   : > { %v6260_v48 = vld [vmem:[%s8721_s1 + $0x434] sm:$0xf]  ;;  %v8057_v40 = vor.u32 %v6196_v42, %v5681_v59 }
 0x313   : > { %8821 = vst [vmem:[#allocation30_spill] sm:$0xff] %v8031_v3  ;;  %3677 = vmatpush.bf16.msra.mxu3 %v5818_v58  ;;  %v2329_v24 = vpop.f32.mrf.mxu0  ;;  %v5882_v58 = vor.u32 %v6244_v20, %v5879_v10 }
 0x314   : > { %v2238_v51 = vpop.f32.mrf.mxu3  ;;  %v8036_v39 = vpop.f32.mrf.mxu1 }
 0x315   : > { %v2239_v57 = vadd.f32 %v2238_v51, %v2149_v1  ;;  %8822 = vst [vmem:[#allocation83_spill] sm:$0xff] %v8036_v39  ;;  %v5683_v51 = vld [vmem:[%s6475_s10 + $0xe4] sm:$0xf0]  ;;  %3766 = vmatpush.bf16.msra.mxu0 %v5882_v58 }
 0x316   : > { %v8059_v20 = vor.u32 %v6195_v54, %v5683_v51  ;;  %v6198_v54 = vld [vmem:[%s6475_s10 + $0xf4] sm:$0xf]  ;;  %v5695_v51 = vld [vmem:[%s6475_s10 + $0xfc] sm:$0xf0] }
 0x317   : > { %v2328_v23 = vadd.f32 %v2327_v25, %v2239_v57  ;;  %v8823_v25 = vld [vmem:[#allocation32_spill] sm:$0xff]  ;;  %v5946_v57 = vor.u32 %v6260_v48, %v5943_v4  ;;  %v8826_v48 = vld [vmem:[#allocation34_spill] sm:$0xff] }
 0x319   : > { %v8053_v1 = vadd.f32 %v2328_v23, %v8823_v25  ;;  %v2151_v3 = vpop.f32.mrf.mxu2  ;;  %3855 = vmatpush.bf16.msra.mxu1 %v5946_v57 }
 0x31b   : > { %8824 = vst [vmem:[#allocation32_spill] sm:$0xff] %v8053_v1  ;;  %v2332_v39 = vpop.f32.mrf.mxu0 }
 0x31c   : > { %v2240_v52 = vpop.f32.mrf.mxu3  ;;  %v8061_v10 = vpop.f32.mrf.mxu1 }
 0x31d   : > { %v2241_v30 = vadd.f32 %v2240_v52, %v2151_v3  ;;  %8825 = vst [vmem:[#allocation84_spill] sm:$0xff] %v8061_v10 }
 0x31e   : > { %2469 = vmatmul.bf16.gmra.mxu2 %v7518_v6  ;;  %3449 = vmatmul.bf16.gmra.mxu0 %v8057_v40 }
 0x31f   : > { %v2330_v23 = vadd.f32 %v2329_v24, %v2241_v30  ;;  %3538 = vmatmul.bf16.gmra.mxu1 %v8059_v20  ;;  %v5693_v30 = vld [vmem:[%s6475_s10 + $0xf0] sm:$0xf]  ;;  %v6199_v24 = vld [vmem:[%s6475_s10 + $0xf8] sm:$0xf0] }
 0x320   : > { %v8079_v1 = vor.u32 %v6199_v24, %v5693_v30  ;;  %v8834_v30 = vld [vmem:[#allocation37_spill] sm:$0xff] }
 0x321   : > { %2558 = vmatmul.bf16.gmra.mxu3 %v7516_v36  ;;  %v8068_v52 = vadd.f32 %v2330_v23, %v8826_v48  ;;  %v2154_v3 = vpop.f32.mrf.mxu2 }
 0x322   : > { %8829 = vst [vmem:[#allocation86_spill] sm:$0xff] %v8079_v1 }
 0x323   : > { %8827 = vst [vmem:[#allocation34_spill] sm:$0xff] %v8068_v52  ;;  %v2334_v58 = vpop.f32.mrf.mxu0  ;;  %v8081_v52 = vor.u32 %v6198_v54, %v5695_v51  ;;  %v6259_v51 = vld [vmem:[%s8721_s1 + $0x424] sm:$0xf0] }
 0x324   : > { %v2243_v59 = vpop.f32.mrf.mxu3  ;;  %v8070_v4 = vpop.f32.mrf.mxu1 }
 0x325   : > { %v2244_v42 = vadd.f32 %v2243_v59, %v2154_v3  ;;  %8830 = vst [vmem:[#allocation87_spill] sm:$0xff] %v8081_v52 }
 0x327   : > { %v2333_v25 = vadd.f32 %v2332_v39, %v2244_v42  ;;  %v8832_v39 = vld [vmem:[#allocation39_spill] sm:$0xff] }
 0x328   : > { %v6226_v42 = vld [vmem:[%s8721_s1 + $0x324] sm:$0xf] }
 0x329   : > { %v8075_v6 = vadd.f32 %v2333_v25, %v7525_v22  ;;  %v2156_v36 = vpop.f32.mrf.mxu2  ;;  %v8833_v22 = vld [vmem:[#allocation38_spill] sm:$0xff]  ;;  %v5807_v25 = vld [vmem:[%s8721_s1 + $0x328] sm:$0xf0] }
 0x32a   : > { %v5810_v54 = vor.u32 %v6226_v42, %v5807_v25  ;;  %v8838_v42 = vld [vmem:[#allocation3_spill] sm:$0xff] }
 0x32b   : > { %8828 = vst [vmem:[#allocation85_spill] sm:$0xff] %v8075_v6  ;;  %v3415_v48 = vpop.f32.mrf.mxu0 }
 0x32c   : > { %v2245_v57 = vpop.f32.mrf.mxu3  ;;  %v3504_v3 = vpop.f32.mrf.mxu1  ;;  %3678 = vmatpush.bf16.msra.mxu3 %v5810_v54  ;;  %v6258_v54 = vld [vmem:[%s8721_s1 + $0x424] sm:$0xf] }
 0x32d   : > { %v2246_v23 = vadd.f32 %v2245_v57, %v2156_v36  ;;  %v8083_v10 = vadd.f32 %v3504_v3, %v3415_v48 }
 0x32e   : > { %2474 = vmatmul.bf16.gmra.mxu2 %v8832_v39  ;;  %3454 = vmatmul.bf16.gmra.mxu0 %v8079_v1 }
 0x32f   : > { %v2335_v59 = vadd.f32 %v2334_v58, %v2246_v23  ;;  %8831 = vst [vmem:[#allocation88_spill] sm:$0xff] %v8083_v10  ;;  %3543 = vmatmul.bf16.gmra.mxu1 %v8081_v52  ;;  %v5933_v58 = vld [vmem:[%s8721_s1 + $0x420] sm:$0xf]  ;;  %v8836_v23 = vld [vmem:[#allocation40_spill] sm:$0xff] }
 0x330   : > { %v5934_v57 = vor.u32 %v6259_v51, %v5933_v58  ;;  %v5871_v58 = vld [vmem:[%s8721_s1 + $0x3a8] sm:$0xf0]  ;;  %v5705_v51 = vld [vmem:[%s6475_s10 + $0x108] sm:$0xf] }
 0x331   : > { %2563 = vmatmul.bf16.gmra.mxu3 %v8833_v22  ;;  %v8099_v24 = vadd.f32 %v2335_v59, %v8834_v30  ;;  %v2435_v36 = vpop.f32.mrf.mxu2  ;;  %v8842_v52 = vld [vmem:[#allocation4_spill] sm:$0xff] }
 0x332   : > { %v2436_v48 = vadd.f32 %v2435_v36, %v8836_v23  ;;  %3589 = vmatpush.bf16.msra.mxu2 %v5934_v57  ;;  %v6202_v36 = vld [vmem:[%s6475_s10 + $0x110] sm:$0xf0]  ;;  %v5935_v23 = vld [vmem:[%s8721_s1 + $0x428] sm:$0xf0] }
 0x333   : > { %8835 = vst [vmem:[#allocation39_spill] sm:$0xff] %v8099_v24  ;;  %v3417_v39 = vpop.f32.mrf.mxu0  ;;  %v6242_v24 = vld [vmem:[%s8721_s1 + $0x3a4] sm:$0xf] }
 0x334   : > { %v2524_v3 = vpop.f32.mrf.mxu3  ;;  %v3506_v59 = vpop.f32.mrf.mxu1  ;;  %v5874_v57 = vor.u32 %v6242_v24, %v5871_v58 }
 0x335   : > { %v2525_v22 = vadd.f32 %v2524_v3, %v2436_v48  ;;  %v8105_v30 = vadd.f32 %v3506_v59, %v3417_v39  ;;  %v6201_v48 = vld [vmem:[%s6475_s10 + $0x10c] sm:$0xf]  ;;  %v5707_v3 = vld [vmem:[%s6475_s10 + $0x114] sm:$0xf0]  ;;  %v5938_v39 = vor.u32 %v6258_v54, %v5935_v23 }
 0x336   : > { %3767 = vmatpush.bf16.msra.mxu0 %v5874_v57  ;;  %v8840_v59 = vld [vmem:[#allocation42_spill] sm:$0xff]  ;;  %v8129_v10 = vor.u32 %v6201_v48, %v5707_v3  ;;  %v5717_v3 = vld [vmem:[%s6475_s10 + $0x120] sm:$0xf] }
 0x337   : > { %8837 = vst [vmem:[#allocation38_spill] sm:$0xff] %v8105_v30  ;;  %v8108_v25 = vadd.f32 %v2525_v22, %v8838_v42  ;;  %v8127_v30 = vor.u32 %v6202_v36, %v5705_v51  ;;  %3856 = vmatpush.bf16.msra.mxu1 %v5938_v39  ;;  %v6204_v39 = vld [vmem:[%s6475_s10 + $0x124] sm:$0xf] }
 0x339   : > { %8839 = vst [vmem:[#allocation37_spill] sm:$0xff] %v8108_v25  ;;  %v2437_v22 = vpop.f32.mrf.mxu2 }
 0x33a   : > { %v2438_v42 = vadd.f32 %v2437_v22, %v8840_v59  ;;  %v5719_v22 = vld [vmem:[%s6475_s10 + $0x12c] sm:$0xf0] }
 0x33b   : > { %v3420_v25 = vpop.f32.mrf.mxu0 }
 0x33c   : > { %v2526_v6 = vpop.f32.mrf.mxu3  ;;  %v3509_v24 = vpop.f32.mrf.mxu1 }
 0x33d   : > { %v2527_v1 = vadd.f32 %v2526_v6, %v2438_v42  ;;  %v8131_v58 = vadd.f32 %v3509_v24, %v3420_v25 }
 0x33e   : > { %2479 = vmatmul.bf16.gmra.mxu2 %v7585_v17  ;;  %3459 = vmatmul.bf16.gmra.mxu0 %v8127_v30  ;;  %v6205_v17 = vld [vmem:[%s6475_s10 + $0x128] sm:$0xf0] }
 0x33f   : > { %8841 = vst [vmem:[#allocation40_spill] sm:$0xff] %v8131_v58  ;;  %v8134_v54 = vadd.f32 %v2527_v1, %v8842_v52  ;;  %3548 = vmatmul.bf16.gmra.mxu1 %v8129_v10  ;;  %v8844_v1 = vld [vmem:[#allocation5_spill] sm:$0xff]  ;;  %v8151_v58 = vor.u32 %v6205_v17, %v5717_v3  ;;  %v5799_v17 = vld [vmem:[%s8721_s1 + $0x318] sm:$0xf0] }
 0x340   : > { %v6224_v3 = vld [vmem:[%s8721_s1 + $0x314] sm:$0xf] }
 0x341   : > { %2568 = vmatmul.bf16.gmra.mxu3 %v7583_v28  ;;  %v2440_v51 = vpop.f32.mrf.mxu2  ;;  %v8845_v28 = vld [vmem:[#allocation45_spill] sm:$0xff]  ;;  %8846 = vst [vmem:[#allocation42_spill] sm:$0xff] %v8151_v58 }
 0x342   : > { %v2441_v6 = vadd.f32 %v2440_v51, %v7587_v9  ;;  %v8153_v51 = vor.u32 %v6204_v39, %v5719_v22  ;;  %v5925_v39 = vld [vmem:[%s8721_s1 + $0x410] sm:$0xf]  ;;  %v5802_v22 = vor.u32 %v6224_v3, %v5799_v17  ;;  %v8854_v3 = vld [vmem:[#allocation7_spill] sm:$0xff] }
 0x343   : > { %v3422_v57 = vpop.f32.mrf.mxu0 }
 0x344   : > { %v2529_v36 = vpop.f32.mrf.mxu3  ;;  %v3511_v23 = vpop.f32.mrf.mxu1  ;;  %8847 = vst [vmem:[#allocation4_spill] sm:$0xff] %v8153_v51  ;;  %3679 = vmatpush.bf16.msra.mxu3 %v5802_v22  ;;  %v6256_v22 = vld [vmem:[%s8721_s1 + $0x414] sm:$0xf] }
 0x345   : > { %v2530_v25 = vadd.f32 %v2529_v36, %v2441_v6  ;;  %v8141_v48 = vadd.f32 %v3511_v23, %v3422_v57  ;;  %v8849_v23 = vld [vmem:[#allocation6_spill] sm:$0xff] }
 0x347   : > { %8843 = vst [vmem:[#allocation3_spill] sm:$0xff] %v8141_v48  ;;  %v8144_v52 = vadd.f32 %v2530_v25, %v8844_v1  ;;  %v8851_v1 = vld [vmem:[#allocation47_spill] sm:$0xff]  ;;  %v8858_v48 = vld [vmem:[#allocation8_spill] sm:$0xff] }
 0x349   : > { %v2442_v59 = vpop.f32.mrf.mxu2 }
 0x34a   : > { %v2443_v42 = vadd.f32 %v2442_v59, %v8845_v28 }
 0x34b   : > { %v3425_v9 = vpop.f32.mrf.mxu0 }
 0x34c   : > { %v2531_v24 = vpop.f32.mrf.mxu3  ;;  %v3514_v36 = vpop.f32.mrf.mxu1 }
 0x34d   : > { %v2532_v6 = vadd.f32 %v2531_v24, %v2443_v42  ;;  %v8155_v57 = vadd.f32 %v3514_v36, %v3425_v9  ;;  %v8852_v42 = vld [vmem:[#allocation48_spill] sm:$0xff] }
 0x34e   : > { %2484 = vmatmul.bf16.gmra.mxu2 %v7607_v47  ;;  %3464 = vmatmul.bf16.gmra.mxu0 %v8151_v58  ;;  %v6257_v47 = vld [vmem:[%s8721_s1 + $0x414] sm:$0xf0] }
 0x34f   : > { %8848 = vst [vmem:[#allocation5_spill] sm:$0xff] %v8155_v57  ;;  %v8158_v25 = vadd.f32 %v2532_v6, %v8849_v23  ;;  %3553 = vmatmul.bf16.gmra.mxu1 %v8153_v51  ;;  %v5926_v28 = vor.u32 %v6257_v47, %v5925_v39  ;;  %v6240_v57 = vld [vmem:[%s8721_s1 + $0x394] sm:$0xf]  ;;  %v5863_v39 = vld [vmem:[%s8721_s1 + $0x398] sm:$0xf0] }
 0x350   : > { %v5729_v47 = vld [vmem:[%s6475_s10 + $0x138] sm:$0xf] }
 0x351   : > { %8850 = vst [vmem:[#allocation45_spill] sm:$0xff] %v8158_v25  ;;  %2573 = vmatmul.bf16.gmra.mxu3 %v8851_v1  ;;  %v2445_v59 = vpop.f32.mrf.mxu2  ;;  %3590 = vmatpush.bf16.msra.mxu2 %v5926_v28  ;;  %v5866_v28 = vor.u32 %v6240_v57, %v5863_v39 }
 0x352   : > { %v2446_v24 = vadd.f32 %v2445_v59, %v8852_v42  ;;  %v6208_v59 = vld [vmem:[%s6475_s10 + $0x140] sm:$0xf0]  ;;  %v5927_v42 = vld [vmem:[%s8721_s1 + $0x418] sm:$0xf0] }
 0x353   : > { %v3427_v6 = vpop.f32.mrf.mxu0  ;;  %3768 = vmatpush.bf16.msra.mxu0 %v5866_v28 }
 0x354   : > { %v2534_v9 = vpop.f32.mrf.mxu3  ;;  %v3516_v23 = vpop.f32.mrf.mxu1 }
 0x355   : > { %v2535_v36 = vadd.f32 %v2534_v9, %v2446_v24  ;;  %v8177_v1 = vadd.f32 %v3516_v23, %v3427_v6  ;;  %v6207_v24 = vld [vmem:[%s6475_s10 + $0x13c] sm:$0xf]  ;;  %v5731_v9 = vld [vmem:[%s6475_s10 + $0x144] sm:$0xf0]  ;;  %v5930_v6 = vor.u32 %v6256_v22, %v5927_v42 }
 0x356   : > { %v8856_v23 = vld [vmem:[#allocation50_spill] sm:$0xff]  ;;  %v8201_v25 = vor.u32 %v6207_v24, %v5731_v9  ;;  %v5741_v9 = vld [vmem:[%s6475_s10 + $0x150] sm:$0xf] }
 0x357   : > { %8853 = vst [vmem:[#allocation6_spill] sm:$0xff] %v8177_v1  ;;  %v8180_v17 = vadd.f32 %v2535_v36, %v8854_v3  ;;  %3857 = vmatpush.bf16.msra.mxu1 %v5930_v6  ;;  %v6210_v6 = vld [vmem:[%s6475_s10 + $0x154] sm:$0xf] }
 0x359   : > { %8855 = vst [vmem:[#allocation47_spill] sm:$0xff] %v8180_v17  ;;  %v2447_v36 = vpop.f32.mrf.mxu2  ;;  %v8199_v17 = vor.u32 %v6208_v59, %v5729_v47 }
 0x35a   : > { %v2448_v3 = vadd.f32 %v2447_v36, %v8856_v23  ;;  %v5743_v36 = vld [vmem:[%s6475_s10 + $0x15c] sm:$0xf0] }
 0x35b   : > { %v3430_v58 = vpop.f32.mrf.mxu0 }
 0x35c   : > { %v2536_v1 = vpop.f32.mrf.mxu3  ;;  %v3519_v57 = vpop.f32.mrf.mxu1 }
 0x35d   : > { %v2537_v51 = vadd.f32 %v2536_v1, %v2448_v3  ;;  %v8203_v39 = vadd.f32 %v3519_v57, %v3430_v58 }
 0x35e   : > { %2489 = vmatmul.bf16.gmra.mxu2 %v7653_v14  ;;  %3469 = vmatmul.bf16.gmra.mxu0 %v8199_v17  ;;  %v6211_v14 = vld [vmem:[%s6475_s10 + $0x158] sm:$0xf0] }
 0x35f   : > { %8857 = vst [vmem:[#allocation48_spill] sm:$0xff] %v8203_v39  ;;  %v8206_v22 = vadd.f32 %v2537_v51, %v8858_v48  ;;  %3558 = vmatmul.bf16.gmra.mxu1 %v8201_v25  ;;  %v8860_v48 = vld [vmem:[#allocation9_spill] sm:$0xff]  ;;  %v8223_v39 = vor.u32 %v6211_v14, %v5741_v9  ;;  %v6222_v9 = vld [vmem:[%s8721_s1 + $0x304] sm:$0xf]  ;;  %v5791_v14 = vld [vmem:[%s8721_s1 + $0x308] sm:$0xf0] }
 0x361   : > { %2578 = vmatmul.bf16.gmra.mxu3 %v7651_v44  ;;  %v2450_v47 = vpop.f32.mrf.mxu2  ;;  %v8861_v44 = vld [vmem:[#allocation53_spill] sm:$0xff]  ;;  %8862 = vst [vmem:[#allocation50_spill] sm:$0xff] %v8223_v39 }
 0x362   : > { %v2451_v1 = vadd.f32 %v2450_v47, %v7655_v7  ;;  %v8225_v47 = vor.u32 %v6210_v6, %v5743_v36  ;;  %v5917_v6 = vld [vmem:[%s8721_s1 + $0x400] sm:$0xf]  ;;  %v5794_v36 = vor.u32 %v6222_v9, %v5791_v14 }
 0x363   : > { %v3432_v28 = vpop.f32.mrf.mxu0  ;;  %v8870_v9 = vld [vmem:[#allocation11_spill] sm:$0xff] }
 0x364   : > { %v2539_v59 = vpop.f32.mrf.mxu3  ;;  %v3521_v42 = vpop.f32.mrf.mxu1  ;;  %8863 = vst [vmem:[#allocation8_spill] sm:$0xff] %v8225_v47  ;;  %3680 = vmatpush.bf16.msra.mxu3 %v5794_v36  ;;  %v6254_v36 = vld [vmem:[%s8721_s1 + $0x404] sm:$0xf] }
 0x365   : > { %v2540_v58 = vadd.f32 %v2539_v59, %v2451_v1  ;;  %v8213_v24 = vadd.f32 %v3521_v42, %v3432_v28  ;;  %v8865_v42 = vld [vmem:[#allocation10_spill] sm:$0xff] }
 0x367   : > { %8859 = vst [vmem:[#allocation7_spill] sm:$0xff] %v8213_v24  ;;  %v8216_v51 = vadd.f32 %v2540_v58, %v8860_v48  ;;  %v8867_v48 = vld [vmem:[#allocation55_spill] sm:$0xff]  ;;  %v8874_v24 = vld [vmem:[#allocation12_spill] sm:$0xff] }
 0x369   : > { %v2452_v23 = vpop.f32.mrf.mxu2 }
 0x36a   : > { %v2453_v3 = vadd.f32 %v2452_v23, %v8861_v44 }
 0x36b   : > { %v3435_v7 = vpop.f32.mrf.mxu0 }
 0x36c   : > { %v2541_v57 = vpop.f32.mrf.mxu3  ;;  %v3524_v59 = vpop.f32.mrf.mxu1 }
 0x36d   : > { %v2542_v1 = vadd.f32 %v2541_v57, %v2453_v3  ;;  %v8227_v28 = vadd.f32 %v3524_v59, %v3435_v7  ;;  %v8868_v3 = vld [vmem:[#allocation56_spill] sm:$0xff] }
 0x36e   : > { %2494 = vmatmul.bf16.gmra.mxu2 %v7675_v2  ;;  %3474 = vmatmul.bf16.gmra.mxu0 %v8223_v39  ;;  %v6255_v2 = vld [vmem:[%s8721_s1 + $0x404] sm:$0xf0] }
 0x36f   : > { %8864 = vst [vmem:[#allocation9_spill] sm:$0xff] %v8227_v28  ;;  %v8230_v58 = vadd.f32 %v2542_v1, %v8865_v42  ;;  %3563 = vmatmul.bf16.gmra.mxu1 %v8225_v47  ;;  %v5918_v44 = vor.u32 %v6255_v2, %v5917_v6  ;;  %v6238_v28 = vld [vmem:[%s8721_s1 + $0x384] sm:$0xf]  ;;  %v5855_v6 = vld [vmem:[%s8721_s1 + $0x388] sm:$0xf0] }
 0x370   : > { %v5753_v2 = vld [vmem:[%s6475_s10 + $0x168] sm:$0xf] }
 0x371   : > { %8866 = vst [vmem:[#allocation53_spill] sm:$0xff] %v8230_v58  ;;  %2583 = vmatmul.bf16.gmra.mxu3 %v8867_v48  ;;  %v2455_v23 = vpop.f32.mrf.mxu2  ;;  %3591 = vmatpush.bf16.msra.mxu2 %v5918_v44  ;;  %v5858_v44 = vor.u32 %v6238_v28, %v5855_v6 }
 0x372   : > { %v2456_v57 = vadd.f32 %v2455_v23, %v8868_v3  ;;  %v6214_v23 = vld [vmem:[%s6475_s10 + $0x170] sm:$0xf0]  ;;  %v5919_v3 = vld [vmem:[%s8721_s1 + $0x408] sm:$0xf0] }
 0x373   : > { %v3437_v1 = vpop.f32.mrf.mxu0  ;;  %3769 = vmatpush.bf16.msra.mxu0 %v5858_v44 }
 0x374   : > { %v2544_v7 = vpop.f32.mrf.mxu3  ;;  %v3526_v42 = vpop.f32.mrf.mxu1 }
 0x375   : > { %v2545_v59 = vadd.f32 %v2544_v7, %v2456_v57  ;;  %v8249_v48 = vadd.f32 %v3526_v42, %v3437_v1  ;;  %v6213_v57 = vld [vmem:[%s6475_s10 + $0x16c] sm:$0xf]  ;;  %v5755_v7 = vld [vmem:[%s6475_s10 + $0x174] sm:$0xf0]  ;;  %v5922_v1 = vor.u32 %v6254_v36, %v5919_v3 }
 0x376   : > { %v8872_v42 = vld [vmem:[#allocation58_spill] sm:$0xff]  ;;  %v8273_v58 = vor.u32 %v6213_v57, %v5755_v7  ;;  %v5765_v7 = vld [vmem:[%s6475_s10 + $0x180] sm:$0xf] }
 0x377   : > { %8869 = vst [vmem:[#allocation10_spill] sm:$0xff] %v8249_v48  ;;  %v8252_v14 = vadd.f32 %v2545_v59, %v8870_v9  ;;  %3858 = vmatpush.bf16.msra.mxu1 %v5922_v1  ;;  %v6216_v1 = vld [vmem:[%s6475_s10 + $0x184] sm:$0xf] }
 0x379   : > { %8871 = vst [vmem:[#allocation55_spill] sm:$0xff] %v8252_v14  ;;  %v2457_v59 = vpop.f32.mrf.mxu2  ;;  %v8271_v14 = vor.u32 %v6214_v23, %v5753_v2 }
 0x37a   : > { %v2458_v9 = vadd.f32 %v2457_v59, %v8872_v42  ;;  %v5767_v59 = vld [vmem:[%s6475_s10 + $0x18c] sm:$0xf0] }
 0x37b   : > { %v3440_v39 = vpop.f32.mrf.mxu0 }
 0x37c   : > { %v2546_v48 = vpop.f32.mrf.mxu3  ;;  %v3529_v28 = vpop.f32.mrf.mxu1 }
 0x37d   : > { %v2547_v47 = vadd.f32 %v2546_v48, %v2458_v9  ;;  %v8275_v6 = vadd.f32 %v3529_v28, %v3440_v39 }
 0x37e   : > { %2499 = vmatmul.bf16.gmra.mxu2 %v7721_v11  ;;  %3479 = vmatmul.bf16.gmra.mxu0 %v8271_v14  ;;  %v6217_v11 = vld [vmem:[%s6475_s10 + $0x188] sm:$0xf0] }
 0x37f   : > { %8873 = vst [vmem:[#allocation56_spill] sm:$0xff] %v8275_v6  ;;  %v8278_v36 = vadd.f32 %v2547_v47, %v8874_v24  ;;  %3568 = vmatmul.bf16.gmra.mxu1 %v8273_v58  ;;  %v8876_v24 = vld [vmem:[#allocation13_spill] sm:$0xff]  ;;  %v8295_v6 = vor.u32 %v6217_v11, %v5765_v7  ;;  %v8885_v7 = vld [vmem:[#allocation63_spill] sm:$0xff] }
 0x381   : > { %2588 = vmatmul.bf16.gmra.mxu3 %v7719_v61  ;;  %v2460_v2 = vpop.f32.mrf.mxu2  ;;  %v8878_v61 = vld [vmem:[#allocation61_spill] sm:$0xff]  ;;  %8879 = vst [vmem:[#allocation12_spill] sm:$0xff] %v8295_v6 }
 0x382   : > { %v2461_v48 = vadd.f32 %v2460_v2, %v7723_v13  ;;  %v8297_v2 = vor.u32 %v6216_v1, %v5767_v59  ;;  %v8886_v1 = vld [vmem:[#allocation65_spill] sm:$0xff] }
 0x383   : > { %v3442_v44 = vpop.f32.mrf.mxu0 }
 0x384   : > { %v2549_v23 = vpop.f32.mrf.mxu3  ;;  %v3531_v3 = vpop.f32.mrf.mxu1  ;;  %8880 = vst [vmem:[#allocation13_spill] sm:$0xff] %v8297_v2 }
 0x385   : > { %v2550_v39 = vadd.f32 %v2549_v23, %v2461_v48  ;;  %v8285_v57 = vadd.f32 %v3531_v3, %v3442_v44 }
 0x387   : > { %8875 = vst [vmem:[#allocation11_spill] sm:$0xff] %v8285_v57  ;;  %v8288_v47 = vadd.f32 %v2550_v39, %v8876_v24  ;;  %v8882_v39 = vld [vmem:[#allocation14_spill] sm:$0xff]  ;;  %v8884_v24 = vld [vmem:[#allocation64_spill] sm:$0xff] }
 0x389   : > { %8877 = vst [vmem:[#allocation58_spill] sm:$0xff] %v8288_v47  ;;  %v2462_v42 = vpop.f32.mrf.mxu2 }
 0x38a   : > { %v2463_v9 = vadd.f32 %v2462_v42, %v8878_v61 }
 0x38b   : > { %v3445_v13 = vpop.f32.mrf.mxu0 }
 0x38c   : > { %v2551_v28 = vpop.f32.mrf.mxu3  ;;  %v3534_v23 = vpop.f32.mrf.mxu1 }
 0x38d   : > { %v2552_v48 = vadd.f32 %v2551_v28, %v2463_v9  ;;  %v8299_v44 = vadd.f32 %v3534_v23, %v3445_v13 }
 0x38e   : > { %2504 = vmatmul.bf16.gmra.mxu2 %v8884_v24  ;;  %3484 = vmatmul.bf16.gmra.mxu0 %v8295_v6  ;;  %v6220_v24 = vld [vmem:[%s6475_s10 + $0x1a0] sm:$0xf0]  ;;  %v5779_v6 = vld [vmem:[%s6475_s10 + $0x1a4] sm:$0xf0] }
 0x38f   : > { %8881 = vst [vmem:[#allocation61_spill] sm:$0xff] %v8299_v44  ;;  %v8302_v3 = vadd.f32 %v2552_v48, %v8882_v39  ;;  %3573 = vmatmul.bf16.gmra.mxu1 %v8297_v2  ;;  %v8887_v48 = vld [vmem:[#allocation15_spill] sm:$0xff]  ;;  %v5777_v39 = vld [vmem:[%s6475_s10 + $0x198] sm:$0xf]  ;;  %v6219_v44 = vld [vmem:[%s6475_s10 + $0x19c] sm:$0xf] }
 0x390   : > { %v8319_v47 = vor.u32 %v6220_v24, %v5777_v39  ;;  %v8892_v24 = vld [vmem:[#allocation17_spill] sm:$0xff] }
 0x391   : > { %8883 = vst [vmem:[#allocation14_spill] sm:$0xff] %v8302_v3  ;;  %2593 = vmatmul.bf16.gmra.mxu3 %v8885_v7  ;;  %v2465_v11 = vpop.f32.mrf.mxu2  ;;  %v8888_v7 = vld [vmem:[#allocation67_spill] sm:$0xff] }
 0x392   : > { %v2466_v59 = vadd.f32 %v2465_v11, %v8886_v1  ;;  %8889 = vst [vmem:[#allocation64_spill] sm:$0xff] %v8319_v47  ;;  %v8321_v1 = vor.u32 %v6219_v44, %v5779_v6 }
 0x393   : > { %v3447_v61 = vpop.f32.mrf.mxu0 }
 0x394   : > { %v2554_v42 = vpop.f32.mrf.mxu3  ;;  %v3536_v28 = vpop.f32.mrf.mxu1 }
 0x395   : > { %v2555_v9 = vadd.f32 %v2554_v42, %v2466_v59  ;;  %v8309_v13 = vadd.f32 %v3536_v28, %v3447_v61 }
 0x397   : > { %v8312_v23 = vadd.f32 %v2555_v9, %v8887_v48  ;;  %v8891_v9 = vld [vmem:[#allocation16_spill] sm:$0xff] }
 0x399   : > { %v2467_v3 = vpop.f32.mrf.mxu2 }
 0x39a   : > { %v2468_v57 = vadd.f32 %v2467_v3, %v8888_v7 }
 0x39b   : > { %v3450_v11 = vpop.f32.mrf.mxu0 }
 0x39c   : > { %v2556_v2 = vpop.f32.mrf.mxu3  ;;  %v3539_v42 = vpop.f32.mrf.mxu1 }
 0x39d   : > { %v2557_v59 = vadd.f32 %v2556_v2, %v2468_v57  ;;  %v8323_v61 = vadd.f32 %v3539_v42, %v3450_v11  ;;  %v5605_v11 = vld [vmem:[%s6475_s10 + $0x38] sm:$0xf] }
 0x39e   : > { %2509 = vmatmul.bf16.gmra.mxu2 %v7789_v18  ;;  %3489 = vmatmul.bf16.gmra.mxu0 %v8319_v47  ;;  %v6176_v18 = vld [vmem:[%s6475_s10 + $0x40] sm:$0xf0] }
 0x39f   : > { %8890 = vst [vmem:[#allocation63_spill] sm:$0xff] %v8323_v61  ;;  %v8326_v28 = vadd.f32 %v2557_v59, %v8891_v9  ;;  %3578 = vmatmul.bf16.gmra.mxu1 %v8321_v1  ;;  %v5606_v9 = vor.u32 %v6176_v18, %v5605_v11 }
 0x3a1   : > { %2598 = vmatmul.bf16.gmra.mxu3 %v7787_v49  ;;  %v2470_v3 = vpop.f32.mrf.mxu2 }
 0x3a2   : > { %v2471_v6 = vadd.f32 %v2470_v3, %v7791_v34 }
 0x3a3   : > { %v3452_v2 = vpop.f32.mrf.mxu0 }
 0x3a4   : > { %v2559_v57 = vpop.f32.mrf.mxu3  ;;  %v3541_v48 = vpop.f32.mrf.mxu1 }
 0x3a5   : > { %v2560_v44 = vadd.f32 %v2559_v57, %v2471_v6  ;;  %v8333_v39 = vadd.f32 %v3541_v48, %v3452_v2  ;;  %v8893_v6 = vld [vmem:[#allocation18_spill] sm:$0xff] }
 0x3a7   : > { %v8336_v7 = vadd.f32 %v2560_v44, %v8892_v24 }
 0x3a9   : > { %v2472_v59 = vpop.f32.mrf.mxu2 }
 0x3aa   : > { %v2473_v42 = vadd.f32 %v2472_v59, %v7798_v56 }
 0x3ab   : > { %v3455_v61 = vpop.f32.mrf.mxu0 }
 0x3ac   : > { %v2561_v49 = vpop.f32.mrf.mxu3  ;;  %v3544_v34 = vpop.f32.mrf.mxu1 }
 0x3ad   : > { %v2562_v47 = vadd.f32 %v2561_v49, %v2473_v42  ;;  %v8341_v3 = vadd.f32 %v3544_v34, %v3455_v61  ;;  %v8894_v61 = vld [vmem:[#allocation19_spill] sm:$0xff]  ;;  %v6179_v42 = vld [vmem:[%s6475_s10 + $0x58] sm:$0xf0] }
 0x3ae   : > { %3592 = vmatmul.bf16.vlgmr.msra.gmra.mxu2 %v5606_v9  ;;  %3770 = vmatmul.bf16.vlgmr.msra.gmra.mxu0 %v7809_v50 }
 0x3af   : > { %v8344_v57 = vadd.f32 %v2562_v47, %v8893_v6  ;;  %3859 = vmatmul.bf16.vlgmr.msra.gmra.mxu1 %v5606_v9  ;;  %v5617_v47 = vld [vmem:[%s6475_s10 + $0x50] sm:$0xf] }
 0x3b1   : > { %3681 = vmatmul.bf16.vlgmr.msra.gmra.mxu3 %v7807_v0  ;;  %v2475_v2 = vpop.f32.mrf.mxu2  ;;  %v5618_v0 = vor.u32 %v6179_v42, %v5617_v47 }
 0x3b2   : > { %v2476_v56 = vadd.f32 %v2475_v2, %v7811_v26 }
 0x3b3   : > { %v3457_v48 = vpop.f32.mrf.mxu0 }
 0x3b4   : > { %v2564_v44 = vpop.f32.mrf.mxu3  ;;  %v3546_v11 = vpop.f32.mrf.mxu1 }
 0x3b5   : > { %v2565_v24 = vadd.f32 %v2564_v44, %v2476_v56  ;;  %v8349_v18 = vadd.f32 %v3546_v11, %v3457_v48  ;;  %v8895_v56 = vld [vmem:[#allocation20_spill] sm:$0xff] }
 0x3b7   : > { %v8352_v59 = vadd.f32 %v2565_v24, %v8894_v61 }
 0x3b9   : > { %v2477_v49 = vpop.f32.mrf.mxu2 }
 0x3ba   : > { %v2478_v50 = vadd.f32 %v2477_v49, %v7832_v19  ;;  %v8896_v49 = vld [vmem:[#allocation21_spill] sm:$0xff] }
 0x3bb   : > { %v3460_v9 = vpop.f32.mrf.mxu0 }
 0x3bc   : > { %v2566_v34 = vpop.f32.mrf.mxu3  ;;  %v3549_v26 = vpop.f32.mrf.mxu1 }
 0x3bd   : > { %v2567_v6 = vadd.f32 %v2566_v34, %v2478_v50  ;;  %v8357_v2 = vadd.f32 %v3549_v26, %v3460_v9  ;;  %v5629_v34 = vld [vmem:[%s6475_s10 + $0x68] sm:$0xf]  ;;  %v6182_v9 = vld [vmem:[%s6475_s10 + $0x70] sm:$0xf0] }
 0x3be   : > { %3597 = vmatmul.bf16.gmra.mxu2 %v5618_v0  ;;  %3775 = vmatmul.bf16.gmra.mxu0 %v7855_v46 }
 0x3bf   : > { %v8360_v44 = vadd.f32 %v2567_v6, %v8895_v56  ;;  %3864 = vmatmul.bf16.gmra.mxu1 %v5618_v0 }
 0x3c1   : > { %3686 = vmatmul.bf16.gmra.mxu3 %v7853_v29  ;;  %v2480_v48 = vpop.f32.mrf.mxu2  ;;  %v5630_v29 = vor.u32 %v6182_v9, %v5629_v34 }
 0x3c2   : > { %v2481_v19 = vadd.f32 %v2480_v48, %v7857_v8 }
 0x3c3   : > { %v3462_v11 = vpop.f32.mrf.mxu0 }
 0x3c4   : > { %v2569_v24 = vpop.f32.mrf.mxu3  ;;  %v3551_v47 = vpop.f32.mrf.mxu1 }
 0x3c5   : > { %v2570_v61 = vadd.f32 %v2569_v24, %v2481_v19  ;;  %v8365_v42 = vadd.f32 %v3551_v47, %v3462_v11  ;;  %v8897_v19 = vld [vmem:[#allocation22_spill] sm:$0xff] }
 0x3c7   : > { %v8368_v50 = vadd.f32 %v2570_v61, %v8896_v49 }
 0x3c9   : > { %v2482_v6 = vpop.f32.mrf.mxu2 }
 0x3ca   : > { %v2483_v46 = vadd.f32 %v2482_v6, %v7866_v31  ;;  %v8898_v6 = vld [vmem:[#allocation23_spill] sm:$0xff] }
 0x3cb   : > { %v3465_v0 = vpop.f32.mrf.mxu0 }
 0x3cc   : > { %v2571_v26 = vpop.f32.mrf.mxu3  ;;  %v3554_v8 = vpop.f32.mrf.mxu1 }
 0x3cd   : > { %v2572_v56 = vadd.f32 %v2571_v26, %v2483_v46  ;;  %v8373_v48 = vadd.f32 %v3554_v8, %v3465_v0  ;;  %v5641_v26 = vld [vmem:[%s6475_s10 + $0x80] sm:$0xf]  ;;  %v6185_v0 = vld [vmem:[%s6475_s10 + $0x88] sm:$0xf0] }
 0x3ce   : > { %3602 = vmatmul.bf16.gmra.mxu2 %v5630_v29  ;;  %3780 = vmatmul.bf16.gmra.mxu0 %v7877_v35 }
 0x3cf   : > { %v8376_v24 = vadd.f32 %v2572_v56, %v8897_v19  ;;  %3869 = vmatmul.bf16.gmra.mxu1 %v5630_v29 }
 0x3d1   : > { %3691 = vmatmul.bf16.gmra.mxu3 %v7875_v55  ;;  %v2485_v11 = vpop.f32.mrf.mxu2  ;;  %v5642_v55 = vor.u32 %v6185_v0, %v5641_v26 }
 0x3d2   : > { %v2486_v31 = vadd.f32 %v2485_v11, %v7879_v37 }
 0x3d3   : > { %v3467_v47 = vpop.f32.mrf.mxu0 }
 0x3d4   : > { %v2574_v61 = vpop.f32.mrf.mxu3  ;;  %v3556_v34 = vpop.f32.mrf.mxu1 }
 0x3d5   : > { %v2575_v49 = vadd.f32 %v2574_v61, %v2486_v31  ;;  %v8381_v9 = vadd.f32 %v3556_v34, %v3467_v47  ;;  %v8899_v31 = vld [vmem:[#allocation24_spill] sm:$0xff] }
 0x3d7   : > { %v8384_v46 = vadd.f32 %v2575_v49, %v8898_v6 }
 0x3d9   : > { %v2487_v56 = vpop.f32.mrf.mxu2 }
 0x3da   : > { %v2488_v35 = vadd.f32 %v2487_v56, %v7900_v5  ;;  %v8900_v56 = vld [vmem:[#allocation25_spill] sm:$0xff] }
 0x3db   : > { %v3470_v29 = vpop.f32.mrf.mxu0 }
 0x3dc   : > { %v2576_v8 = vpop.f32.mrf.mxu3  ;;  %v3559_v37 = vpop.f32.mrf.mxu1 }
 0x3dd   : > { %v2577_v19 = vadd.f32 %v2576_v8, %v2488_v35  ;;  %v8389_v11 = vadd.f32 %v3559_v37, %v3470_v29  ;;  %v5653_v8 = vld [vmem:[%s6475_s10 + $0x98] sm:$0xf]  ;;  %v6188_v29 = vld [vmem:[%s6475_s10 + $0xa0] sm:$0xf0] }
 0x3de   : > { %3607 = vmatmul.bf16.gmra.mxu2 %v5642_v55  ;;  %3785 = vmatmul.bf16.gmra.mxu0 %v7923_v27 }
 0x3df   : > { %v8392_v61 = vadd.f32 %v2577_v19, %v8899_v31  ;;  %3874 = vmatmul.bf16.gmra.mxu1 %v5642_v55 }
 0x3e1   : > { %3696 = vmatmul.bf16.gmra.mxu3 %v7921_v63  ;;  %v2490_v47 = vpop.f32.mrf.mxu2  ;;  %v5654_v63 = vor.u32 %v6188_v29, %v5653_v8 }
 0x3e2   : > { %v2491_v5 = vadd.f32 %v2490_v47, %v7925_v60 }
 0x3e3   : > { %v3472_v34 = vpop.f32.mrf.mxu0 }
 0x3e4   : > { %v2579_v49 = vpop.f32.mrf.mxu3  ;;  %v3561_v26 = vpop.f32.mrf.mxu1 }
 0x3e5   : > { %v2580_v6 = vadd.f32 %v2579_v49, %v2491_v5  ;;  %v8397_v0 = vadd.f32 %v3561_v26, %v3472_v34  ;;  %v8901_v5 = vld [vmem:[#allocation26_spill] sm:$0xff] }
 0x3e7   : > { %v8400_v35 = vadd.f32 %v2580_v6, %v8900_v56 }
 0x3e9   : > { %v2492_v19 = vpop.f32.mrf.mxu2 }
 0x3ea   : > { %v2493_v27 = vadd.f32 %v2492_v19, %v7934_v16  ;;  %v8902_v19 = vld [vmem:[#allocation27_spill] sm:$0xff] }
 0x3eb   : > { %v3475_v55 = vpop.f32.mrf.mxu0 }
 0x3ec   : > { %v2581_v37 = vpop.f32.mrf.mxu3  ;;  %v3564_v60 = vpop.f32.mrf.mxu1 }
 0x3ed   : > { %v2582_v31 = vadd.f32 %v2581_v37, %v2493_v27  ;;  %v8405_v47 = vadd.f32 %v3564_v60, %v3475_v55  ;;  %v5665_v37 = vld [vmem:[%s6475_s10 + $0xb0] sm:$0xf]  ;;  %v6191_v55 = vld [vmem:[%s6475_s10 + $0xb8] sm:$0xf0] }
 0x3ee   : > { %3612 = vmatmul.bf16.gmra.mxu2 %v5654_v63  ;;  %3790 = vmatmul.bf16.gmra.mxu0 %v7945_v21 }
 0x3ef   : > { %v8408_v49 = vadd.f32 %v2582_v31, %v8901_v5  ;;  %3879 = vmatmul.bf16.gmra.mxu1 %v5654_v63 }
 0x3f1   : > { %3701 = vmatmul.bf16.gmra.mxu3 %v7943_v43  ;;  %v2495_v34 = vpop.f32.mrf.mxu2  ;;  %v5666_v43 = vor.u32 %v6191_v55, %v5665_v37 }
 0x3f2   : > { %v2496_v16 = vadd.f32 %v2495_v34, %v7947_v12 }
 0x3f3   : > { %v3477_v26 = vpop.f32.mrf.mxu0 }
 0x3f4   : > { %v2584_v6 = vpop.f32.mrf.mxu3  ;;  %v3566_v8 = vpop.f32.mrf.mxu1 }
 0x3f5   : > { %v2585_v56 = vadd.f32 %v2584_v6, %v2496_v16  ;;  %v8413_v29 = vadd.f32 %v3566_v8, %v3477_v26  ;;  %v8903_v16 = vld [vmem:[#allocation28_spill] sm:$0xff] }
 0x3f7   : > { %v8416_v27 = vadd.f32 %v2585_v56, %v8902_v19 }
 0x3f9   : > { %v2497_v31 = vpop.f32.mrf.mxu2 }
 0x3fa   : > { %v2498_v21 = vadd.f32 %v2497_v31, %v7968_v62  ;;  %v8904_v31 = vld [vmem:[#allocation29_spill] sm:$0xff] }
 0x3fb   : > { %v3480_v63 = vpop.f32.mrf.mxu0 }
 0x3fc   : > { %v2586_v60 = vpop.f32.mrf.mxu3  ;;  %v3569_v12 = vpop.f32.mrf.mxu1 }
 0x3fd   : > { %v2587_v5 = vadd.f32 %v2586_v60, %v2498_v21  ;;  %v8421_v34 = vadd.f32 %v3569_v12, %v3480_v63  ;;  %v5677_v60 = vld [vmem:[%s6475_s10 + $0xc8] sm:$0xf]  ;;  %v6194_v63 = vld [vmem:[%s6475_s10 + $0xd0] sm:$0xf0] }
 0x3fe   : > { %3617 = vmatmul.bf16.gmra.mxu2 %v5666_v43  ;;  %3795 = vmatmul.bf16.gmra.mxu0 %v7991_v32 }
 0x3ff   : > { %v8424_v6 = vadd.f32 %v2587_v5, %v8903_v16  ;;  %3884 = vmatmul.bf16.gmra.mxu1 %v5666_v43 }
 0x401   : > { %3706 = vmatmul.bf16.gmra.mxu3 %v7989_v33  ;;  %v2500_v26 = vpop.f32.mrf.mxu2  ;;  %v5678_v33 = vor.u32 %v6194_v63, %v5677_v60 }
 0x402   : > { %v2501_v62 = vadd.f32 %v2500_v26, %v7993_v45 }
 0x403   : > { %v3482_v8 = vpop.f32.mrf.mxu0 }
 0x404   : > { %v2589_v56 = vpop.f32.mrf.mxu3  ;;  %v3571_v37 = vpop.f32.mrf.mxu1 }
 0x405   : > { %v2590_v19 = vadd.f32 %v2589_v56, %v2501_v62  ;;  %v8429_v55 = vadd.f32 %v3571_v37, %v3482_v8  ;;  %v8906_v62 = vld [vmem:[#allocation31_spill] sm:$0xff] }
 0x407   : > { %v8432_v21 = vadd.f32 %v2590_v19, %v8904_v31 }
 0x409   : > { %v2502_v5 = vpop.f32.mrf.mxu2 }
 0x40a   : > { %v2503_v32 = vadd.f32 %v2502_v5, %v8002_v53  ;;  %v8909_v5 = vld [vmem:[#allocation33_spill] sm:$0xff] }
 0x40b   : > { %v3485_v43 = vpop.f32.mrf.mxu0 }
 0x40c   : > { %v2591_v12 = vpop.f32.mrf.mxu3  ;;  %v3574_v45 = vpop.f32.mrf.mxu1 }
 0x40d   : > { %v2592_v16 = vadd.f32 %v2591_v12, %v2503_v32  ;;  %v8437_v26 = vadd.f32 %v3574_v45, %v3485_v43  ;;  %v5689_v12 = vld [vmem:[%s6475_s10 + $0xe0] sm:$0xf]  ;;  %v6197_v43 = vld [vmem:[%s6475_s10 + $0xe8] sm:$0xf0] }
 0x40e   : > { %3622 = vmatmul.bf16.gmra.mxu2 %v5678_v33  ;;  %3800 = vmatmul.bf16.gmra.mxu0 %v8013_v41  ;;  %v8911_v45 = vld [vmem:[#allocation83_spill] sm:$0xff] }
 0x40f   : > { %8905 = vst [vmem:[#allocation65_spill] sm:$0xff] %v8437_v26  ;;  %v8440_v56 = vadd.f32 %v2592_v16, %v8906_v62  ;;  %3889 = vmatmul.bf16.gmra.mxu1 %v5678_v33 }
 0x411   : > { %8907 = vst [vmem:[#allocation15_spill] sm:$0xff] %v8440_v56  ;;  %3711 = vmatmul.bf16.gmra.mxu3 %v8011_v15  ;;  %v2505_v8 = vpop.f32.mrf.mxu2  ;;  %v5690_v15 = vor.u32 %v6197_v43, %v5689_v12 }
 0x412   : > { %v2506_v53 = vadd.f32 %v2505_v8, %v8015_v38 }
 0x413   : > { %v3487_v37 = vpop.f32.mrf.mxu0 }
 0x414   : > { %v2594_v19 = vpop.f32.mrf.mxu3  ;;  %v3576_v60 = vpop.f32.mrf.mxu1 }
 0x415   : > { %v2595_v31 = vadd.f32 %v2594_v19, %v2506_v53  ;;  %v8445_v63 = vadd.f32 %v3576_v60, %v3487_v37  ;;  %v8913_v53 = vld [vmem:[#allocation35_spill] sm:$0xff] }
 0x417   : > { %8908 = vst [vmem:[#allocation67_spill] sm:$0xff] %v8445_v63  ;;  %v8448_v32 = vadd.f32 %v2595_v31, %v8909_v5  ;;  %v8915_v31 = vld [vmem:[#allocation84_spill] sm:$0xff]  ;;  %v8926_v63 = vld [vmem:[#allocation38_spill] sm:$0xff] }
 0x419   : > { %8910 = vst [vmem:[#allocation16_spill] sm:$0xff] %v8448_v32  ;;  %v2507_v16 = vpop.f32.mrf.mxu2 }
 0x41a   : > { %v2508_v41 = vadd.f32 %v2507_v16, %v8911_v45 }
 0x41b   : > { %v3490_v33 = vpop.f32.mrf.mxu0 }
 0x41c   : > { %v2596_v62 = vpop.f32.mrf.mxu3  ;;  %v3579_v38 = vpop.f32.mrf.mxu1 }
 0x41d   : > { %v2597_v26 = vadd.f32 %v2596_v62, %v2508_v41  ;;  %v8453_v8 = vadd.f32 %v3579_v38, %v3490_v33  ;;  %v8917_v41 = vld [vmem:[#allocation36_spill] sm:$0xff]  ;;  %v6200_v33 = vld [vmem:[%s6475_s10 + $0x100] sm:$0xf0] }
 0x41e   : > { %3627 = vmatmul.bf16.gmra.mxu2 %v5690_v15  ;;  %3805 = vmatmul.bf16.gmra.mxu0 %v8059_v20 }
 0x41f   : > { %8912 = vst [vmem:[#allocation17_spill] sm:$0xff] %v8453_v8  ;;  %v8456_v19 = vadd.f32 %v2597_v26, %v8913_v53  ;;  %3894 = vmatmul.bf16.gmra.mxu1 %v5690_v15  ;;  %v5701_v26 = vld [vmem:[%s6475_s10 + $0xf8] sm:$0xf] }
 0x421   : > { %8914 = vst [vmem:[#allocation18_spill] sm:$0xff] %v8456_v19  ;;  %3716 = vmatmul.bf16.gmra.mxu3 %v8057_v40  ;;  %v2510_v37 = vpop.f32.mrf.mxu2  ;;  %v5702_v40 = vor.u32 %v6200_v33, %v5701_v26 }
 0x422   : > { %v2511_v60 = vadd.f32 %v2510_v37, %v8915_v31  ;;  %v8919_v37 = vld [vmem:[#allocation41_spill] sm:$0xff] }
 0x423   : > { %v3492_v12 = vpop.f32.mrf.mxu0 }
 0x424   : > { %v2599_v5 = vpop.f32.mrf.mxu3  ;;  %v3581_v16 = vpop.f32.mrf.mxu1 }
 0x425   : > { %v2600_v43 = vadd.f32 %v2599_v5, %v2511_v60  ;;  %v8461_v45 = vadd.f32 %v3581_v16, %v3492_v12  ;;  %v8921_v60 = vld [vmem:[#allocation87_spill] sm:$0xff]  ;;  %v8922_v5 = vld [vmem:[#allocation86_spill] sm:$0xff] }
 0x427   : > { %8916 = vst [vmem:[#allocation19_spill] sm:$0xff] %v8461_v45  ;;  %v8464_v62 = vadd.f32 %v2600_v43, %v8917_v41  ;;  %v8923_v43 = vld [vmem:[#allocation88_spill] sm:$0xff]  ;;  %v5713_v45 = vld [vmem:[%s6475_s10 + $0x110] sm:$0xf] }
 0x429   : > { %8918 = vst [vmem:[#allocation20_spill] sm:$0xff] %v8464_v62  ;;  %v2512_v38 = vpop.f32.mrf.mxu2  ;;  %v6203_v62 = vld [vmem:[%s6475_s10 + $0x118] sm:$0xf0] }
 0x42a   : > { %v2513_v20 = vadd.f32 %v2512_v38, %v8070_v4  ;;  %v4196_v4 = vld [vmem:[%s8722_s2] sm:$0x3] }
 0x42b   : > { %v3771_v15 = vpop.f32.mrf.mxu0  ;;  %v8478_v26 = vperm.slane %v4196_v4, 0  ;;  %v8924_v38 = vld [vmem:[#allocation43_spill] sm:$0xff] }
 0x42c   : > { %v2601_v53 = vpop.f32.mrf.mxu3  ;;  %v3860_v19 = vpop.f32.mrf.mxu1 }
 0x42d   : > { %v2602_v8 = vadd.f32 %v2601_v53, %v2513_v20 }
 0x42e   : > { %3632 = vmatmul.bf16.gmra.mxu2 %v5702_v40  ;;  %3810 = vmatmul.bf16.gmra.mxu0 %v8921_v60  ;;  %v8481_v60 = vperm.slane %v4196_v4, 1  ;;  %v8927_v4 = vld [vmem:[#allocation44_spill] sm:$0xff] }
 0x42f   : > { %v8470_v31 = vadd.f32 %v2602_v8, %v8919_v37  ;;  %3899 = vmatmul.bf16.gmra.mxu1 %v5702_v40 }
 0x431   : > { %8920 = vst [vmem:[#allocation21_spill] sm:$0xff] %v8470_v31  ;;  %3721 = vmatmul.bf16.gmra.mxu3 %v8922_v5  ;;  %v3593_v12 = vpop.f32.mrf.mxu2  ;;  %v8925_v5 = vld [vmem:[#allocation37_spill] sm:$0xff] }
 0x432   : > { %v3594_v16 = vadd.f32 %v3593_v12, %v8923_v43 }
 0x433   : > { %v3773_v33 = vpop.f32.mrf.mxu0 }
 0x434   : > { %v3682_v41 = vpop.f32.mrf.mxu3  ;;  %v4004_v20 = vadd.f32 %v3594_v16, %v8924_v38  ;;  %v3862_v53 = vpop.f32.mrf.mxu1 }
 0x435   : > { %v3772_v8 = vadd.f32 %v3771_v15, %v3682_v41  ;;  %v5714_v41 = vor.u32 %v6203_v62, %v5713_v45 }
 0x436   : > { %v4202_v40 = vadd.f32 %v8478_v26, %v4004_v20 }
 0x437   : > { %v3861_v37 = vadd.f32 %v3860_v19, %v3772_v8 }
 0x438   : > { %v4266_v56 = vmax.f32 %v4202_v40, 0.0 }
 0x439   : > { %v4005_v31 = vadd.f32 %v3861_v37, %v8925_v5  ;;  %v3595_v43 = vpop.f32.mrf.mxu2 }
 0x43a   : > { %v3596_v32 = vadd.f32 %v3595_v43, %v8926_v63 }
 0x43b   : > { %v4203_v12 = vadd.f32 %v8481_v60, %v4005_v31  ;;  %v3776_v19 = vpop.f32.mrf.mxu0 }
 0x43c   : > { %v3684_v15 = vpop.f32.mrf.mxu3  ;;  %v4006_v8 = vadd.f32 %v3596_v32, %v8927_v4  ;;  %v3865_v20 = vpop.f32.mrf.mxu1  ;;  %v8928_v32 = vld [vmem:[#allocation40_spill] sm:$0xff] }
 0x43d   : > { %v4267_v16 = vmax.f32 %v4203_v12, 0.0  ;;  %v3774_v38 = vadd.f32 %v3773_v33, %v3684_v15  ;;  %v8929_v15 = vld [vmem:[#allocation46_spill] sm:$0xff] }
 0x43e   : > { %3637 = vmatmul.bf16.gmra.mxu2 %v5714_v41  ;;  %3815 = vmatmul.bf16.gmra.mxu0 %v8129_v10  ;;  %v4204_v63 = vadd.f32 %v8478_v26, %v4006_v8 }
 0x43f   : > { %v4330_v37 = vpack.c.bf16 %v4267_v16, %v4266_v56  ;;  %v4394_v31 = vadd.f32 %v4267_v16, %v4266_v56  ;;  %v3863_v5 = vadd.f32 %v3862_v53, %v3774_v38  ;;  %3904 = vmatmul.bf16.gmra.mxu1 %v5714_v41 }
 0x440   : > { %v4268_v53 = vmax.f32 %v4204_v63, 0.0 }
 0x441   : > { %4362 = vst [vmem:[%s8493_s8] sm:$0xff] %v4330_v37  ;;  %v4007_v45 = vadd.f32 %v3863_v5, %v8134_v54  ;;  %3726 = vmatmul.bf16.gmra.mxu3 %v8127_v30  ;;  %v3598_v33 = vpop.f32.mrf.mxu2  ;;  %v5725_v5 = vld [vmem:[%s6475_s10 + $0x128] sm:$0xf] }
 0x442   : > { %v3599_v40 = vadd.f32 %v3598_v33, %v8928_v32 }
 0x443   : > { %v4205_v62 = vadd.f32 %v8481_v60, %v4007_v45  ;;  %v3778_v43 = vpop.f32.mrf.mxu0  ;;  %v6206_v45 = vld [vmem:[%s6475_s10 + $0x130] sm:$0xf0] }
 0x444   : > { %v3687_v56 = vpop.f32.mrf.mxu3  ;;  %v4008_v16 = vadd.f32 %v3599_v40, %v8929_v15  ;;  %v3867_v38 = vpop.f32.mrf.mxu1  ;;  %v5726_v40 = vor.u32 %v6206_v45, %v5725_v5  ;;  %v8934_v5 = vld [vmem:[#allocation42_spill] sm:$0xff]  ;;  %v8935_v45 = vld [vmem:[#allocation5_spill] sm:$0xff] }
 0x445   : > { %v4269_v12 = vmax.f32 %v4205_v62, 0.0  ;;  %v3777_v10 = vadd.f32 %v3776_v19, %v3687_v56  ;;  %v8930_v19 = vld [vmem:[#allocation3_spill] sm:$0xff] }
 0x446   : > { %v4206_v41 = vadd.f32 %v8478_v26, %v4008_v16 }
 0x447   : > { %v4331_v54 = vpack.c.bf16 %v4269_v12, %v4268_v53  ;;  %v4395_v4 = vadd.f32 %v4269_v12, %v4268_v53  ;;  %v3866_v8 = vadd.f32 %v3865_v20, %v3777_v10  ;;  %v8931_v12 = vld [vmem:[#allocation49_spill] sm:$0xff] }
 0x448   : > { %v4270_v56 = vmax.f32 %v4206_v41, 0.0 }
 0x449   : > { %4363 = vst [vmem:[%s8493_s8 + $0x8] sm:$0xff] %v4331_v54  ;;  %v4426_v30 = vadd.f32 %v4395_v4, %v4394_v31  ;;  %v4009_v37 = vadd.f32 %v3866_v8, %v8144_v52  ;;  %v3600_v63 = vpop.f32.mrf.mxu2  ;;  %v8932_v4 = vld [vmem:[#allocation4_spill] sm:$0xff] }
 0x44a   : > { %v3601_v62 = vadd.f32 %v3600_v63, %v8930_v19  ;;  %v8933_v63 = vld [vmem:[#allocation45_spill] sm:$0xff] }
 0x44b   : > { %v4207_v33 = vadd.f32 %v8481_v60, %v4009_v37  ;;  %v3781_v20 = vpop.f32.mrf.mxu0 }
 0x44c   : > { %v3689_v32 = vpop.f32.mrf.mxu3  ;;  %v4010_v31 = vadd.f32 %v3601_v62, %v8931_v12  ;;  %v3870_v10 = vpop.f32.mrf.mxu1 }
 0x44d   : > { %v4271_v15 = vmax.f32 %v4207_v33, 0.0  ;;  %v3779_v53 = vadd.f32 %v3778_v43, %v3689_v32 }
 0x44e   : > { %3642 = vmatmul.bf16.gmra.mxu2 %v5726_v40  ;;  %3820 = vmatmul.bf16.gmra.mxu0 %v8932_v4  ;;  %v4208_v37 = vadd.f32 %v8478_v26, %v4010_v31  ;;  %v8937_v4 = vld [vmem:[#allocation47_spill] sm:$0xff] }
 0x44f   : > { %v4332_v16 = vpack.c.bf16 %v4271_v15, %v4270_v56  ;;  %v4396_v54 = vadd.f32 %v4271_v15, %v4270_v56  ;;  %v3868_v52 = vadd.f32 %v3867_v38, %v3779_v53  ;;  %3909 = vmatmul.bf16.gmra.mxu1 %v5726_v40  ;;  %v8936_v15 = vld [vmem:[#allocation51_spill] sm:$0xff] }
 0x450   : > { %v4272_v62 = vmax.f32 %v4208_v37, 0.0 }
 0x451   : > { %4364 = vst [vmem:[%s8493_s8 + $0x10] sm:$0xff] %v4332_v16  ;;  %v4427_v8 = vadd.f32 %v4426_v30, %v4396_v54  ;;  %v4011_v19 = vadd.f32 %v3868_v52, %v8933_v63  ;;  %3731 = vmatmul.bf16.gmra.mxu3 %v8934_v5  ;;  %v3603_v41 = vpop.f32.mrf.mxu2  ;;  %v6209_v5 = vld [vmem:[%s6475_s10 + $0x148] sm:$0xf0] }
 0x452   : > { %v3604_v33 = vadd.f32 %v3603_v41, %v8935_v45 }
 0x453   : > { %v4209_v43 = vadd.f32 %v8481_v60, %v4011_v19  ;;  %v3783_v30 = vpop.f32.mrf.mxu0  ;;  %v5737_v19 = vld [vmem:[%s6475_s10 + $0x140] sm:$0xf] }
 0x454   : > { %v3692_v38 = vpop.f32.mrf.mxu3  ;;  %v4012_v53 = vadd.f32 %v3604_v33, %v8936_v15  ;;  %v3872_v12 = vpop.f32.mrf.mxu1  ;;  %v5738_v33 = vor.u32 %v6209_v5, %v5737_v19  ;;  %v8940_v19 = vld [vmem:[#allocation48_spill] sm:$0xff] }
 0x455   : > { %v4273_v32 = vmax.f32 %v4209_v43, 0.0  ;;  %v3782_v56 = vadd.f32 %v3781_v20, %v3692_v38  ;;  %v8938_v20 = vld [vmem:[#allocation6_spill] sm:$0xff] }
 0x456   : > { %v4210_v52 = vadd.f32 %v8478_v26, %v4012_v53 }
 0x457   : > { %v4333_v31 = vpack.c.bf16 %v4273_v32, %v4272_v62  ;;  %v4397_v16 = vadd.f32 %v4273_v32, %v4272_v62  ;;  %v3871_v54 = vadd.f32 %v3870_v10, %v3782_v56  ;;  %v8939_v32 = vld [vmem:[#allocation52_spill] sm:$0xff] }
 0x458   : > { %v4274_v38 = vmax.f32 %v4210_v52, 0.0 }
 0x459   : > { %4365 = vst [vmem:[%s8493_s8 + $0x18] sm:$0xff] %v4333_v31  ;;  %v4428_v40 = vadd.f32 %v4427_v8, %v4397_v16  ;;  %v4013_v63 = vadd.f32 %v3871_v54, %v8937_v4  ;;  %v3605_v37 = vpop.f32.mrf.mxu2 }
 0x45a   : > { %v3606_v43 = vadd.f32 %v3605_v37, %v8938_v20  ;;  %v8941_v20 = vld [vmem:[#allocation54_spill] sm:$0xff] }
 0x45b   : > { %v4211_v41 = vadd.f32 %v8481_v60, %v4013_v63  ;;  %v3786_v10 = vpop.f32.mrf.mxu0 }
 0x45c   : > { %v3694_v45 = vpop.f32.mrf.mxu3  ;;  %v4014_v8 = vadd.f32 %v3606_v43, %v8939_v32  ;;  %v3875_v56 = vpop.f32.mrf.mxu1  ;;  %v5749_v32 = vld [vmem:[%s6475_s10 + $0x158] sm:$0xf] }
 0x45d   : > { %v4275_v15 = vmax.f32 %v4211_v41, 0.0  ;;  %v3784_v62 = vadd.f32 %v3783_v30, %v3694_v45 }
 0x45e   : > { %3647 = vmatmul.bf16.gmra.mxu2 %v5738_v33  ;;  %3825 = vmatmul.bf16.gmra.mxu0 %v8201_v25  ;;  %v4212_v4 = vadd.f32 %v8478_v26, %v4014_v8  ;;  %v6212_v8 = vld [vmem:[%s6475_s10 + $0x160] sm:$0xf0] }
 0x45f   : > { %v4334_v53 = vpack.c.bf16 %v4275_v15, %v4274_v38  ;;  %v4398_v31 = vadd.f32 %v4275_v15, %v4274_v38  ;;  %v3873_v16 = vadd.f32 %v3872_v12, %v3784_v62  ;;  %3914 = vmatmul.bf16.gmra.mxu1 %v5738_v33 }
 0x460   : > { %v4276_v41 = vmax.f32 %v4212_v4, 0.0 }
 0x461   : > { %4366 = vst [vmem:[%s8493_s8 + $0x20] sm:$0xff] %v4334_v53  ;;  %v4429_v54 = vadd.f32 %v4428_v40, %v4398_v31  ;;  %v4015_v63 = vadd.f32 %v3873_v16, %v8206_v22  ;;  %3736 = vmatmul.bf16.gmra.mxu3 %v8199_v17  ;;  %v3608_v52 = vpop.f32.mrf.mxu2 }
 0x462   : > { %v3609_v5 = vadd.f32 %v3608_v52, %v8940_v19 }
 0x463   : > { %v4213_v30 = vadd.f32 %v8481_v60, %v4015_v63  ;;  %v3788_v40 = vpop.f32.mrf.mxu0  ;;  %v5750_v63 = vor.u32 %v6212_v8, %v5749_v32 }
 0x464   : > { %v3697_v12 = vpop.f32.mrf.mxu3  ;;  %v4016_v43 = vadd.f32 %v3609_v5, %v8941_v20  ;;  %v3877_v45 = vpop.f32.mrf.mxu1  ;;  %v8943_v5 = vld [vmem:[#allocation57_spill] sm:$0xff] }
 0x465   : > { %v4277_v25 = vmax.f32 %v4213_v30, 0.0  ;;  %v3787_v37 = vadd.f32 %v3786_v10, %v3697_v12  ;;  %v8942_v10 = vld [vmem:[#allocation7_spill] sm:$0xff] }
 0x466   : > { %v4214_v33 = vadd.f32 %v8478_v26, %v4016_v43 }
 0x467   : > { %v4335_v22 = vpack.c.bf16 %v4277_v25, %v4276_v41  ;;  %v4399_v38 = vadd.f32 %v4277_v25, %v4276_v41  ;;  %v3876_v15 = vadd.f32 %v3875_v56, %v3787_v37  ;;  %v8944_v37 = vld [vmem:[#allocation8_spill] sm:$0xff] }
 0x468   : > { %v4278_v30 = vmax.f32 %v4214_v33, 0.0 }
 0x469   : > { %4367 = vst [vmem:[%s8493_s8 + $0x28] sm:$0xff] %v4335_v22  ;;  %v4430_v17 = vadd.f32 %v4429_v54, %v4399_v38  ;;  %v4017_v62 = vadd.f32 %v3876_v15, %v8216_v51  ;;  %v3610_v31 = vpop.f32.mrf.mxu2  ;;  %v8945_v22 = vld [vmem:[#allocation53_spill] sm:$0xff]  ;;  %v8946_v15 = vld [vmem:[#allocation50_spill] sm:$0xff] }
 0x46a   : > { %v3611_v16 = vadd.f32 %v3610_v31, %v8942_v10  ;;  %v8948_v10 = vld [vmem:[#allocation59_spill] sm:$0xff] }
 0x46b   : > { %v4215_v53 = vadd.f32 %v8481_v60, %v4017_v62  ;;  %v3791_v56 = vpop.f32.mrf.mxu0  ;;  %v8947_v62 = vld [vmem:[#allocation9_spill] sm:$0xff] }
 0x46c   : > { %v3699_v4 = vpop.f32.mrf.mxu3  ;;  %v4018_v54 = vadd.f32 %v3611_v16, %v8943_v5  ;;  %v3880_v12 = vpop.f32.mrf.mxu1 }
 0x46d   : > { %v4279_v52 = vmax.f32 %v4215_v53, 0.0  ;;  %v3789_v19 = vadd.f32 %v3788_v40, %v3699_v4 }
 0x46e   : > { %3652 = vmatmul.bf16.gmra.mxu2 %v5750_v63  ;;  %3830 = vmatmul.bf16.gmra.mxu0 %v8944_v37  ;;  %v4216_v43 = vadd.f32 %v8478_v26, %v4018_v54  ;;  %v8949_v54 = vld [vmem:[#allocation55_spill] sm:$0xff] }
 0x46f   : > { %v4336_v41 = vpack.c.bf16 %v4279_v52, %v4278_v30  ;;  %v4400_v25 = vadd.f32 %v4279_v52, %v4278_v30  ;;  %v3878_v51 = vadd.f32 %v3877_v45, %v3789_v19  ;;  %3919 = vmatmul.bf16.gmra.mxu1 %v5750_v63 }
 0x470   : > { %v4280_v8 = vmax.f32 %v4216_v43, 0.0 }
 0x471   : > { %4368 = vst [vmem:[%s8493_s8 + $0x30] sm:$0xff] %v4336_v41  ;;  %v4431_v20 = vadd.f32 %v4430_v17, %v4400_v25  ;;  %v4019_v38 = vadd.f32 %v3878_v51, %v8945_v22  ;;  %3741 = vmatmul.bf16.gmra.mxu3 %v8946_v15  ;;  %v3613_v33 = vpop.f32.mrf.mxu2  ;;  %v5761_v25 = vld [vmem:[%s6475_s10 + $0x170] sm:$0xf]  ;;  %v6215_v51 = vld [vmem:[%s6475_s10 + $0x178] sm:$0xf0] }
 0x472   : > { %v3614_v32 = vadd.f32 %v3613_v33, %v8947_v62  ;;  %v5762_v15 = vor.u32 %v6215_v51, %v5761_v25  ;;  %v8953_v25 = vld [vmem:[#allocation62_spill] sm:$0xff] }
 0x473   : > { %v4217_v40 = vadd.f32 %v8481_v60, %v4019_v38  ;;  %v3793_v17 = vpop.f32.mrf.mxu0 }
 0x474   : > { %v3702_v45 = vpop.f32.mrf.mxu3  ;;  %v4020_v16 = vadd.f32 %v3614_v32, %v8948_v10  ;;  %v3882_v4 = vpop.f32.mrf.mxu1  ;;  %v8951_v32 = vld [vmem:[#allocation60_spill] sm:$0xff] }
 0x475   : > { %v4281_v53 = vmax.f32 %v4217_v40, 0.0  ;;  %v3792_v31 = vadd.f32 %v3791_v56, %v3702_v45  ;;  %v8950_v56 = vld [vmem:[#allocation10_spill] sm:$0xff] }
 0x476   : > { %v4218_v5 = vadd.f32 %v8478_v26, %v4020_v16 }
 0x477   : > { %v4337_v30 = vpack.c.bf16 %v4281_v53, %v4280_v8  ;;  %v4401_v52 = vadd.f32 %v4281_v53, %v4280_v8  ;;  %v3881_v19 = vadd.f32 %v3880_v12, %v3792_v31 }
 0x478   : > { %v4282_v40 = vmax.f32 %v4218_v5, 0.0 }
 0x479   : > { %4369 = vst [vmem:[%s8493_s8 + $0x38] sm:$0xff] %v4337_v30  ;;  %v4432_v63 = vadd.f32 %v4431_v20, %v4401_v52  ;;  %v4021_v41 = vadd.f32 %v3881_v19, %v8949_v54  ;;  %v3615_v43 = vpop.f32.mrf.mxu2  ;;  %v8952_v19 = vld [vmem:[#allocation56_spill] sm:$0xff] }
 0x47a   : > { %v3616_v22 = vadd.f32 %v3615_v43, %v8950_v56 }
 0x47b   : > { %v4219_v37 = vadd.f32 %v8481_v60, %v4021_v41  ;;  %v3796_v12 = vpop.f32.mrf.mxu0 }
 0x47c   : > { %v3704_v38 = vpop.f32.mrf.mxu3  ;;  %v4022_v20 = vadd.f32 %v3616_v22, %v8951_v32  ;;  %v3885_v45 = vpop.f32.mrf.mxu1 }
 0x47d   : > { %v4283_v33 = vmax.f32 %v4219_v37, 0.0  ;;  %v3794_v62 = vadd.f32 %v3793_v17, %v3704_v38  ;;  %v8954_v38 = vld [vmem:[#allocation58_spill] sm:$0xff] }
 0x47e   : > { %3657 = vmatmul.bf16.gmra.mxu2 %v5762_v15  ;;  %3835 = vmatmul.bf16.gmra.mxu0 %v8273_v58  ;;  %v4220_v16 = vadd.f32 %v8478_v26, %v4022_v20 }
 0x47f   : > { %v4338_v8 = vpack.c.bf16 %v4283_v33, %v4282_v40  ;;  %v4402_v53 = vadd.f32 %v4283_v33, %v4282_v40  ;;  %v3883_v31 = vadd.f32 %v3882_v4, %v3794_v62  ;;  %3924 = vmatmul.bf16.gmra.mxu1 %v5762_v15  ;;  %v5773_v40 = vld [vmem:[%s6475_s10 + $0x188] sm:$0xf]  ;;  %v6218_v33 = vld [vmem:[%s6475_s10 + $0x190] sm:$0xf0] }
 0x480   : > { %v4284_v54 = vmax.f32 %v4220_v16, 0.0 }
 0x481   : > { %4370 = vst [vmem:[%s8493_s8 + $0x40] sm:$0xff] %v4338_v8  ;;  %v4433_v10 = vadd.f32 %v4432_v63, %v4402_v53  ;;  %v4023_v30 = vadd.f32 %v3883_v31, %v8278_v36  ;;  %3746 = vmatmul.bf16.gmra.mxu3 %v8271_v14  ;;  %v3618_v52 = vpop.f32.mrf.mxu2  ;;  %v5774_v53 = vor.u32 %v6218_v33, %v5773_v40  ;;  %v8961_v33 = vld [vmem:[#allocation68_spill] sm:$0xff] }
 0x482   : > { %v3619_v5 = vadd.f32 %v3618_v52, %v8952_v19 }
 0x483   : > { %v4221_v17 = vadd.f32 %v8481_v60, %v4023_v30  ;;  %v3798_v63 = vpop.f32.mrf.mxu0 }
 0x484   : > { %v3707_v4 = vpop.f32.mrf.mxu3  ;;  %v4024_v51 = vadd.f32 %v3619_v5, %v8953_v25  ;;  %v3887_v37 = vpop.f32.mrf.mxu1  ;;  %v8958_v25 = vld [vmem:[#allocation14_spill] sm:$0xff] }
 0x485   : > { %v4285_v58 = vmax.f32 %v4221_v17, 0.0  ;;  %v3797_v41 = vadd.f32 %v3796_v12, %v3707_v4  ;;  %v8955_v12 = vld [vmem:[#allocation11_spill] sm:$0xff]  ;;  %v8956_v17 = vld [vmem:[#allocation66_spill] sm:$0xff] }
 0x486   : > { %v4222_v22 = vadd.f32 %v8478_v26, %v4024_v51 }
 0x487   : > { %v4339_v36 = vpack.c.bf16 %v4285_v58, %v4284_v54  ;;  %v4403_v43 = vadd.f32 %v4285_v58, %v4284_v54  ;;  %v3886_v56 = vadd.f32 %v3885_v45, %v3797_v41  ;;  %v8957_v54 = vld [vmem:[#allocation13_spill] sm:$0xff] }
 0x488   : > { %v4286_v31 = vmax.f32 %v4222_v22, 0.0 }
 0x489   : > { %4371 = vst [vmem:[%s8493_s8 + $0x48] sm:$0xff] %v4339_v36  ;;  %v4434_v14 = vadd.f32 %v4433_v10, %v4403_v43  ;;  %v4025_v15 = vadd.f32 %v3886_v56, %v8954_v38  ;;  %v3620_v32 = vpop.f32.mrf.mxu2  ;;  %v8959_v36 = vld [vmem:[#allocation12_spill] sm:$0xff]  ;;  %v8960_v56 = vld [vmem:[#allocation61_spill] sm:$0xff] }
 0x48a   : > { %v3621_v20 = vadd.f32 %v3620_v32, %v8955_v12 }
 0x48b   : > { %v4223_v62 = vadd.f32 %v8481_v60, %v4025_v15  ;;  %v3801_v45 = vpop.f32.mrf.mxu0 }
 0x48c   : > { %v3709_v8 = vpop.f32.mrf.mxu3  ;;  %v4026_v10 = vadd.f32 %v3621_v20, %v8956_v17  ;;  %v3890_v52 = vpop.f32.mrf.mxu1  ;;  %v6221_v17 = vld [vmem:[%s6475_s10 + $0x1a8] sm:$0xf0] }
 0x48d   : > { %v4287_v16 = vmax.f32 %v4223_v62, 0.0  ;;  %v3799_v30 = vadd.f32 %v3798_v63, %v3709_v8 }
 0x48e   : > { %3662 = vmatmul.bf16.gmra.mxu2 %v5774_v53  ;;  %3840 = vmatmul.bf16.gmra.mxu0 %v8957_v54  ;;  %v4224_v41 = vadd.f32 %v8478_v26, %v4026_v10 }
 0x48f   : > { %v4340_v19 = vpack.c.bf16 %v4287_v16, %v4286_v31  ;;  %v4404_v5 = vadd.f32 %v4287_v16, %v4286_v31  ;;  %v3888_v4 = vadd.f32 %v3887_v37, %v3799_v30  ;;  %3929 = vmatmul.bf16.gmra.mxu1 %v5774_v53  ;;  %v5785_v30 = vld [vmem:[%s6475_s10 + $0x1a0] sm:$0xf] }
 0x490   : > { %v4288_v38 = vmax.f32 %v4224_v41, 0.0 }
 0x491   : > { %4372 = vst [vmem:[%s8493_s8 + $0x50] sm:$0xff] %v4340_v19  ;;  %v4435_v58 = vadd.f32 %v4434_v14, %v4404_v5  ;;  %v4027_v51 = vadd.f32 %v3888_v4, %v8958_v25  ;;  %3751 = vmatmul.bf16.gmra.mxu3 %v8959_v36  ;;  %v3623_v43 = vpop.f32.mrf.mxu2  ;;  %v5786_v4 = vor.u32 %v6221_v17, %v5785_v30 }
 0x492   : > { %v3624_v22 = vadd.f32 %v3623_v43, %v8960_v56 }
 0x493   : > { %v4225_v63 = vadd.f32 %v8481_v60, %v4027_v51  ;;  %v3803_v14 = vpop.f32.mrf.mxu0  ;;  %v8962_v51 = vld [vmem:[#allocation69_spill] sm:$0xff] }
 0x494   : > { %v3712_v37 = vpop.f32.mrf.mxu3  ;;  %v4028_v62 = vadd.f32 %v3624_v22, %v8961_v33  ;;  %v3892_v32 = vpop.f32.mrf.mxu1 }
 0x495   : > { %v4289_v15 = vmax.f32 %v4225_v63, 0.0  ;;  %v3802_v40 = vadd.f32 %v3801_v45, %v3712_v37  ;;  %v8963_v37 = vld [vmem:[#allocation64_spill] sm:$0xff] }
 0x496   : > { %v4226_v31 = vadd.f32 %v8478_v26, %v4028_v62 }
 0x497   : > { %v4341_v12 = vpack.c.bf16 %v4289_v15, %v4288_v38  ;;  %v4405_v20 = vadd.f32 %v4289_v15, %v4288_v38  ;;  %v3891_v8 = vadd.f32 %v3890_v52, %v3802_v40  ;;  %v8964_v40 = vld [vmem:[#allocation63_spill] sm:$0xff] }
 0x498   : > { %v4290_v54 = vmax.f32 %v4226_v31, 0.0 }
 0x499   : > { %4373 = vst [vmem:[%s8493_s8 + $0x58] sm:$0xff] %v4341_v12  ;;  %v4436_v53 = vadd.f32 %v4435_v58, %v4405_v20  ;;  %v4029_v16 = vadd.f32 %v3891_v8, %v8312_v23  ;;  %v3625_v19 = vpop.f32.mrf.mxu2  ;;  %v8965_v20 = vld [vmem:[#allocation70_spill] sm:$0xff] }
 0x49a   : > { %v3626_v45 = vadd.f32 %v3625_v19, %v8309_v13 }
 0x49b   : > { %v4227_v10 = vadd.f32 %v8481_v60, %v4029_v16  ;;  %v3806_v52 = vpop.f32.mrf.mxu0 }
 0x49c   : > { %v3714_v5 = vpop.f32.mrf.mxu3  ;;  %v4030_v58 = vadd.f32 %v3626_v45, %v8962_v51  ;;  %v3895_v36 = vpop.f32.mrf.mxu1  ;;  %v8966_v51 = vld [vmem:[#allocation71_spill] sm:$0xff] }
 0x49d   : > { %v4291_v41 = vmax.f32 %v4227_v10, 0.0  ;;  %v3804_v25 = vadd.f32 %v3803_v14, %v3714_v5 }
 0x49e   : > { %3667 = vmatmul.bf16.gmra.mxu2 %v5786_v4  ;;  %3845 = vmatmul.bf16.gmra.mxu0 %v8321_v1  ;;  %v4228_v22 = vadd.f32 %v8478_v26, %v4030_v58 }
 0x49f   : > { %v4342_v63 = vpack.c.bf16 %v4291_v41, %v4290_v54  ;;  %v4406_v43 = vadd.f32 %v4291_v41, %v4290_v54  ;;  %v3893_v23 = vadd.f32 %v3892_v32, %v3804_v25  ;;  %3934 = vmatmul.bf16.gmra.mxu1 %v5786_v4 }
 0x4a0   : > { %v4292_v62 = vmax.f32 %v4228_v22, 0.0 }
 0x4a1   : > { %4374 = vst [vmem:[%s8493_s8 + $0x60] sm:$0xff] %v4342_v63  ;;  %v4437_v56 = vadd.f32 %v4436_v53, %v4406_v43  ;;  %v4031_v13 = vadd.f32 %v3893_v23, %v8326_v28  ;;  %3756 = vmatmul.bf16.gmra.mxu3 %v8963_v37  ;;  %v3628_v15 = vpop.f32.mrf.mxu2 }
 0x4a2   : > { %v3629_v14 = vadd.f32 %v3628_v15, %v8964_v40 }
 0x4a3   : > { %v4229_v38 = vadd.f32 %v8481_v60, %v4031_v13  ;;  %v3808_v1 = vpop.f32.mrf.mxu0 }
 0x4a4   : > { %v3717_v33 = vpop.f32.mrf.mxu3  ;;  %v4032_v8 = vadd.f32 %v3629_v14, %v8965_v20  ;;  %v3897_v53 = vpop.f32.mrf.mxu1 }
 0x4a5   : > { %v4293_v32 = vmax.f32 %v4229_v38, 0.0  ;;  %v3807_v12 = vadd.f32 %v3806_v52, %v3717_v33 }
 0x4a6   : > { %v4230_v17 = vadd.f32 %v8478_v26, %v4032_v8 }
 0x4a7   : > { %v4343_v31 = vpack.c.bf16 %v4293_v32, %v4292_v62  ;;  %v4407_v16 = vadd.f32 %v4293_v32, %v4292_v62  ;;  %v3896_v28 = vadd.f32 %v3895_v36, %v3807_v12  ;;  %v8967_v62 = vld [vmem:[#allocation72_spill] sm:$0xff] }
 0x4a8   : > { %v4294_v54 = vmax.f32 %v4230_v17, 0.0 }
 0x4a9   : > { %4375 = vst [vmem:[%s8493_s8 + $0x68] sm:$0xff] %v4343_v31  ;;  %v4438_v30 = vadd.f32 %v4437_v56, %v4407_v16  ;;  %v4033_v10 = vadd.f32 %v3896_v28, %v8336_v7  ;;  %v3630_v45 = vpop.f32.mrf.mxu2 }
 0x4aa   : > { %v3631_v5 = vadd.f32 %v3630_v45, %v8333_v39 }
 0x4ab   : > { %v4231_v19 = vadd.f32 %v8481_v60, %v4033_v10  ;;  %v3811_v52 = vpop.f32.mrf.mxu0 }
 0x4ac   : > { %v3719_v4 = vpop.f32.mrf.mxu3  ;;  %v4034_v58 = vadd.f32 %v3631_v5, %v8966_v51  ;;  %v3900_v36 = vpop.f32.mrf.mxu1  ;;  %v8968_v5 = vld [vmem:[#allocation73_spill] sm:$0xff] }
 0x4ad   : > { %v4295_v41 = vmax.f32 %v4231_v19, 0.0  ;;  %v3809_v25 = vadd.f32 %v3808_v1, %v3719_v4 }
 0x4ae   : > { %v4232_v7 = vadd.f32 %v8478_v26, %v4034_v58 }
 0x4af   : > { %v4344_v63 = vpack.c.bf16 %v4295_v41, %v4294_v54  ;;  %v4408_v43 = vadd.f32 %v4295_v41, %v4294_v54  ;;  %v3898_v23 = vadd.f32 %v3897_v53, %v3809_v25 }
 0x4b0   : > { %v4296_v15 = vmax.f32 %v4232_v7, 0.0 }
 0x4b1   : > { %4376 = vst [vmem:[%s8493_s8 + $0x70] sm:$0xff] %v4344_v63  ;;  %v4439_v56 = vadd.f32 %v4438_v30, %v4408_v43  ;;  %v4035_v22 = vadd.f32 %v3898_v23, %v8344_v57  ;;  %v3633_v13 = vpop.f32.mrf.mxu2 }
 0x4b2   : > { %v3634_v37 = vadd.f32 %v3633_v13, %v8341_v3 }
 0x4b3   : > { %v4233_v39 = vadd.f32 %v8481_v60, %v4035_v22  ;;  %v3813_v33 = vpop.f32.mrf.mxu0 }
 0x4b4   : > { %v3722_v38 = vpop.f32.mrf.mxu3  ;;  %v4036_v32 = vadd.f32 %v3634_v37, %v8967_v62  ;;  %v3902_v12 = vpop.f32.mrf.mxu1 }
 0x4b5   : > { %v4297_v40 = vmax.f32 %v4233_v39, 0.0  ;;  %v3812_v14 = vadd.f32 %v3811_v52, %v3722_v38  ;;  %v8969_v39 = vld [vmem:[#allocation74_spill] sm:$0xff] }
 0x4b6   : > { %v4234_v57 = vadd.f32 %v8478_v26, %v4036_v32 }
 0x4b7   : > { %v4345_v1 = vpack.c.bf16 %v4297_v40, %v4296_v15  ;;  %v4409_v20 = vadd.f32 %v4297_v40, %v4296_v15  ;;  %v3901_v8 = vadd.f32 %v3900_v36, %v3812_v14 }
 0x4b8   : > { %v4298_v17 = vmax.f32 %v4234_v57, 0.0  ;;  %v8970_v57 = vld [vmem:[#allocation75_spill] sm:$0xff] }
 0x4b9   : > { %4377 = vst [vmem:[%s8493_s8 + $0x78] sm:$0xff] %v4345_v1  ;;  %v4440_v53 = vadd.f32 %v4439_v56, %v4409_v20  ;;  %v4037_v31 = vadd.f32 %v3901_v8, %v8352_v59  ;;  %v3635_v16 = vpop.f32.mrf.mxu2 }
 0x4ba   : > { %v3636_v28 = vadd.f32 %v3635_v16, %v8349_v18 }
 0x4bb   : > { %v4235_v3 = vadd.f32 %v8481_v60, %v4037_v31  ;;  %v3816_v45 = vpop.f32.mrf.mxu0 }
 0x4bc   : > { %v3724_v30 = vpop.f32.mrf.mxu3  ;;  %v4038_v4 = vadd.f32 %v3636_v28, %v8968_v5  ;;  %v3905_v54 = vpop.f32.mrf.mxu1 }
 0x4bd   : > { %v4299_v10 = vmax.f32 %v4235_v3, 0.0  ;;  %v3814_v19 = vadd.f32 %v3813_v33, %v3724_v30 }
 0x4be   : > { %v4236_v59 = vadd.f32 %v8478_v26, %v4038_v4 }
 0x4bf   : > { %v4346_v41 = vpack.c.bf16 %v4299_v10, %v4298_v17  ;;  %v4410_v25 = vadd.f32 %v4299_v10, %v4298_v17  ;;  %v3903_v52 = vadd.f32 %v3902_v12, %v3814_v19 }
 0x4c0   : > { %v4300_v23 = vmax.f32 %v4236_v59, 0.0 }
 0x4c1   : > { %4378 = vst [vmem:[%s8493_s8 + $0x80] sm:$0xff] %v4346_v41  ;;  %v4441_v51 = vadd.f32 %v4440_v53, %v4410_v25  ;;  %v4039_v58 = vadd.f32 %v3903_v52, %v8360_v44  ;;  %v3638_v36 = vpop.f32.mrf.mxu2  ;;  %v8971_v52 = vld [vmem:[#allocation76_spill] sm:$0xff] }
 0x4c2   : > { %v3639_v63 = vadd.f32 %v3638_v36, %v8357_v2 }
 0x4c3   : > { %v4237_v18 = vadd.f32 %v8481_v60, %v4039_v58  ;;  %v3818_v22 = vpop.f32.mrf.mxu0 }
 0x4c4   : > { %v3727_v43 = vpop.f32.mrf.mxu3  ;;  %v4040_v13 = vadd.f32 %v3639_v63, %v8969_v39  ;;  %v3907_v37 = vpop.f32.mrf.mxu1 }
 0x4c5   : > { %v4301_v56 = vmax.f32 %v4237_v18, 0.0  ;;  %v3817_v7 = vadd.f32 %v3816_v45, %v3727_v43 }
 0x4c6   : > { %v4238_v44 = vadd.f32 %v8478_v26, %v4040_v13 }
 0x4c7   : > { %v4347_v38 = vpack.c.bf16 %v4301_v56, %v4300_v23  ;;  %v4411_v15 = vadd.f32 %v4301_v56, %v4300_v23  ;;  %v3906_v40 = vadd.f32 %v3905_v54, %v3817_v7 }
 0x4c8   : > { %v4302_v1 = vmax.f32 %v4238_v44, 0.0 }
 0x4c9   : > { %4379 = vst [vmem:[%s8493_s8 + $0x88] sm:$0xff] %v4347_v38  ;;  %v4442_v14 = vadd.f32 %v4441_v51, %v4411_v15  ;;  %v4041_v33 = vadd.f32 %v3906_v40, %v8368_v50  ;;  %v3640_v62 = vpop.f32.mrf.mxu2  ;;  %v8972_v38 = vld [vmem:[#allocation77_spill] sm:$0xff] }
 0x4ca   : > { %v3641_v32 = vadd.f32 %v3640_v62, %v8365_v42 }
 0x4cb   : > { %v4239_v2 = vadd.f32 %v8481_v60, %v4041_v33  ;;  %v3821_v53 = vpop.f32.mrf.mxu0 }
 0x4cc   : > { %v3729_v12 = vpop.f32.mrf.mxu3  ;;  %v4042_v31 = vadd.f32 %v3641_v32, %v8970_v57  ;;  %v3910_v3 = vpop.f32.mrf.mxu1 }
 0x4cd   : > { %v4303_v20 = vmax.f32 %v4239_v2, 0.0  ;;  %v3819_v8 = vadd.f32 %v3818_v22, %v3729_v12 }
 0x4ce   : > { %v4240_v50 = vadd.f32 %v8478_v26, %v4042_v31  ;;  %v8973_v31 = vld [vmem:[#allocation78_spill] sm:$0xff] }
 0x4cf   : > { %v4348_v16 = vpack.c.bf16 %v4303_v20, %v4302_v1  ;;  %v4412_v28 = vadd.f32 %v4303_v20, %v4302_v1  ;;  %v3908_v30 = vadd.f32 %v3907_v37, %v3819_v8 }
 0x4d0   : > { %v4304_v4 = vmax.f32 %v4240_v50, 0.0 }
 0x4d1   : > { %4380 = vst [vmem:[%s8493_s8 + $0x90] sm:$0xff] %v4348_v16  ;;  %v4443_v17 = vadd.f32 %v4442_v14, %v4412_v28  ;;  %v4043_v10 = vadd.f32 %v3908_v30, %v8376_v24  ;;  %v3643_v19 = vpop.f32.mrf.mxu2 }
 0x4d2   : > { %v3644_v45 = vadd.f32 %v3643_v19, %v8373_v48 }
 0x4d3   : > { %v4241_v42 = vadd.f32 %v8481_v60, %v4043_v10  ;;  %v3823_v25 = vpop.f32.mrf.mxu0 }
 0x4d4   : > { %v3732_v5 = vpop.f32.mrf.mxu3  ;;  %v4044_v51 = vadd.f32 %v3644_v45, %v8971_v52  ;;  %v3912_v59 = vpop.f32.mrf.mxu1 }
 0x4d5   : > { %v4305_v54 = vmax.f32 %v4241_v42, 0.0  ;;  %v3822_v41 = vadd.f32 %v3821_v53, %v3732_v5 }
 0x4d6   : > { %v4242_v24 = vadd.f32 %v8478_v26, %v4044_v51 }
 0x4d7   : > { %v4349_v58 = vpack.c.bf16 %v4305_v54, %v4304_v4  ;;  %v4413_v18 = vadd.f32 %v4305_v54, %v4304_v4  ;;  %v3911_v36 = vadd.f32 %v3910_v3, %v3822_v41 }
 0x4d8   : > { %v4306_v22 = vmax.f32 %v4242_v24, 0.0 }
 0x4d9   : > { %4381 = vst [vmem:[%s8493_s8 + $0x98] sm:$0xff] %v4349_v58  ;;  %v4444_v63 = vadd.f32 %v4443_v17, %v4413_v18  ;;  %v4045_v43 = vadd.f32 %v3911_v36, %v8384_v46  ;;  %v3645_v23 = vpop.f32.mrf.mxu2 }
 0x4da   : > { %v3646_v56 = vadd.f32 %v3645_v23, %v8381_v9 }
 0x4db   : > { %v4243_v48 = vadd.f32 %v8481_v60, %v4045_v43  ;;  %v3826_v37 = vpop.f32.mrf.mxu0 }
 0x4dc   : > { %v3734_v7 = vpop.f32.mrf.mxu3  ;;  %v4046_v15 = vadd.f32 %v3646_v56, %v8972_v38  ;;  %v3915_v40 = vpop.f32.mrf.mxu1 }
 0x4dd   : > { %v4307_v39 = vmax.f32 %v4243_v48, 0.0  ;;  %v3824_v13 = vadd.f32 %v3823_v25, %v3734_v7  ;;  %v8974_v25 = vld [vmem:[#allocation79_spill] sm:$0xff] }
 0x4de   : > { %v4244_v46 = vadd.f32 %v8478_v26, %v4046_v15 }
 0x4df   : > { %v4350_v14 = vpack.c.bf16 %v4307_v39, %v4306_v22  ;;  %v4414_v44 = vadd.f32 %v4307_v39, %v4306_v22  ;;  %v3913_v33 = vadd.f32 %v3912_v59, %v3824_v13  ;;  %v8975_v39 = vld [vmem:[#allocation80_spill] sm:$0xff] }
 0x4e0   : > { %v4308_v20 = vmax.f32 %v4244_v46, 0.0 }
 0x4e1   : > { %4382 = vst [vmem:[%s8493_s8 + $0xa0] sm:$0xff] %v4350_v14  ;;  %v4445_v2 = vadd.f32 %v4444_v63, %v4414_v44  ;;  %v4047_v62 = vadd.f32 %v3913_v33, %v8392_v61  ;;  %v3648_v32 = vpop.f32.mrf.mxu2 }
 0x4e2   : > { %v3649_v12 = vadd.f32 %v3648_v32, %v8389_v11 }
 0x4e3   : > { %v4245_v9 = vadd.f32 %v8481_v60, %v4047_v62  ;;  %v3828_v57 = vpop.f32.mrf.mxu0 }
 0x4e4   : > { %v3737_v1 = vpop.f32.mrf.mxu3  ;;  %v4048_v3 = vadd.f32 %v3649_v12, %v8973_v31  ;;  %v3917_v16 = vpop.f32.mrf.mxu1 }
 0x4e5   : > { %v4309_v8 = vmax.f32 %v4245_v9, 0.0  ;;  %v3827_v53 = vadd.f32 %v3826_v37, %v3737_v1  ;;  %v8976_v1 = vld [vmem:[#allocation81_spill] sm:$0xff] }
 0x4e6   : > { %v4246_v61 = vadd.f32 %v8478_v26, %v4048_v3 }
 0x4e7   : > { %v4351_v28 = vpack.c.bf16 %v4309_v8, %v4308_v20  ;;  %v4415_v30 = vadd.f32 %v4309_v8, %v4308_v20  ;;  %v3916_v17 = vadd.f32 %v3915_v40, %v3827_v53 }
 0x4e8   : > { %v4310_v5 = vmax.f32 %v4246_v61, 0.0 }
 0x4e9   : > { %4383 = vst [vmem:[%s8493_s8 + $0xa8] sm:$0xff] %v4351_v28  ;;  %v4446_v50 = vadd.f32 %v4445_v2, %v4415_v30  ;;  %v4049_v10 = vadd.f32 %v3916_v17, %v8400_v35  ;;  %v3650_v42 = vpop.f32.mrf.mxu2 }
 0x4ea   : > { %v3651_v19 = vadd.f32 %v3650_v42, %v8397_v0  ;;  %v8977_v42 = vld [vmem:[#allocation82_spill] sm:$0xff] }
 0x4eb   : > { %v4247_v11 = vadd.f32 %v8481_v60, %v4049_v10  ;;  %v3831_v41 = vpop.f32.mrf.mxu0 }
 0x4ec   : > { %v3739_v45 = vpop.f32.mrf.mxu3  ;;  %v4050_v52 = vadd.f32 %v3651_v19, %v8974_v25  ;;  %v3920_v51 = vpop.f32.mrf.mxu1 }
 0x4ed   : > { %v4311_v4 = vmax.f32 %v4247_v11, 0.0  ;;  %v3829_v54 = vadd.f32 %v3828_v57, %v3739_v45 }
 0x4ee   : > { %v4248_v35 = vadd.f32 %v8478_v26, %v4050_v52 }
 0x4ef   : > { %v4352_v59 = vpack.c.bf16 %v4311_v4, %v4310_v5  ;;  %v4416_v58 = vadd.f32 %v4311_v4, %v4310_v5  ;;  %v3918_v18 = vadd.f32 %v3917_v16, %v3829_v54 }
 0x4f0   : > { %v4312_v23 = vmax.f32 %v4248_v35, 0.0  ;;  %v8978_v35 = vld [vmem:[#allocation30_spill] sm:$0xff] }
 0x4f1   : > { %4384 = vst [vmem:[%s8493_s8 + $0xb0] sm:$0xff] %v4352_v59  ;;  %v4447_v36 = vadd.f32 %v4446_v50, %v4416_v58  ;;  %v4051_v63 = vadd.f32 %v3918_v18, %v8408_v49  ;;  %v3653_v24 = vpop.f32.mrf.mxu2 }
 0x4f2   : > { %v3654_v43 = vadd.f32 %v3653_v24, %v8405_v47 }
 0x4f3   : > { %v4249_v0 = vadd.f32 %v8481_v60, %v4051_v63  ;;  %v3833_v22 = vpop.f32.mrf.mxu0 }
 0x4f4   : > { %v3742_v48 = vpop.f32.mrf.mxu3  ;;  %v4052_v13 = vadd.f32 %v3654_v43, %v8975_v39  ;;  %v3922_v37 = vpop.f32.mrf.mxu1 }
 0x4f5   : > { %v4313_v56 = vmax.f32 %v4249_v0, 0.0  ;;  %v3832_v7 = vadd.f32 %v3831_v41, %v3742_v48 }
 0x4f6   : > { %v4250_v49 = vadd.f32 %v8478_v26, %v4052_v13  ;;  %v8980_v13 = vld [vmem:[#allocation65_spill] sm:$0xff] }
 0x4f7   : > { %v4353_v38 = vpack.c.bf16 %v4313_v56, %v4312_v23  ;;  %v4417_v15 = vadd.f32 %v4313_v56, %v4312_v23  ;;  %v3921_v40 = vadd.f32 %v3920_v51, %v3832_v7  ;;  %v8979_v7 = vld [vmem:[#allocation15_spill] sm:$0xff] }
 0x4f8   : > { %v4314_v62 = vmax.f32 %v4250_v49, 0.0  ;;  %v8981_v49 = vld [vmem:[#allocation32_spill] sm:$0xff] }
 0x4f9   : > { %4385 = vst [vmem:[%s8493_s8 + $0xb8] sm:$0xff] %v4353_v38  ;;  %v4448_v14 = vadd.f32 %v4447_v36, %v4417_v15  ;;  %v4053_v44 = vadd.f32 %v3921_v40, %v8416_v27  ;;  %v3655_v33 = vpop.f32.mrf.mxu2 }
 0x4fa   : > { %v3656_v2 = vadd.f32 %v3655_v33, %v8413_v29 }
 0x4fb   : > { %v4251_v47 = vadd.f32 %v8481_v60, %v4053_v44  ;;  %v3836_v12 = vpop.f32.mrf.mxu0 }
 0x4fc   : > { %v3744_v46 = vpop.f32.mrf.mxu3  ;;  %v4054_v20 = vadd.f32 %v3656_v2, %v8976_v1  ;;  %v3925_v8 = vpop.f32.mrf.mxu1 }
 0x4fd   : > { %v4315_v9 = vmax.f32 %v4251_v47, 0.0  ;;  %v3834_v32 = vadd.f32 %v3833_v22, %v3744_v46 }
 0x4fe   : > { %v4252_v27 = vadd.f32 %v8478_v26, %v4054_v20 }
 0x4ff   : > { %v4354_v53 = vpack.c.bf16 %v4315_v9, %v4314_v62  ;;  %v4418_v57 = vadd.f32 %v4315_v9, %v4314_v62  ;;  %v3923_v31 = vadd.f32 %v3922_v37, %v3834_v32  ;;  %v8982_v32 = vld [vmem:[#allocation16_spill] sm:$0xff] }
 0x500   : > { %v4316_v50 = vmax.f32 %v4252_v27, 0.0 }
 0x501   : > { %4386 = vst [vmem:[%s8493_s8 + $0xc0] sm:$0xff] %v4354_v53  ;;  %v4449_v3 = vadd.f32 %v4448_v14, %v4418_v57  ;;  %v4055_v16 = vadd.f32 %v3923_v31, %v8424_v6  ;;  %v3658_v28 = vpop.f32.mrf.mxu2  ;;  %v8983_v53 = vld [vmem:[#allocation67_spill] sm:$0xff] }
 0x502   : > { %v3659_v30 = vadd.f32 %v3658_v28, %v8421_v34 }
 0x503   : > { %v4253_v29 = vadd.f32 %v8481_v60, %v4055_v16  ;;  %v3838_v11 = vpop.f32.mrf.mxu0 }
 0x504   : > { %v3747_v17 = vpop.f32.mrf.mxu3  ;;  %v4056_v19 = vadd.f32 %v3659_v30, %v8977_v42  ;;  %v3927_v45 = vpop.f32.mrf.mxu1 }
 0x505   : > { %v4317_v61 = vmax.f32 %v4253_v29, 0.0  ;;  %v3837_v10 = vadd.f32 %v3836_v12, %v3747_v17  ;;  %v8984_v29 = vld [vmem:[#allocation34_spill] sm:$0xff] }
 0x506   : > { %v4254_v6 = vadd.f32 %v8478_v26, %v4056_v19 }
 0x507   : > { %v4355_v5 = vpack.c.bf16 %v4317_v61, %v4316_v50  ;;  %v4419_v4 = vadd.f32 %v4317_v61, %v4316_v50  ;;  %v3926_v54 = vadd.f32 %v3925_v8, %v3837_v10 }
 0x508   : > { %v4318_v58 = vmax.f32 %v4254_v6, 0.0 }
 0x509   : > { %4387 = vst [vmem:[%s8493_s8 + $0xc8] sm:$0xff] %v4355_v5  ;;  %v4450_v41 = vadd.f32 %v4449_v3, %v4419_v4  ;;  %v4057_v25 = vadd.f32 %v3926_v54, %v8432_v21  ;;  %v3660_v52 = vpop.f32.mrf.mxu2  ;;  %v8986_v54 = vld [vmem:[#allocation17_spill] sm:$0xff] }
 0x50a   : > { %v3661_v51 = vadd.f32 %v3660_v52, %v8429_v55 }
 0x50b   : > { %v4255_v34 = vadd.f32 %v8481_v60, %v4057_v25  ;;  %v3841_v0 = vpop.f32.mrf.mxu0 }
 0x50c   : > { %v3749_v59 = vpop.f32.mrf.mxu3  ;;  %v4058_v63 = vadd.f32 %v3661_v51, %v8978_v35  ;;  %v3930_v23 = vpop.f32.mrf.mxu1  ;;  %v8987_v51 = vld [vmem:[#allocation85_spill] sm:$0xff] }
 0x50d   : > { %v4319_v18 = vmax.f32 %v4255_v34, 0.0  ;;  %v3839_v36 = vadd.f32 %v3838_v11, %v3749_v59  ;;  %v8985_v11 = vld [vmem:[#allocation18_spill] sm:$0xff] }
 0x50e   : > { %v4256_v21 = vadd.f32 %v8478_v26, %v4058_v63 }
 0x50f   : > { %v4356_v24 = vpack.c.bf16 %v4319_v18, %v4318_v58  ;;  %v4420_v43 = vadd.f32 %v4319_v18, %v4318_v58  ;;  %v3928_v48 = vadd.f32 %v3927_v45, %v3839_v36 }
 0x510   : > { %v4320_v15 = vmax.f32 %v4256_v21, 0.0 }
 0x511   : > { %4388 = vst [vmem:[%s8493_s8 + $0xd0] sm:$0xff] %v4356_v24  ;;  %v4451_v56 = vadd.f32 %v4450_v41, %v4420_v43  ;;  %v4059_v22 = vadd.f32 %v3928_v48, %v8979_v7  ;;  %v3663_v39 = vpop.f32.mrf.mxu2 }
 0x512   : > { %v3664_v37 = vadd.f32 %v3663_v39, %v8980_v13 }
 0x513   : > { %v4257_v55 = vadd.f32 %v8481_v60, %v4059_v22  ;;  %v3843_v46 = vpop.f32.mrf.mxu0 }
 0x514   : > { %v3752_v38 = vpop.f32.mrf.mxu3  ;;  %v4060_v44 = vadd.f32 %v3664_v37, %v8981_v49  ;;  %v3932_v1 = vpop.f32.mrf.mxu1  ;;  %v8990_v37 = vld [vmem:[#allocation39_spill] sm:$0xff] }
 0x515   : > { %v4321_v40 = vmax.f32 %v4257_v55, 0.0  ;;  %v3842_v14 = vadd.f32 %v3841_v0, %v3752_v38  ;;  %v8988_v0 = vld [vmem:[#allocation20_spill] sm:$0xff] }
 0x516   : > { %v4258_v9 = vadd.f32 %v8478_v26, %v4060_v44 }
 0x517   : > { %v4357_v47 = vpack.c.bf16 %v4321_v40, %v4320_v15  ;;  %v4421_v33 = vadd.f32 %v4321_v40, %v4320_v15  ;;  %v3931_v2 = vadd.f32 %v3930_v23, %v3842_v14 }
 0x518   : > { %v4322_v3 = vmax.f32 %v4258_v9, 0.0 }
 0x519   : > { %4389 = vst [vmem:[%s8493_s8 + $0xd8] sm:$0xff] %v4357_v47  ;;  %v4452_v62 = vadd.f32 %v4451_v56, %v4421_v33  ;;  %v4061_v12 = vadd.f32 %v3931_v2, %v8982_v32  ;;  %v3665_v8 = vpop.f32.mrf.mxu2  ;;  %v8989_v56 = vld [vmem:[#allocation19_spill] sm:$0xff]  ;;  %v8991_v47 = vld [vmem:[#allocation21_spill] sm:$0xff] }
 0x51a   : > { %v3666_v57 = vadd.f32 %v3665_v8, %v8983_v53 }
 0x51b   : > { %v4259_v20 = vadd.f32 %v8481_v60, %v4061_v12  ;;  %v3846_v19 = vpop.f32.mrf.mxu0 }
 0x51c   : > { %v3754_v31 = vpop.f32.mrf.mxu3  ;;  %v4062_v28 = vadd.f32 %v3666_v57, %v8984_v29  ;;  %v3935_v4 = vpop.f32.mrf.mxu1 }
 0x51d   : > { %v4323_v27 = vmax.f32 %v4259_v20, 0.0  ;;  %v3844_v16 = vadd.f32 %v3843_v46, %v3754_v31 }
 0x51e   : > { %v4260_v10 = vadd.f32 %v8478_v26, %v4062_v28 }
 0x51f   : > { %v4358_v30 = vpack.c.bf16 %v4323_v27, %v4322_v3  ;;  %v4422_v17 = vadd.f32 %v4323_v27, %v4322_v3  ;;  %v3933_v50 = vadd.f32 %v3932_v1, %v3844_v16 }
 0x520   : > { %v4324_v25 = vmax.f32 %v4260_v10, 0.0 }
 0x521   : > { %4390 = vst [vmem:[%s8493_s8 + $0xe0] sm:$0xff] %v4358_v30  ;;  %v4453_v61 = vadd.f32 %v4452_v62, %v4422_v17  ;;  %v4063_v42 = vadd.f32 %v3933_v50, %v8985_v11  ;;  %v3668_v5 = vpop.f32.mrf.mxu2 }
 0x522   : > { %v3669_v41 = vadd.f32 %v3668_v5, %v8986_v54 }
 0x523   : > { %v4261_v45 = vadd.f32 %v8481_v60, %v4063_v42  ;;  %v3848_v23 = vpop.f32.mrf.mxu0 }
 0x524   : > { %v3757_v6 = vpop.f32.mrf.mxu3  ;;  %v4064_v59 = vadd.f32 %v3669_v41, %v8987_v51  ;;  %v3937_v13 = vpop.f32.mrf.mxu1 }
 0x525   : > { %v4325_v34 = vmax.f32 %v4261_v45, 0.0  ;;  %v3847_v52 = vadd.f32 %v3846_v19, %v3757_v6 }
 0x526   : > { %v4262_v63 = vadd.f32 %v8478_v26, %v4064_v59 }
 0x527   : > { %v4359_v58 = vpack.c.bf16 %v4325_v34, %v4324_v25  ;;  %v4423_v18 = vadd.f32 %v4325_v34, %v4324_v25  ;;  %v3936_v36 = vadd.f32 %v3935_v4, %v3847_v52 }
 0x528   : > { %v4326_v22 = vmax.f32 %v4262_v63, 0.0 }
 0x529   : > { %4391 = vst [vmem:[%s8493_s8 + $0xe8] sm:$0xff] %v4359_v58  ;;  %v4454_v35 = vadd.f32 %v4453_v61, %v4423_v18  ;;  %v4065_v24 = vadd.f32 %v3936_v36, %v8988_v0  ;;  %v3670_v48 = vpop.f32.mrf.mxu2 }
 0x52a   : > { %v3671_v21 = vadd.f32 %v3670_v48, %v8989_v56 }
 0x52b   : > { %v4263_v43 = vadd.f32 %v8481_v60, %v4065_v24 }
 0x52c   : > { %v3759_v7 = vpop.f32.mrf.mxu3  ;;  %v4066_v38 = vadd.f32 %v3671_v21, %v8990_v37 }
 0x52d   : > { %v4327_v55 = vmax.f32 %v4263_v43, 0.0  ;;  %v3849_v39 = vadd.f32 %v3848_v23, %v3759_v7 }
 0x52e   : > { %v4264_v44 = vadd.f32 %v8478_v26, %v4066_v38 }
 0x52f   : > { %v4360_v15 = vpack.c.bf16 %v4327_v55, %v4326_v22  ;;  %v4424_v40 = vadd.f32 %v4327_v55, %v4326_v22  ;;  %v3938_v14 = vadd.f32 %v3937_v13, %v3849_v39 }
 0x530   : > { %v4328_v46 = vmax.f32 %v4264_v44, 0.0 }
 0x531   : > { %4392 = vst [vmem:[%s8493_s8 + $0xf0] sm:$0xff] %v4360_v15  ;;  %v4455_v49 = vadd.f32 %v4454_v35, %v4424_v40  ;;  %v4067_v33 = vadd.f32 %v3938_v14, %v8991_v47 }
 0x533   : > { %v4265_v2 = vadd.f32 %v8481_v60, %v4067_v33 }
 0x535   : > { %v4329_v62 = vmax.f32 %v4265_v2, 0.0 }
 0x537   : > { %v4361_v9 = vpack.c.bf16 %v4329_v62, %v4328_v46  ;;  %v4425_v32 = vadd.f32 %v4329_v62, %v4328_v46 }
 0x539   : > { %4393 = vst [vmem:[%s8493_s8 + $0xf8] sm:$0xff] %v4361_v9  ;;  %v4456_v12 = vadd.f32 %v4455_v49, %v4425_v32 }
 0x53b   : > { %v4457_v1 = vrot.slane %v4456_v12, 4 }
 0x53d   : > { %v4458_v20 = vadd.f32 %v4457_v1, %v4456_v12 }
 0x53f   : > { %v4459_v8 = vrot.slane %v4458_v20, 2 }
 0x541   : > { %v4460_v53 = vadd.f32 %v4459_v8, %v4458_v20 }
 0x543   : > { %v4461_v57 = vrot.slane %v4460_v53, 1 }
 0x545   : > { %v4462_v26 = vadd.f32 %v4461_v57, %v4460_v53 }
 0x547   : > { %4463 = vst [vmem:[%s253_s11] sm:$0x1] %v4462_v26 }
 0x548 PF: > { %s15_s17 = sadd.s32 1, %s6333_s17   ;;  %s8992_s15 = smov %s6329_s16 }
 0x549   : > { %p12_p5 = scmp.ge.s32.totalorder %s15_s17, 4   ;;  %s8993_s16 = smov %s8995_s18 }
 0x54b   :  { %14 = sbr.rel (!%p12_p5) target bundleno = 2 (0x2), region = 78 }

</bundles_post_ra>
